<compile_context>
chip_gen: v7x
topology: tpu7x:2x2x1
jax: 0.10.0
libtpu: 0.0.40
codegen_flags: <defaults>
</compile_context>

<pallas_src>
import functools

import jax
import jax.numpy as jnp
from jax.experimental import pallas as pl
from jax.experimental.pallas import tpu as pltpu


# --------------------------------------------------------------------------- #
# helpers
# --------------------------------------------------------------------------- #
def _round_up(n, m):
    return ((n + m - 1) // m) * m


def _row_tile(m, target=1024):
    """Largest convenient row tile dividing m (multiples of 16 so bf16 slabs tile
    cleanly; prefer >= 2 tiles so the BlockSpec pipeline actually overlaps)."""
    for t in (target, 512, 256, 128, 64, 32, 16):
        if t <= m and m % t == 0 and (m // t) >= 2:
            return t
    return m


def _vmem_limit_bytes():
    """Scoped-VMEM budget: v5e/v6e have 128 MiB physical (16/32 MiB scoped default),
    v7x only 64 MiB physical -> keep its budget <= ~48 MiB."""
    try:
        kind = jax.devices()[0].device_kind.lower()
    except Exception:
        kind = ""
    if "v7" in kind:
        return 48 * 1024 * 1024
    if "v5" in kind or "v6" in kind:
        return 96 * 1024 * 1024
    return 48 * 1024 * 1024


@functools.lru_cache(maxsize=None)
def _roll_sign():
    """Probe pltpu.roll once on a tiny kernel: +1 if it matches jnp.roll's sign,
    -1 if it is the opposite rotation, 0 if it fails to lower (-> concat fallback).
    Runs eagerly (concrete inputs), even if first called during an outer jit trace."""
    try:
        def k(x_ref, o_ref):
            o_ref[...] = pltpu.roll(x_ref[...], 1, axis=0)

        x = jnp.arange(8 * 128, dtype=jnp.float32).reshape(8, 128)
        y = jax.block_until_ready(
            pl.pallas_call(k, out_shape=jax.ShapeDtypeStruct((8, 128), jnp.float32))(x))
        if float(y[0, 0]) == float(x[7, 0]):
            return 1
        if float(y[0, 0]) == float(x[1, 0]):
            return -1
        return 0
    except Exception:
        return 0


def _shift_rows(x, shift, roll_sign):
    """Row rotation: result[i] = x[(i - shift) mod n]  (== jnp.roll(x, shift, axis=0)).
    Uses the XLU rotate (pltpu.roll) when available; slice+concat fallback otherwise."""
    n = x.shape[0]
    s = shift % n
    if s == 0:
        return x
    if roll_sign == 0:
        return jnp.concatenate([x[n - s:], x[:n - s]], axis=0)
    return pltpu.roll(x, (s * roll_sign) % n, axis=0)


def _fold_bn(stat, count, gamma, beta, eps):
    """Fold per-tile (sum, sum_sq) partials into per-channel scale/shift (f32)."""
    st = stat.reshape(-1, 8, stat.shape[-1])
    total = jnp.sum(st[:, 0, :], axis=0)
    total_sq = jnp.sum(st[:, 1, :], axis=0)
    mean = total / count
    var = jnp.maximum(total_sq / count - mean * mean, 0.0)   # biased variance
    scale = gamma * jax.lax.rsqrt(var + eps)
    shift = beta - mean * scale
    return scale.reshape(1, -1).astype(jnp.float32), shift.reshape(1, -1).astype(jnp.float32)


# --------------------------------------------------------------------------- #
# kernels
# --------------------------------------------------------------------------- #
def _matmul_stats(z, w_ref, y_ref, stat_ref, cdt):
    """MXU matmul (cdt operands, f32 accumulation) + per-tile BN partial stats.
    Stats come from the f32 accumulator; the activation slab is stored narrow (bf16)."""
    y = jnp.dot(z.astype(cdt), w_ref[...], preferred_element_type=jnp.float32)
    y_ref[...] = y.astype(y_ref.dtype)
    ssum = jnp.sum(y, axis=0, keepdims=True)
    ssq = jnp.sum(y * y, axis=0, keepdims=True)
    stat_ref[...] = jnp.concatenate(
        [ssum, ssq, jnp.zeros((6, y.shape[1]), jnp.float32)], axis=0)


def _conv1x1_kernel(x_ref, w_ref, y_ref, stat_ref, *, cdt):
    _matmul_stats(x_ref[...], w_ref, y_ref, stat_ref, cdt)


def _bn_relu_conv1x1_kernel(x_ref, s_ref, t_ref, w_ref, y_ref, stat_ref, *, cdt):
    # Folded BN + ReLU kept in f32 (portable to v5e's non-bf16 VPU).
    z = jnp.maximum(x_ref[...].astype(jnp.float32) * s_ref[...] + t_ref[...], 0.0)
    _matmul_stats(z, w_ref, y_ref, stat_ref, cdt)


def _bn_relu_conv3x3_kernel(x_ref, s_ref, t_ref, w_ref, y_ref, stat_ref, *,
                            W, cdt, roll_sign):
    """One image per grid step: folded BN + ReLU, then the 3x3 conv as three
    K = 3*Ci matmuls on a dx-stacked operand (input-side column masks + XLU row
    rotations), with the dy row shift applied to the f32 products on the output
    side (2 rotations + 2 border row masks).  Accumulator starts from the centre
    row, no zero init, no per-tap casts."""
    HW = x_ref.shape[0]
    Co = w_ref.shape[2]

    z = jnp.maximum(x_ref[...].astype(jnp.float32) * s_ref[...] + t_ref[...], 0.0)

    ridx = jax.lax.broadcasted_iota(jnp.int32, (HW, 1), 0)
    col = ridx % W

    # dx taps: source columns that only wrapped outputs would read are zeroed, then
    # the flattened rows are rotated by +/-1 (f32 sublane rotation).
    z_m1 = _shift_rows(jnp.where(col < W - 1, z, 0.0), 1, roll_sign)    # -> z[h, w-1]
    z_p1 = _shift_rows(jnp.where(col > 0, z, 0.0), -1, roll_sign)       # -> z[h, w+1]

    # Single cast of the stacked MXU operand (HW, 3*Ci) to the compute dtype.
    stack = jnp.concatenate([z_m1, z, z_p1], axis=1).astype(cdt)

    p_m1 = jnp.dot(stack, w_ref[0], preferred_element_type=jnp.float32)   # dy = -1
    acc = jnp.dot(stack, w_ref[1], preferred_element_type=jnp.float32)    # dy =  0
    p_p1 = jnp.dot(stack, w_ref[2], preferred_element_type=jnp.float32)   # dy = +1

    # Output-side dy shift + top/bottom border masks (row validity of h+dy).
    acc = acc + jnp.where(ridx >= W, _shift_rows(p_m1, W, roll_sign), 0.0)
    acc = acc + jnp.where(ridx < HW - W, _shift_rows(p_p1, -W, roll_sign), 0.0)

    y_ref[...] = acc.astype(y_ref.dtype)
    ssum = jnp.sum(acc, axis=0, keepdims=True)
    ssq = jnp.sum(acc * acc, axis=0, keepdims=True)
    stat_ref[...] = jnp.concatenate(
        [ssum, ssq, jnp.zeros((6, Co), jnp.float32)], axis=0)


def _bn_add_relu_kernel(y_ref, x_ref, s_ref, t_ref, o_ref):
    o_ref[...] = jnp.maximum(
        y_ref[...].astype(jnp.float32) * s_ref[...] + t_ref[...] + x_ref[...],
        0.0).astype(o_ref.dtype)


# --------------------------------------------------------------------------- #
# stage wrappers (pallas_call setup)
# --------------------------------------------------------------------------- #
def _pointwise_conv_stage(x2d, w, s=None, t=None, *, cdt, act_dt, tm, cp):
    M, Ci = x2d.shape
    Co = w.shape[1]
    G = M // tm
    row = lambda i: (i, 0)
    const2 = lambda i: (0, 0)

    if s is None:
        kernel = functools.partial(_conv1x1_kernel, cdt=cdt)
        in_specs = [pl.BlockSpec((tm, Ci), row),
                    pl.BlockSpec((Ci, Co), const2)]
        args = (x2d, w)
    else:
        kernel = functools.partial(_bn_relu_conv1x1_kernel, cdt=cdt)
        in_specs = [pl.BlockSpec((tm, Ci), row),
                    pl.BlockSpec((1, Ci), const2),
                    pl.BlockSpec((1, Ci), const2),
                    pl.BlockSpec((Ci, Co), const2)]
        args = (x2d, s, t, w)

    return pl.pallas_call(
        kernel,
        out_shape=(jax.ShapeDtypeStruct((M, Co), act_dt),
                   jax.ShapeDtypeStruct((G * 8, Co), jnp.float32)),
        grid=(G,),
        in_specs=in_specs,
        out_specs=(pl.BlockSpec((tm, Co), row),
                   pl.BlockSpec((8, Co), row)),
        compiler_params=cp,
    )(*args)


def _bn_relu_conv3x3_stage(y1, s, t, w2, *, N, H, W, cdt, act_dt, cp, roll_sign):
    HW = H * W
    M, Ci = y1.shape
    Co = w2.shape[2]
    kernel = functools.partial(_bn_relu_conv3x3_kernel, W=W, cdt=cdt,
                               roll_sign=roll_sign)
    return pl.pallas_call(
        kernel,
        out_shape=(jax.ShapeDtypeStruct((M, Co), act_dt),
                   jax.ShapeDtypeStruct((N * 8, Co), jnp.float32)),
        grid=(N,),
        in_specs=[pl.BlockSpec((HW, Ci), lambda n: (n, 0)),
                  pl.BlockSpec((1, Ci), lambda n: (0, 0)),
                  pl.BlockSpec((1, Ci), lambda n: (0, 0)),
                  pl.BlockSpec((3, 3 * Ci, Co), lambda n: (0, 0, 0))],
        out_specs=(pl.BlockSpec((HW, Co), lambda n: (n, 0)),
                   pl.BlockSpec((8, Co), lambda n: (n, 0))),
        compiler_params=cp,
    )(y1, s, t, w2)


def _bn_add_relu_stage(y3, xid, s, t, *, out_dt, tm, cp):
    M, C = y3.shape
    G = M // tm
    row = lambda i: (i, 0)
    const2 = lambda i: (0, 0)
    return pl.pallas_call(
        _bn_add_relu_kernel,
        out_shape=jax.ShapeDtypeStruct((M, C), out_dt),
        grid=(G,),
        in_specs=[pl.BlockSpec((tm, C), row),
                  pl.BlockSpec((tm, C), row),
                  pl.BlockSpec((1, C), const2),
                  pl.BlockSpec((1, C), const2)],
        out_specs=pl.BlockSpec((tm, C), row),
        compiler_params=cp,
    )(y3, xid, s, t)


# --------------------------------------------------------------------------- #
# full Bottleneck forward
# --------------------------------------------------------------------------- #
def bottleneck_forward(x_nchw, params, eps=1e-5, compute_dtype=jnp.bfloat16,
                       act_dtype=jnp.bfloat16):
    """Bottleneck forward (module defaults). x_nchw: (N, C, H, W)."""
    N, Cin, H, W = x_nchw.shape
    width = params["tw1"].shape[0]
    Cout = params["tw3"].shape[0]
    if Cin != Cout:
        raise ValueError("identity skip requires inplanes == planes * expansion")

    Cin_p = _round_up(Cin, 128)
    Cw_p = _round_up(width, 128)
    Cout_p = _round_up(Cout, 128)
    M = N * H * W

    # NCHW -> lane-dense (M, C_pad) slab; x2d stays f32 (conv1 operand + residual).
    x2d = jnp.transpose(x_nchw, (0, 2, 3, 1)).reshape(M, Cin).astype(jnp.float32)
    x2d = jnp.pad(x2d, ((0, 0), (0, Cin_p - Cin)))

    # PyTorch OIHW weights -> matmul layouts, zero-padded, compute dtype.
    w1 = jnp.pad(jnp.transpose(params["tw1"][:, :, 0, 0]),
                 ((0, Cin_p - Cin), (0, Cw_p - width))).astype(compute_dtype)
    # conv2: (Co,Ci,3,3) -> (kh,kw,Ci,Co), pad, then per-dy dx-stacked (3, 3*Ci_p, Co_p).
    w2 = jnp.transpose(params["tw2"], (2, 3, 1, 0))
    w2 = jnp.pad(w2, ((0, 0), (0, 0), (0, Cw_p - width), (0, Cw_p - width)))
    w2 = w2.reshape(3, 3 * Cw_p, Cw_p).astype(compute_dtype)
    w3 = jnp.pad(jnp.transpose(params["tw3"][:, :, 0, 0]),
                 ((0, Cw_p - width), (0, Cout_p - Cout))).astype(compute_dtype)

    def padc(v, cp_):
        return jnp.pad(v.astype(jnp.float32), (0, cp_ - v.shape[0]))

    g1, b1 = padc(params["g1"], Cw_p), padc(params["b1"], Cw_p)
    g2, b2 = padc(params["g2"], Cw_p), padc(params["b2"], Cw_p)
    g3, b3 = padc(params["g3"], Cout_p), padc(params["b3"], Cout_p)

    tm = _row_tile(M)
    cp = pltpu.CompilerParams(dimension_semantics=("parallel",),
                              vmem_limit_bytes=_vmem_limit_bytes())
    rs = _roll_sign()

    # Stage 1: conv1 (1x1) + per-tile BN1 partial stats.
    y1, st1 = _pointwise_conv_stage(x2d, w1, cdt=compute_dtype, act_dt=act_dtype,
                                    tm=tm, cp=cp)
    s1, t1 = _fold_bn(st1, M, g1, b1, eps)

    # Stage 2: bn1 + relu fused into the 3x3 conv + BN2 partial stats.
    y2, st2 = _bn_relu_conv3x3_stage(y1, s1, t1, w2, N=N, H=H, W=W,
                                     cdt=compute_dtype, act_dt=act_dtype,
                                     cp=cp, roll_sign=rs)
    s2, t2 = _fold_bn(st2, M, g2, b2, eps)

    # Stage 3: bn2 + relu fused into conv3 (1x1) + BN3 partial stats.
    y3, st3 = _pointwise_conv_stage(y2, w3, s2, t2, cdt=compute_dtype,
                                    act_dt=act_dtype, tm=tm, cp=cp)
    s3, t3 = _fold_bn(st3, M, g3, b3, eps)

    # Stage 4: bn3 + identity residual (f32 x2d) + relu, stored in the caller's dtype.
    out2d = _bn_add_relu_stage(y3, x2d, s3, t3, out_dt=x_nchw.dtype, tm=tm, cp=cp)

    out = out2d[:, :Cout].reshape(N, H, W, Cout)
    return jnp.transpose(out, (0, 3, 1, 2))


# ----------------------------- reference (plain JAX) -------------------------
def reference_forward(x, p, eps=1e-5):
    def bn(y, g, b):
        mean = y.mean(axis=(0, 2, 3), keepdims=True)
        var = ((y - mean) ** 2).mean(axis=(0, 2, 3), keepdims=True)
        return ((y - mean) / jnp.sqrt(var + eps)) * g.reshape(1, -1, 1, 1) \
            + b.reshape(1, -1, 1, 1)

    conv = functools.partial(jax.lax.conv_general_dilated,
                             window_strides=(1, 1),
                             dimension_numbers=("NCHW", "OIHW", "NCHW"),
                             precision=jax.lax.Precision.HIGHEST)
    out = conv(x, p["tw1"], padding="VALID")
    out = jax.nn.relu(bn(out, p["g1"], p["b1"]))
    out = conv(out, p["tw2"], padding=[(1, 1), (1, 1)])
    out = jax.nn.relu(bn(out, p["g2"], p["b2"]))
    out = conv(out, p["tw3"], padding="VALID")
    out = bn(out, p["g3"], p["b3"])
    return jax.nn.relu(out + x)


def init_params(key, inplanes, planes, base_width=64, groups=1):
    width = int(planes * (base_width / 64.0)) * groups
    out_c = planes * 4  # expansion = 4
    ks = jax.random.split(key, 9)
    return dict(
        tw1=0.2 * jax.random.normal(ks[0], (width, inplanes, 1, 1), jnp.float32),
        tw2=0.2 * jax.random.normal(ks[1], (width, width, 3, 3), jnp.float32),
        tw3=0.2 * jax.random.normal(ks[2], (out_c, width, 1, 1), jnp.float32),
        g1=1.0 + 0.1 * jax.random.normal(ks[3], (width,), jnp.float32),
        b1=0.1 * jax.random.normal(ks[4], (width,), jnp.float32),
        g2=1.0 + 0.1 * jax.random.normal(ks[5], (width,), jnp.float32),
        b2=0.1 * jax.random.normal(ks[6], (width,), jnp.float32),
        g3=1.0 + 0.1 * jax.random.normal(ks[7], (out_c,), jnp.float32),
        b3=0.1 * jax.random.normal(ks[8], (out_c,), jnp.float32),
    )


if __name__ == "__main__":
    key = jax.random.PRNGKey(0)
    kx, kp = jax.random.split(key)

    inplanes, planes = 16, 4      # inplanes == planes * expansion -> identity skip
    N, Hs, Ws = 2, 16, 16
    x = jax.random.normal(kx, (N, inplanes, Hs, Ws), jnp.float32)
    params = init_params(kp, inplanes, planes)

    fwd = jax.jit(bottleneck_forward)
    out = jax.block_until_ready(fwd(x, params))
    ref = reference_forward(x, params)

    assert out.shape == ref.shape == (N, planes * 4, Hs, Ws)
    max_err = float(jnp.max(jnp.abs(out - ref)))
    # bf16 MXU operands + bf16 inter-stage activation storage (f32 accumulation and
    # f32 BN stats) vs. the all-f32 HIGHEST-precision reference -> sub-percent level
    # relative error on O(1) activations.
    assert bool(jnp.allclose(out, ref, atol=6e-2, rtol=5e-2)), f"max err {max_err}"
    print("KERNEL_OK")
</pallas_src>

<mosaic_0001>
module attributes {stable_mosaic.version = 11 : i64} {
  func.func @_conv1x1_kernel(%arg0: i32, %arg1: memref<256x128xf32, #tpu.memory_space<vmem>>, %arg2: memref<128x128xbf16, #tpu.memory_space<vmem>>, %arg3: memref<256x128xbf16, #tpu.memory_space<vmem>>, %arg4: memref<8x128xf32, #tpu.memory_space<vmem>>) attributes {dimension_semantics = [#tpu.dimension_semantics<parallel>], iteration_bounds = array<i64: 2>, scalar_prefetch = 0 : i64, scratch_operands = 0 : i64, tpu.core_type = #tpu.core_type<tc>, window_params = [{transform_indices = @transform_0, window_bounds = array<i64: 256, 128>}, {pipeline_mode = #tpu.pipeline_mode<synchronous>, transform_indices = @transform_1, window_bounds = array<i64: 128, 128>}, {transform_indices = @transform_2, window_bounds = array<i64: 256, 128>}, {transform_indices = @transform_3, window_bounds = array<i64: 8, 128>}]} {
    %c0 = arith.constant 0 : index
    %c0_0 = arith.constant 0 : index
    %0 = vector.load %arg1[%c0, %c0_0] : memref<256x128xf32, #tpu.memory_space<vmem>>, vector<256x128xf32>
    %1 = arith.truncf %0 : vector<256x128xf32> to vector<256x128xbf16>
    %c0_1 = arith.constant 0 : index
    %c0_2 = arith.constant 0 : index
    %2 = vector.load %arg2[%c0_1, %c0_2] : memref<128x128xbf16, #tpu.memory_space<vmem>>, vector<128x128xbf16>
    %cst = arith.constant dense<0.000000e+00> : vector<256x128xf32>
    %3 = tpu.matmul %1, %2, %cst {dimension_numbers = #tpu.dot_dimension_numbers<[1], [0], [0], [1], [0, 0, 1, 1], [], []>} : vector<256x128xbf16>, vector<128x128xbf16>, vector<256x128xf32> -> vector<256x128xf32>
    %4 = arith.truncf %3 : vector<256x128xf32> to vector<256x128xbf16>
    %c0_3 = arith.constant 0 : index
    %c0_4 = arith.constant 0 : index
    %5 = vector.load %arg3[%c0_3, %c0_4] : memref<256x128xbf16, #tpu.memory_space<vmem>>, vector<256x128xbf16>
    tpu.vector_store %arg3[%c0_3, %c0_4], %4 {strides = array<i32>} : memref<256x128xbf16, #tpu.memory_space<vmem>>, vector<256x128xbf16>,
    %cst_5 = arith.constant dense<0.000000e+00> : vector<128xf32>
    %6 = vector.multi_reduction <add>, %3, %cst_5 [0] : vector<256x128xf32> to vector<128xf32>
    %7 = vector.shape_cast %6 : vector<128xf32> to vector<1x128xf32>
    %8 = arith.mulf %3, %3 : vector<256x128xf32>
    %cst_6 = arith.constant dense<0.000000e+00> : vector<128xf32>
    %9 = vector.multi_reduction <add>, %8, %cst_6 [0] : vector<256x128xf32> to vector<128xf32>
    %10 = vector.shape_cast %9 : vector<128xf32> to vector<1x128xf32>
    %cst_7 = arith.constant 0.000000e+00 : f32
    %11 = vector.broadcast %cst_7 : f32 to vector<6x128xf32>
    %12 = tpu.concatenate %7, %10, %11 in 0 : vector<1x128xf32>, vector<1x128xf32>, vector<6x128xf32> -> vector<8x128xf32>
    %c0_8 = arith.constant 0 : index
    %c0_9 = arith.constant 0 : index
    %13 = vector.load %arg4[%c0_8, %c0_9] : memref<8x128xf32, #tpu.memory_space<vmem>>, vector<8x128xf32>
    tpu.vector_store %arg4[%c0_8, %c0_9], %12 {strides = array<i32>} : memref<8x128xf32, #tpu.memory_space<vmem>>, vector<8x128xf32>,
    return
  }
  func.func @transform_0(%arg0: i32) -> (i32, i32) {
    %c0_i32 = arith.constant 0 : i32
    %c0_i32_0 = arith.constant 0 : i32
    return %arg0, %c0_i32 : i32, i32
  }
  func.func @transform_1(%arg0: i32) -> (i32, i32) {
    %c0_i32 = arith.constant 0 : i32
    %c0_i32_0 = arith.constant 0 : i32
    %c0_i32_1 = arith.constant 0 : i32
    return %c0_i32, %c0_i32_0 : i32, i32
  }
  func.func @transform_2(%arg0: i32) -> (i32, i32) {
    %c0_i32 = arith.constant 0 : i32
    %c0_i32_0 = arith.constant 0 : i32
    return %arg0, %c0_i32 : i32, i32
  }
  func.func @transform_3(%arg0: i32) -> (i32, i32) {
    %c0_i32 = arith.constant 0 : i32
    %c0_i32_0 = arith.constant 0 : i32
    return %arg0, %c0_i32 : i32, i32
  }
}

module attributes {stable_mosaic.version = 11 : i64} {
  func.func @_bn_relu_conv3x3_kernel(%arg0: i32, %arg1: memref<256x128xbf16, #tpu.memory_space<vmem>>, %arg2: memref<1x128xf32, #tpu.memory_space<vmem>>, %arg3: memref<1x128xf32, #tpu.memory_space<vmem>>, %arg4: memref<3x384x128xbf16, #tpu.memory_space<vmem>>, %arg5: memref<256x128xbf16, #tpu.memory_space<vmem>>, %arg6: memref<8x128xf32, #tpu.memory_space<vmem>>) attributes {dimension_semantics = [#tpu.dimension_semantics<parallel>], iteration_bounds = array<i64: 2>, scalar_prefetch = 0 : i64, scratch_operands = 0 : i64, tpu.core_type = #tpu.core_type<tc>, window_params = [{transform_indices = @transform_0, window_bounds = array<i64: 256, 128>}, {pipeline_mode = #tpu.pipeline_mode<synchronous>, transform_indices = @transform_1, window_bounds = array<i64: 1, 128>}, {pipeline_mode = #tpu.pipeline_mode<synchronous>, transform_indices = @transform_2, window_bounds = array<i64: 1, 128>}, {pipeline_mode = #tpu.pipeline_mode<synchronous>, transform_indices = @transform_3, window_bounds = array<i64: 3, 384, 128>}, {transform_indices = @transform_4, window_bounds = array<i64: 256, 128>}, {transform_indices = @transform_5, window_bounds = array<i64: 8, 128>}]} {
    %c0 = arith.constant 0 : index
    %c0_0 = arith.constant 0 : index
    %0 = vector.load %arg1[%c0, %c0_0] : memref<256x128xbf16, #tpu.memory_space<vmem>>, vector<256x128xbf16>
    %1 = arith.extf %0 : vector<256x128xbf16> to vector<256x128xf32>
    %c0_1 = arith.constant 0 : index
    %c0_2 = arith.constant 0 : index
    %2 = vector.load %arg2[%c0_1, %c0_2] : memref<1x128xf32, #tpu.memory_space<vmem>>, vector<1x128xf32>
    %3 = vector.broadcast %2 : vector<1x128xf32> to vector<256x128xf32>
    %4 = arith.mulf %1, %3 : vector<256x128xf32>
    %c0_3 = arith.constant 0 : index
    %c0_4 = arith.constant 0 : index
    %5 = vector.load %arg3[%c0_3, %c0_4] : memref<1x128xf32, #tpu.memory_space<vmem>>, vector<1x128xf32>
    %6 = vector.broadcast %5 : vector<1x128xf32> to vector<256x128xf32>
    %7 = arith.addf %4, %6 : vector<256x128xf32>
    %cst = arith.constant 0.000000e+00 : f32
    %8 = vector.broadcast %cst : f32 to vector<256x128xf32>
    %9 = arith.maximumf %7, %8 : vector<256x128xf32>
    %10 = tpu.iota {dimensions = array<i32: 0>} : vector<256x1xi32>
    %c16_i32 = arith.constant 16 : i32
    %c0_i32 = arith.constant 0 : i32
    %11 = arith.cmpi eq, %c16_i32, %c0_i32 : i32
    %c1_i32 = arith.constant 1 : i32
    %12 = arith.select %11, %c1_i32, %c16_i32 : i32
    %13 = vector.broadcast %12 : i32 to vector<256x1xi32>
    %14 = arith.remsi %10, %13 : vector<256x1xi32>
    %c0_i32_5 = arith.constant 0 : i32
    %15 = vector.broadcast %c0_i32_5 : i32 to vector<256x1xi32>
    %16 = arith.cmpi ne, %14, %15 : vector<256x1xi32>
    %c0_i32_6 = arith.constant 0 : i32
    %17 = vector.broadcast %c0_i32_6 : i32 to vector<256x1xi32>
    %18 = arith.cmpi slt, %14, %17 : vector<256x1xi32>
    %c0_i32_7 = arith.constant 0 : i32
    %19 = arith.cmpi slt, %12, %c0_i32_7 : i32
    %20 = vector.broadcast %19 : i1 to vector<256x1xi1>
    %21 = vector.broadcast %20 : vector<256x1xi1> to vector<256x1xi1>
    %22 = arith.xori %18, %21 : vector<256x1xi1>
    %23 = arith.andi %22, %16 : vector<256x1xi1>
    %24 = vector.broadcast %12 : i32 to vector<256x1xi32>
    %25 = arith.addi %14, %24 : vector<256x1xi32>
    %26 = arith.select %23, %25, %14 : vector<256x1xi1>, vector<256x1xi32>
    %c15_i32 = arith.constant 15 : i32
    %27 = vector.broadcast %c15_i32 : i32 to vector<256x1xi32>
    %28 = arith.cmpi slt, %26, %27 : vector<256x1xi32>
    %cst_8 = arith.constant 0.000000e+00 : f32
    %29 = vector.shape_cast %28 : vector<256x1xi1> to vector<256x1xi1>
    %30 = vector.broadcast %29 : vector<256x1xi1> to vector<256x128xi1>
    %31 = vector.broadcast %cst_8 : f32 to vector<256x128xf32>
    %32 = arith.select %30, %9, %31 : vector<256x128xi1>, vector<256x128xf32>
    %33 = vector.extract_strided_slice %32 {offsets = [255, 0], sizes = [1, 128], strides = [1, 1]} : vector<256x128xf32> to vector<1x128xf32>
    %34 = vector.extract_strided_slice %32 {offsets = [0, 0], sizes = [255, 128], strides = [1, 1]} : vector<256x128xf32> to vector<255x128xf32>
    %35 = tpu.concatenate %33, %34 in 0 : vector<1x128xf32>, vector<255x128xf32> -> vector<256x128xf32>
    %c0_i32_9 = arith.constant 0 : i32
    %36 = vector.broadcast %c0_i32_9 : i32 to vector<256x1xi32>
    %37 = arith.cmpi sgt, %26, %36 : vector<256x1xi32>
    %cst_10 = arith.constant 0.000000e+00 : f32
    %38 = vector.shape_cast %37 : vector<256x1xi1> to vector<256x1xi1>
    %39 = vector.broadcast %38 : vector<256x1xi1> to vector<256x128xi1>
    %40 = vector.broadcast %cst_10 : f32 to vector<256x128xf32>
    %41 = arith.select %39, %9, %40 : vector<256x128xi1>, vector<256x128xf32>
    %42 = vector.extract_strided_slice %41 {offsets = [1, 0], sizes = [255, 128], strides = [1, 1]} : vector<256x128xf32> to vector<255x128xf32>
    %43 = vector.extract_strided_slice %41 {offsets = [0, 0], sizes = [1, 128], strides = [1, 1]} : vector<256x128xf32> to vector<1x128xf32>
    %44 = tpu.concatenate %42, %43 in 0 : vector<255x128xf32>, vector<1x128xf32> -> vector<256x128xf32>
    %45 = tpu.concatenate %35, %9, %44 in 1 : vector<256x128xf32>, vector<256x128xf32>, vector<256x128xf32> -> vector<256x384xf32>
    %46 = arith.truncf %45 : vector<256x384xf32> to vector<256x384xbf16>
    %c0_11 = arith.constant 0 : index
    %c0_12 = arith.constant 0 : index
    %c0_13 = arith.constant 0 : index
    %47 = vector.load %arg4[%c0_11, %c0_12, %c0_13] : memref<3x384x128xbf16, #tpu.memory_space<vmem>>, vector<1x384x128xbf16>
    %48 = vector.shape_cast %47 : vector<1x384x128xbf16> to vector<384x128xbf16>
    %cst_14 = arith.constant dense<0.000000e+00> : vector<256x128xf32>
    %49 = tpu.matmul %46, %48, %cst_14 {dimension_numbers = #tpu.dot_dimension_numbers<[1], [0], [0], [1], [0, 0, 1, 1], [], []>} : vector<256x384xbf16>, vector<384x128xbf16>, vector<256x128xf32> -> vector<256x128xf32>
    %c1 = arith.constant 1 : index
    %c0_15 = arith.constant 0 : index
    %c0_16 = arith.constant 0 : index
    %50 = vector.load %arg4[%c1, %c0_15, %c0_16] : memref<3x384x128xbf16, #tpu.memory_space<vmem>>, vector<1x384x128xbf16>
    %51 = vector.shape_cast %50 : vector<1x384x128xbf16> to vector<384x128xbf16>
    %cst_17 = arith.constant dense<0.000000e+00> : vector<256x128xf32>
    %52 = tpu.matmul %46, %51, %cst_17 {dimension_numbers = #tpu.dot_dimension_numbers<[1], [0], [0], [1], [0, 0, 1, 1], [], []>} : vector<256x384xbf16>, vector<384x128xbf16>, vector<256x128xf32> -> vector<256x128xf32>
    %c2 = arith.constant 2 : index
    %c0_18 = arith.constant 0 : index
    %c0_19 = arith.constant 0 : index
    %53 = vector.load %arg4[%c2, %c0_18, %c0_19] : memref<3x384x128xbf16, #tpu.memory_space<vmem>>, vector<1x384x128xbf16>
    %54 = vector.shape_cast %53 : vector<1x384x128xbf16> to vector<384x128xbf16>
    %cst_20 = arith.constant dense<0.000000e+00> : vector<256x128xf32>
    %55 = tpu.matmul %46, %54, %cst_20 {dimension_numbers = #tpu.dot_dimension_numbers<[1], [0], [0], [1], [0, 0, 1, 1], [], []>} : vector<256x384xbf16>, vector<384x128xbf16>, vector<256x128xf32> -> vector<256x128xf32>
    %c16_i32_21 = arith.constant 16 : i32
    %56 = vector.broadcast %c16_i32_21 : i32 to vector<256x1xi32>
    %57 = arith.cmpi sge, %10, %56 : vector<256x1xi32>
    %58 = vector.extract_strided_slice %49 {offsets = [240, 0], sizes = [16, 128], strides = [1, 1]} : vector<256x128xf32> to vector<16x128xf32>
    %59 = vector.extract_strided_slice %49 {offsets = [0, 0], sizes = [240, 128], strides = [1, 1]} : vector<256x128xf32> to vector<240x128xf32>
    %60 = tpu.concatenate %58, %59 in 0 : vector<16x128xf32>, vector<240x128xf32> -> vector<256x128xf32>
    %cst_22 = arith.constant 0.000000e+00 : f32
    %61 = vector.shape_cast %57 : vector<256x1xi1> to vector<256x1xi1>
    %62 = vector.broadcast %61 : vector<256x1xi1> to vector<256x128xi1>
    %63 = vector.broadcast %cst_22 : f32 to vector<256x128xf32>
    %64 = arith.select %62, %60, %63 : vector<256x128xi1>, vector<256x128xf32>
    %65 = arith.addf %52, %64 : vector<256x128xf32>
    %c240_i32 = arith.constant 240 : i32
    %66 = vector.broadcast %c240_i32 : i32 to vector<256x1xi32>
    %67 = arith.cmpi slt, %10, %66 : vector<256x1xi32>
    %68 = vector.extract_strided_slice %55 {offsets = [16, 0], sizes = [240, 128], strides = [1, 1]} : vector<256x128xf32> to vector<240x128xf32>
    %69 = vector.extract_strided_slice %55 {offsets = [0, 0], sizes = [16, 128], strides = [1, 1]} : vector<256x128xf32> to vector<16x128xf32>
    %70 = tpu.concatenate %68, %69 in 0 : vector<240x128xf32>, vector<16x128xf32> -> vector<256x128xf32>
    %cst_23 = arith.constant 0.000000e+00 : f32
    %71 = vector.shape_cast %67 : vector<256x1xi1> to vector<256x1xi1>
    %72 = vector.broadcast %71 : vector<256x1xi1> to vector<256x128xi1>
    %73 = vector.broadcast %cst_23 : f32 to vector<256x128xf32>
    %74 = arith.select %72, %70, %73 : vector<256x128xi1>, vector<256x128xf32>
    %75 = arith.addf %65, %74 : vector<256x128xf32>
    %76 = arith.truncf %75 : vector<256x128xf32> to vector<256x128xbf16>
    %c0_24 = arith.constant 0 : index
    %c0_25 = arith.constant 0 : index
    %77 = vector.load %arg5[%c0_24, %c0_25] : memref<256x128xbf16, #tpu.memory_space<vmem>>, vector<256x128xbf16>
    tpu.vector_store %arg5[%c0_24, %c0_25], %76 {strides = array<i32>} : memref<256x128xbf16, #tpu.memory_space<vmem>>, vector<256x128xbf16>,
    %cst_26 = arith.constant dense<0.000000e+00> : vector<128xf32>
    %78 = vector.multi_reduction <add>, %75, %cst_26 [0] : vector<256x128xf32> to vector<128xf32>
    %79 = vector.shape_cast %78 : vector<128xf32> to vector<1x128xf32>
    %80 = arith.mulf %75, %75 : vector<256x128xf32>
    %cst_27 = arith.constant dense<0.000000e+00> : vector<128xf32>
    %81 = vector.multi_reduction <add>, %80, %cst_27 [0] : vector<256x128xf32> to vector<128xf32>
    %82 = vector.shape_cast %81 : vector<128xf32> to vector<1x128xf32>
    %cst_28 = arith.constant 0.000000e+00 : f32
    %83 = vector.broadcast %cst_28 : f32 to vector<6x128xf32>
    %84 = tpu.concatenate %79, %82, %83 in 0 : vector<1x128xf32>, vector<1x128xf32>, vector<6x128xf32> -> vector<8x128xf32>
    %c0_29 = arith.constant 0 : index
    %c0_30 = arith.constant 0 : index
    %85 = vector.load %arg6[%c0_29, %c0_30] : memref<8x128xf32, #tpu.memory_space<vmem>>, vector<8x128xf32>
    tpu.vector_store %arg6[%c0_29, %c0_30], %84 {strides = array<i32>} : memref<8x128xf32, #tpu.memory_space<vmem>>, vector<8x128xf32>,
    return
  }
  func.func @transform_0(%arg0: i32) -> (i32, i32) {
    %c0_i32 = arith.constant 0 : i32
    %c0_i32_0 = arith.constant 0 : i32
    return %arg0, %c0_i32 : i32, i32
  }
  func.func @transform_1(%arg0: i32) -> (i32, i32) {
    %c0_i32 = arith.constant 0 : i32
    %c0_i32_0 = arith.constant 0 : i32
    %c0_i32_1 = arith.constant 0 : i32
    return %c0_i32, %c0_i32_0 : i32, i32
  }
  func.func @transform_2(%arg0: i32) -> (i32, i32) {
    %c0_i32 = arith.constant 0 : i32
    %c0_i32_0 = arith.constant 0 : i32
    %c0_i32_1 = arith.constant 0 : i32
    return %c0_i32, %c0_i32_0 : i32, i32
  }
  func.func @transform_3(%arg0: i32) -> (i32, i32, i32) {
    %c0_i32 = arith.constant 0 : i32
    %c0_i32_0 = arith.constant 0 : i32
    %c0_i32_1 = arith.constant 0 : i32
    %c0_i32_2 = arith.constant 0 : i32
    return %c0_i32, %c0_i32_0, %c0_i32_1 : i32, i32, i32
  }
  func.func @transform_4(%arg0: i32) -> (i32, i32) {
    %c0_i32 = arith.constant 0 : i32
    %c0_i32_0 = arith.constant 0 : i32
    return %arg0, %c0_i32 : i32, i32
  }
  func.func @transform_5(%arg0: i32) -> (i32, i32) {
    %c0_i32 = arith.constant 0 : i32
    %c0_i32_0 = arith.constant 0 : i32
    return %arg0, %c0_i32 : i32, i32
  }
}

module attributes {stable_mosaic.version = 11 : i64} {
  func.func @_bn_relu_conv1x1_kernel(%arg0: i32, %arg1: memref<256x128xbf16, #tpu.memory_space<vmem>>, %arg2: memref<1x128xf32, #tpu.memory_space<vmem>>, %arg3: memref<1x128xf32, #tpu.memory_space<vmem>>, %arg4: memref<128x128xbf16, #tpu.memory_space<vmem>>, %arg5: memref<256x128xbf16, #tpu.memory_space<vmem>>, %arg6: memref<8x128xf32, #tpu.memory_space<vmem>>) attributes {dimension_semantics = [#tpu.dimension_semantics<parallel>], iteration_bounds = array<i64: 2>, scalar_prefetch = 0 : i64, scratch_operands = 0 : i64, tpu.core_type = #tpu.core_type<tc>, window_params = [{transform_indices = @transform_0, window_bounds = array<i64: 256, 128>}, {pipeline_mode = #tpu.pipeline_mode<synchronous>, transform_indices = @transform_1, window_bounds = array<i64: 1, 128>}, {pipeline_mode = #tpu.pipeline_mode<synchronous>, transform_indices = @transform_2, window_bounds = array<i64: 1, 128>}, {pipeline_mode = #tpu.pipeline_mode<synchronous>, transform_indices = @transform_3, window_bounds = array<i64: 128, 128>}, {transform_indices = @transform_4, window_bounds = array<i64: 256, 128>}, {transform_indices = @transform_5, window_bounds = array<i64: 8, 128>}]} {
    %c0 = arith.constant 0 : index
    %c0_0 = arith.constant 0 : index
    %0 = vector.load %arg1[%c0, %c0_0] : memref<256x128xbf16, #tpu.memory_space<vmem>>, vector<256x128xbf16>
    %1 = arith.extf %0 : vector<256x128xbf16> to vector<256x128xf32>
    %c0_1 = arith.constant 0 : index
    %c0_2 = arith.constant 0 : index
    %2 = vector.load %arg2[%c0_1, %c0_2] : memref<1x128xf32, #tpu.memory_space<vmem>>, vector<1x128xf32>
    %3 = vector.broadcast %2 : vector<1x128xf32> to vector<256x128xf32>
    %4 = arith.mulf %1, %3 : vector<256x128xf32>
    %c0_3 = arith.constant 0 : index
    %c0_4 = arith.constant 0 : index
    %5 = vector.load %arg3[%c0_3, %c0_4] : memref<1x128xf32, #tpu.memory_space<vmem>>, vector<1x128xf32>
    %6 = vector.broadcast %5 : vector<1x128xf32> to vector<256x128xf32>
    %7 = arith.addf %4, %6 : vector<256x128xf32>
    %cst = arith.constant 0.000000e+00 : f32
    %8 = vector.broadcast %cst : f32 to vector<256x128xf32>
    %9 = arith.maximumf %7, %8 : vector<256x128xf32>
    %10 = arith.truncf %9 : vector<256x128xf32> to vector<256x128xbf16>
    %c0_5 = arith.constant 0 : index
    %c0_6 = arith.constant 0 : index
    %11 = vector.load %arg4[%c0_5, %c0_6] : memref<128x128xbf16, #tpu.memory_space<vmem>>, vector<128x128xbf16>
    %cst_7 = arith.constant dense<0.000000e+00> : vector<256x128xf32>
    %12 = tpu.matmul %10, %11, %cst_7 {dimension_numbers = #tpu.dot_dimension_numbers<[1], [0], [0], [1], [0, 0, 1, 1], [], []>} : vector<256x128xbf16>, vector<128x128xbf16>, vector<256x128xf32> -> vector<256x128xf32>
    %13 = arith.truncf %12 : vector<256x128xf32> to vector<256x128xbf16>
    %c0_8 = arith.constant 0 : index
    %c0_9 = arith.constant 0 : index
    %14 = vector.load %arg5[%c0_8, %c0_9] : memref<256x128xbf16, #tpu.memory_space<vmem>>, vector<256x128xbf16>
    tpu.vector_store %arg5[%c0_8, %c0_9], %13 {strides = array<i32>} : memref<256x128xbf16, #tpu.memory_space<vmem>>, vector<256x128xbf16>,
    %cst_10 = arith.constant dense<0.000000e+00> : vector<128xf32>
    %15 = vector.multi_reduction <add>, %12, %cst_10 [0] : vector<256x128xf32> to vector<128xf32>
    %16 = vector.shape_cast %15 : vector<128xf32> to vector<1x128xf32>
    %17 = arith.mulf %12, %12 : vector<256x128xf32>
    %cst_11 = arith.constant dense<0.000000e+00> : vector<128xf32>
    %18 = vector.multi_reduction <add>, %17, %cst_11 [0] : vector<256x128xf32> to vector<128xf32>
    %19 = vector.shape_cast %18 : vector<128xf32> to vector<1x128xf32>
    %cst_12 = arith.constant 0.000000e+00 : f32
    %20 = vector.broadcast %cst_12 : f32 to vector<6x128xf32>
    %21 = tpu.concatenate %16, %19, %20 in 0 : vector<1x128xf32>, vector<1x128xf32>, vector<6x128xf32> -> vector<8x128xf32>
    %c0_13 = arith.constant 0 : index
    %c0_14 = arith.constant 0 : index
    %22 = vector.load %arg6[%c0_13, %c0_14] : memref<8x128xf32, #tpu.memory_space<vmem>>, vector<8x128xf32>
    tpu.vector_store %arg6[%c0_13, %c0_14], %21 {strides = array<i32>} : memref<8x128xf32, #tpu.memory_space<vmem>>, vector<8x128xf32>,
    return
  }
  func.func @transform_0(%arg0: i32) -> (i32, i32) {
    %c0_i32 = arith.constant 0 : i32
    %c0_i32_0 = arith.constant 0 : i32
    return %arg0, %c0_i32 : i32, i32
  }
  func.func @transform_1(%arg0: i32) -> (i32, i32) {
    %c0_i32 = arith.constant 0 : i32
    %c0_i32_0 = arith.constant 0 : i32
    %c0_i32_1 = arith.constant 0 : i32
    return %c0_i32, %c0_i32_0 : i32, i32
  }
  func.func @transform_2(%arg0: i32) -> (i32, i32) {
    %c0_i32 = arith.constant 0 : i32
    %c0_i32_0 = arith.constant 0 : i32
    %c0_i32_1 = arith.constant 0 : i32
    return %c0_i32, %c0_i32_0 : i32, i32
  }
  func.func @transform_3(%arg0: i32) -> (i32, i32) {
    %c0_i32 = arith.constant 0 : i32
    %c0_i32_0 = arith.constant 0 : i32
    %c0_i32_1 = arith.constant 0 : i32
    return %c0_i32, %c0_i32_0 : i32, i32
  }
  func.func @transform_4(%arg0: i32) -> (i32, i32) {
    %c0_i32 = arith.constant 0 : i32
    %c0_i32_0 = arith.constant 0 : i32
    return %arg0, %c0_i32 : i32, i32
  }
  func.func @transform_5(%arg0: i32) -> (i32, i32) {
    %c0_i32 = arith.constant 0 : i32
    %c0_i32_0 = arith.constant 0 : i32
    return %arg0, %c0_i32 : i32, i32
  }
}

module attributes {stable_mosaic.version = 11 : i64} {
  func.func @_bn_add_relu_kernel(%arg0: i32, %arg1: memref<256x128xbf16, #tpu.memory_space<vmem>>, %arg2: memref<256x128xf32, #tpu.memory_space<vmem>>, %arg3: memref<1x128xf32, #tpu.memory_space<vmem>>, %arg4: memref<1x128xf32, #tpu.memory_space<vmem>>, %arg5: memref<256x128xf32, #tpu.memory_space<vmem>>) attributes {dimension_semantics = [#tpu.dimension_semantics<parallel>], iteration_bounds = array<i64: 2>, scalar_prefetch = 0 : i64, scratch_operands = 0 : i64, tpu.core_type = #tpu.core_type<tc>, window_params = [{transform_indices = @transform_0, window_bounds = array<i64: 256, 128>}, {transform_indices = @transform_1, window_bounds = array<i64: 256, 128>}, {pipeline_mode = #tpu.pipeline_mode<synchronous>, transform_indices = @transform_2, window_bounds = array<i64: 1, 128>}, {pipeline_mode = #tpu.pipeline_mode<synchronous>, transform_indices = @transform_3, window_bounds = array<i64: 1, 128>}, {transform_indices = @transform_4, window_bounds = array<i64: 256, 128>}]} {
    %c0 = arith.constant 0 : index
    %c0_0 = arith.constant 0 : index
    %0 = vector.load %arg1[%c0, %c0_0] : memref<256x128xbf16, #tpu.memory_space<vmem>>, vector<256x128xbf16>
    %1 = arith.extf %0 : vector<256x128xbf16> to vector<256x128xf32>
    %c0_1 = arith.constant 0 : index
    %c0_2 = arith.constant 0 : index
    %2 = vector.load %arg3[%c0_1, %c0_2] : memref<1x128xf32, #tpu.memory_space<vmem>>, vector<1x128xf32>
    %3 = vector.broadcast %2 : vector<1x128xf32> to vector<256x128xf32>
    %4 = arith.mulf %1, %3 : vector<256x128xf32>
    %c0_3 = arith.constant 0 : index
    %c0_4 = arith.constant 0 : index
    %5 = vector.load %arg4[%c0_3, %c0_4] : memref<1x128xf32, #tpu.memory_space<vmem>>, vector<1x128xf32>
    %6 = vector.broadcast %5 : vector<1x128xf32> to vector<256x128xf32>
    %7 = arith.addf %4, %6 : vector<256x128xf32>
    %c0_5 = arith.constant 0 : index
    %c0_6 = arith.constant 0 : index
    %8 = vector.load %arg2[%c0_5, %c0_6] : memref<256x128xf32, #tpu.memory_space<vmem>>, vector<256x128xf32>
    %9 = arith.addf %7, %8 : vector<256x128xf32>
    %cst = arith.constant 0.000000e+00 : f32
    %10 = vector.broadcast %cst : f32 to vector<256x128xf32>
    %11 = arith.maximumf %9, %10 : vector<256x128xf32>
    %c0_7 = arith.constant 0 : index
    %c0_8 = arith.constant 0 : index
    %12 = vector.load %arg5[%c0_7, %c0_8] : memref<256x128xf32, #tpu.memory_space<vmem>>, vector<256x128xf32>
    tpu.vector_store %arg5[%c0_7, %c0_8], %11 {strides = array<i32>} : memref<256x128xf32, #tpu.memory_space<vmem>>, vector<256x128xf32>,
    return
  }
  func.func @transform_0(%arg0: i32) -> (i32, i32) {
    %c0_i32 = arith.constant 0 : i32
    %c0_i32_0 = arith.constant 0 : i32
    return %arg0, %c0_i32 : i32, i32
  }
  func.func @transform_1(%arg0: i32) -> (i32, i32) {
    %c0_i32 = arith.constant 0 : i32
    %c0_i32_0 = arith.constant 0 : i32
    return %arg0, %c0_i32 : i32, i32
  }
  func.func @transform_2(%arg0: i32) -> (i32, i32) {
    %c0_i32 = arith.constant 0 : i32
    %c0_i32_0 = arith.constant 0 : i32
    %c0_i32_1 = arith.constant 0 : i32
    return %c0_i32, %c0_i32_0 : i32, i32
  }
  func.func @transform_3(%arg0: i32) -> (i32, i32) {
    %c0_i32 = arith.constant 0 : i32
    %c0_i32_0 = arith.constant 0 : i32
    %c0_i32_1 = arith.constant 0 : i32
    return %c0_i32, %c0_i32_0 : i32, i32
  }
  func.func @transform_4(%arg0: i32) -> (i32, i32) {
    %c0_i32 = arith.constant 0 : i32
    %c0_i32_0 = arith.constant 0 : i32
    return %arg0, %c0_i32 : i32, i32
  }
}

</mosaic_0001>

<bundles_post_ra>
// kernel: bottleneck_forward.6
= control target key start
LH: loop header
LB: loop body
LE: loop exit
PB: predicated region body
PF: predicated region fallthrough
CT: control target
= control target key end

     0   :  { %s1415_s18 = smov 0   ;;  %s1683_s0 = inlined_call_operand.vmem [shape: bf16[512,128], index: 0, kind: input, shape index: {}]   ;;  %s1684_s1 = inlined_call_operand.vmem [shape: f32[1,128], index: 1, kind: input, shape index: {}]   ;;  %s1685_s2 = inlined_call_operand.vmem [shape: f32[1,128], index: 2, kind: input, shape index: {}]   ;;  %s1686_s3 = inlined_call_operand.vmem [shape: bf16[128,128], index: 3, kind: input, shape index: {}]   ;;  %s1687_s4 = inlined_call_operand.vmem [shape: bf16[512,128], index: 4, kind: output, shape index: {0}]   ;;  %s1688_s5 = inlined_call_operand.vmem [shape: f32[16,128], index: 5, kind: output, shape index: {1}]  }
   0x1 LB: > { %s1421_s19 = sadd.s32 4294967295, %s1383_s18   ;;  %p1017_p0 = scmp.ge.s32.totalorder %s1383_s18, 1  ;;  %s1383_s18 = sphi %s1415_s18, %s16_s18  }
   0x2   : > { %p191_p1 = scmp.lt.s32.totalorder %s1383_s18, 3 }
   0x4   : > { %p192_p2 = pnand %p1017_p0, %p191_p1 }
   0x5   : > { %v1369_v0 = vld [vmem:[%s1686_s3] sm:$0xff] (!%p192_p2)   ;;  %s1018_s22 = sshll.u32 (!%p192_p2), %s1421_s19, 5  ;;  %v1370_v1 = vld [vmem:[%s1686_s3 + $0x8] sm:$0xff] (!%p192_p2)   ;;  %v1371_v2 = vld [vmem:[%s1686_s3 + $0x10] sm:$0xff] (!%p192_p2)   ;;  %p235_p4 = scmp.lt.s32.totalorder (!%p192_p2), %s1421_s19, 1  ;;  %vm921_vm0 = vcmask (!%p192_p2), 1040384  }
   0x6   : > { %195 = sbr.rel (%p192_p2) target bundleno = 332 (0x14c), region = 36  ;;  %p224_p3 = scmp.lt.s32.totalorder (!%p192_p2), %s1018_s22, 63  ;;  %1297 = vmatprep.subr.bf16.mxu0 (!%p192_p2), %v1369_v0  ;;  %1345 = vmatprep.subr.bf16.mxu1 (!%p192_p2), %v1369_v0  ;;  %v1372_v3 = vld [vmem:[%s1686_s3 + $0x18] sm:$0xff] (!%p192_p2)   ;;  %v1452_v5 = vld [vmem:[%s1684_s1] ss:$0 sm:$0xff] (!%p192_p2)  ;;  %v1374_v34 = vld [vmem:[%s1686_s3 + $0x28] sm:$0xff] (!%p192_p2)  }
   0x7   : > { %1298 = vmatpush3.bf16.msra.mxu0 (!%p192_p2), %v1369_v0  ;;  %1353 = vmatpush3.bf16.msra.mxu1 (!%p192_p2), %v1369_v0  ;;  %v1460_v11 = vld [vmem:[%s1685_s2] ss:$0 sm:$0xff] (!%p192_p2)  ;;  %v1375_v49 = vld [vmem:[%s1686_s3 + $0x30] sm:$0xff] (!%p192_p2)   ;;  %v1376_v63 = vld [vmem:[%s1686_s3 + $0x38] sm:$0xff] (!%p192_p2)   ;;  %vm923_vm1 = vcmask (!%p192_p2), 1041408  }
   0x8   : > { %1299 = vmatprep.subr.bf16.mxu0 (!%p192_p2), %v1370_v1  ;;  %1346 = vmatprep.subr.bf16.mxu1 (!%p192_p2), %v1370_v1  ;;  %v1373_v20 = vld [vmem:[%s1686_s3 + $0x20] sm:$0xff] (!%p192_p2)  }
   0xb   : > { %1300 = vmatpush3.bf16.msra.mxu0 (!%p192_p2), %v1370_v1  ;;  %1354 = vmatpush3.bf16.msra.mxu1 (!%p192_p2), %v1370_v1 }
   0xc   : > { %1301 = vmatprep.subr.bf16.mxu0 (!%p192_p2), %v1371_v2  ;;  %1347 = vmatprep.subr.bf16.mxu1 (!%p192_p2), %v1371_v2 }
   0xd   : > { %s1690_s22 = smov (!%p224_p3, %s1018_s22), 63  ;;  %s1692_s19 = smov (!%p235_p4, %s1421_s19), 1 }
   0xe   : > { %s1019_s27 = sshll.u32 %s1690_s22, 2  ;;  %s1022_s22 = sshll.u32 %s1692_s19, 3 }
   0xf   : > { %s1443_s30 = scalar_lea.vmem %s1683_s0, %s1019_s27  ;;  %1302 = vmatpush3.bf16.msra.mxu0 %v1371_v2  ;;  %1355 = vmatpush3.bf16.msra.mxu1 %v1371_v2  ;;  %s1585_s25 = scalar_lea.vmem %s1687_s4, %s1019_s27 }
  0x10   : > { %v1100_v4 = vld [vmem:[%s1443_s30] sm:$0xff]   ;;  %v1243_v8 = vld [vmem:[%s1443_s30 + $0x8] sm:$0xff]   ;;  %v1244_v9 = vld [vmem:[%s1443_s30 + $0x10] sm:$0xff]   ;;  %1303 = vmatprep.subr.bf16.mxu0 %v1372_v3  ;;  %1348 = vmatprep.subr.bf16.mxu1 %v1372_v3  ;;  %s238_s28 = scalar_lea.vmem %s1688_s5, %s1022_s22 }
  0x11   : > { %v1101_v6 = vunpack.c.l.bf16 %v1100_v4  ;;  %v1102_v7 = vunpack.c.h.bf16 %v1100_v4  ;;  %v1245_v10 = vld [vmem:[%s1443_s30 + $0x18] sm:$0xff]   ;;  %v1105_v12 = vunpack.c.l.bf16 %v1243_v8  ;;  %v1106_v13 = vunpack.c.h.bf16 %v1243_v8  ;;  %v1246_v29 = vld [vmem:[%s1443_s30 + $0x20] sm:$0xff]   ;;  %v1247_v33 = vld [vmem:[%s1443_s30 + $0x28] sm:$0xff]  }
  0x12   : > { %v1109_v14 = vunpack.c.l.bf16 %v1244_v9  ;;  %v1110_v15 = vunpack.c.h.bf16 %v1244_v9  ;;  %v1113_v18 = vunpack.c.l.bf16 %v1245_v10  ;;  %v1114_v19 = vunpack.c.h.bf16 %v1245_v10  ;;  %v1248_v42 = vld [vmem:[%s1443_s30 + $0x30] sm:$0xff]   ;;  %v1489_v48 = vld [vmem:[%s1443_s30 + $0x38] sm:$0xff]   ;;  %v1250_v60 = vld [vmem:[%s1443_s30 + $0x40] sm:$0xff]  }
  0x13   : > { %v311_v16 = vmul.f32 %v1101_v6, %v1452_v5  ;;  %v312_v17 = vmul.f32 %v1102_v7, %v1452_v5  ;;  %v313_v21 = vmul.f32 %v1105_v12, %v1452_v5  ;;  %v314_v22 = vmul.f32 %v1106_v13, %v1452_v5  ;;  %1304 = vmatpush3.bf16.msra.mxu0 %v1372_v3  ;;  %v1252_v9 = vld [vmem:[%s1443_s30 + $0x50] sm:$0xff]  }
  0x14   : > { %v315_v23 = vmul.f32 %v1109_v14, %v1452_v5  ;;  %v316_v24 = vmul.f32 %v1110_v15, %v1452_v5  ;;  %v317_v27 = vmul.f32 %v1113_v18, %v1452_v5  ;;  %v318_v28 = vmul.f32 %v1114_v19, %v1452_v5  ;;  %1356 = vmatpush3.bf16.msra.mxu1 %v1372_v3  ;;  %v1251_v3 = vld [vmem:[%s1443_s30 + $0x48] sm:$0xff]   ;;  %v1253_v19 = vld [vmem:[%s1443_s30 + $0x58] sm:$0xff]  }
  0x15   : > { %v350_v25 = vadd.f32 %v1460_v11, %v311_v16  ;;  %v351_v26 = vadd.f32 %v1460_v11, %v312_v17  ;;  %v352_v32 = vadd.f32 %v1460_v11, %v313_v21  ;;  %1305 = vmatprep.subr.bf16.mxu0 %v1373_v20  ;;  %v353_v35 = vadd.f32 %v1460_v11, %v314_v22 }
  0x16   : > { %v354_v36 = vadd.f32 %v1460_v11, %v315_v23  ;;  %v355_v37 = vadd.f32 %v1460_v11, %v316_v24  ;;  %1349 = vmatprep.subr.bf16.mxu1 %v1373_v20  ;;  %v356_v39 = vadd.f32 %v1460_v11, %v317_v27  ;;  %v357_v40 = vadd.f32 %v1460_v11, %v318_v28 }
  0x17   : > { %v382_v30 = vmax.f32 %v350_v25, 0.0  ;;  %v383_v31 = vmax.f32 %v351_v26, 0.0  ;;  %v1117_v41 = vunpack.c.l.bf16 %v1246_v29  ;;  %v1118_v43 = vunpack.c.h.bf16 %v1246_v29  ;;  %1306 = vmatpush3.bf16.msra.mxu0 %v1373_v20 }
  0x18   : > { %v1121_v44 = vunpack.c.l.bf16 %v1247_v33  ;;  %v384_v45 = vmax.f32 %v352_v32, 0.0  ;;  %v1122_v47 = vunpack.c.h.bf16 %v1247_v33  ;;  %1307 = vmatprep.subr.bf16.mxu0 %v1374_v34  ;;  %v385_v50 = vmax.f32 %v353_v35, 0.0  ;;  %1357 = vmatpush3.bf16.msra.mxu1 %v1373_v20  ;;  %v1254_v32 = vld [vmem:[%s1443_s30 + $0x60] sm:$0xff]  }
  0x19   : > { %v414_v38 = vpack.c.bf16 %v383_v31, %v382_v30  ;;  %v319_v46 = vmul.f32 %v1117_v41, %v1452_v5  ;;  %v386_v51 = vmax.f32 %v354_v36, 0.0  ;;  %v387_v52 = vmax.f32 %v355_v37, 0.0  ;;  %1350 = vmatprep.subr.bf16.mxu1 %v1374_v34 }
  0x1a   : > { %v1125_v53 = vunpack.c.l.bf16 %v1248_v42  ;;  %v388_v54 = vmax.f32 %v356_v39, 0.0  ;;  %v389_v55 = vmax.f32 %v357_v40, 0.0  ;;  %v320_v56 = vmul.f32 %v1118_v43, %v1452_v5 }
  0x1b   : > { %1313 = vmatprep.mubr.bf16.mxu0 %v414_v38  ;;  %v321_v57 = vmul.f32 %v1121_v44, %v1452_v5  ;;  %v1126_v58 = vunpack.c.h.bf16 %v1248_v42  ;;  %v1129_v59 = vunpack.c.l.bf16 %v1489_v48  ;;  %1308 = vmatpush3.bf16.msra.mxu0 %v1374_v34  ;;  %v1499_v61 = vadd.f32 %v1460_v11, %v319_v46 }
  0x1c   : > { %v322_v62 = vmul.f32 %v1122_v47, %v1452_v5  ;;  %1309 = vmatprep.subr.bf16.mxu0 %v1375_v49  ;;  %v415_v0 = vpack.c.bf16 %v385_v50, %v384_v45  ;;  %v416_v1 = vpack.c.bf16 %v387_v52, %v386_v51  ;;  %1358 = vmatpush3.bf16.msra.mxu1 %v1374_v34  ;;  %v1130_v7 = vunpack.c.h.bf16 %v1489_v48  ;;  %v1255_v45 = vld [vmem:[%s1443_s30 + $0x68] sm:$0xff]  }
  0x1d   : > { %v323_v2 = vmul.f32 %v1125_v53, %v1452_v5  ;;  %v1507_v4 = vpack.c.bf16 %v389_v55, %v388_v54  ;;  %v1510_v6 = vadd.f32 %v1460_v11, %v320_v56  ;;  %1351 = vmatprep.subr.bf16.mxu1 %v1375_v49  ;;  %v1133_v8 = vunpack.c.l.bf16 %v1250_v60  ;;  %v1256_v55 = vld [vmem:[%s1443_s30 + $0x70] sm:$0xff]  }
  0x1e   : > { %v1515_v10 = vadd.f32 %v1460_v11, %v321_v57  ;;  %v1518_v12 = vmul.f32 %v1126_v58, %v1452_v5  ;;  %v1521_v13 = vmul.f32 %v1129_v59, %v1452_v5  ;;  %v1134_v14 = vunpack.c.h.bf16 %v1250_v60 }
  0x1f   : > { %1310 = vmatpush3.bf16.msra.mxu0 %v1375_v49  ;;  %v390_v15 = vmax.f32 %v1499_v61, 0.0  ;;  %v1525_v16 = vadd.f32 %v1460_v11, %v322_v62  ;;  %v327_v17 = vmul.f32 %v1133_v8, %v1452_v5  ;;  %v1137_v18 = vunpack.c.l.bf16 %v1251_v3 }
  0x20   : > { %1311 = vmatprep.subr.bf16.mxu0 %v1376_v63  ;;  %1359 = vmatpush3.bf16.msra.mxu1 %v1375_v49  ;;  %v1530_v20 = vadd.f32 %v1460_v11, %v323_v2  ;;  %v328_v21 = vmul.f32 %v1134_v14, %v1452_v5  ;;  %v1138_v22 = vunpack.c.h.bf16 %v1251_v3  ;;  %v1141_v23 = vunpack.c.l.bf16 %v1252_v9 }
  0x21   : > { %v391_v24 = vmax.f32 %v1510_v6, 0.0  ;;  %1352 = vmatprep.subr.bf16.mxu1 %v1376_v63  ;;  %v366_v25 = vadd.f32 %v1460_v11, %v327_v17  ;;  %v329_v26 = vmul.f32 %v1137_v18, %v1452_v5  ;;  %v1142_v27 = vunpack.c.h.bf16 %v1252_v9  ;;  %v1257_v17 = vld [vmem:[%s1443_s30 + $0x78] sm:$0xff]  }
  0x22   : > { %v367_v28 = vadd.f32 %v1460_v11, %v328_v21  ;;  %v330_v29 = vmul.f32 %v1138_v22, %v1452_v5  ;;  %v331_v30 = vmul.f32 %v1141_v23, %v1452_v5  ;;  %v1145_v31 = vunpack.c.l.bf16 %v1253_v19 }
  0x23   : > { %1312 = vmatpush3.bf16.msra.mxu0 %v1376_v63  ;;  %v398_v33 = vmax.f32 %v366_v25, 0.0  ;;  %v368_v34 = vadd.f32 %v1460_v11, %v329_v26  ;;  %v332_v35 = vmul.f32 %v1142_v27, %v1452_v5  ;;  %v1146_v36 = vunpack.c.h.bf16 %v1253_v19 }
  0x24   : > { %1360 = vmatpush3.bf16.msra.mxu1 %v1376_v63  ;;  %v399_v37 = vmax.f32 %v367_v28, 0.0  ;;  %v369_v38 = vadd.f32 %v1460_v11, %v330_v29  ;;  %v370_v39 = vadd.f32 %v1460_v11, %v331_v30  ;;  %v333_v40 = vmul.f32 %v1145_v31, %v1452_v5 }
  0x25   : > { %v400_v41 = vmax.f32 %v368_v34, 0.0  ;;  %v371_v42 = vadd.f32 %v1460_v11, %v332_v35  ;;  %v334_v43 = vmul.f32 %v1146_v36, %v1452_v5  ;;  %v1149_v44 = vunpack.c.l.bf16 %v1254_v32 }
  0x26   : > { %1314 = vmatmul.mubr.bf16.vlgmr.msra.gmra.mrb[0].mxu0 %v415_v0  ;;  %v422_v46 = vpack.c.bf16 %v399_v37, %v398_v33  ;;  %v401_v47 = vmax.f32 %v369_v38, 0.0  ;;  %v402_v49 = vmax.f32 %v370_v39, 0.0  ;;  %v372_v50 = vadd.f32 %v1460_v11, %v333_v40 }
  0x27   : > { %1317 = vmatprep.mubr.bf16.mxu0 %v416_v1  ;;  %v403_v51 = vmax.f32 %v371_v42, 0.0  ;;  %v373_v52 = vadd.f32 %v1460_v11, %v334_v43  ;;  %v1150_v53 = vunpack.c.h.bf16 %v1254_v32  ;;  %v335_v54 = vmul.f32 %v1149_v44, %v1452_v5 }
  0x28   : > { %1329 = vmatprep.mubr.bf16.mxu1 %v422_v46  ;;  %v423_v56 = vpack.c.bf16 %v401_v47, %v400_v41  ;;  %v404_v57 = vmax.f32 %v372_v50, 0.0  ;;  %v1153_v58 = vunpack.c.l.bf16 %v1255_v45  ;;  %v1154_v59 = vunpack.c.h.bf16 %v1255_v45 }
  0x29   : > { %v424_v60 = vpack.c.bf16 %v403_v51, %v402_v49  ;;  %v405_v61 = vmax.f32 %v373_v52, 0.0  ;;  %v336_v62 = vmul.f32 %v1150_v53, %v1452_v5  ;;  %v374_v63 = vadd.f32 %v1460_v11, %v335_v54 }
  0x2a   : > { %1330 = vmatmul.mubr.bf16.vlgmr.msra.gmra.mrb[0].mxu1 %v423_v56  ;;  %v337_v0 = vmul.f32 %v1153_v58, %v1452_v5  ;;  %v338_v1 = vmul.f32 %v1154_v59, %v1452_v5  ;;  %v1157_v2 = vunpack.c.l.bf16 %v1256_v55  ;;  %v1158_v3 = vunpack.c.h.bf16 %v1256_v55 }
  0x2b   : > { %v418_v6 = vpack.c.bf16 %v391_v24, %v390_v15  ;;  %v363_v8 = vadd.f32 %v1460_v11, %v1518_v12  ;;  %1333 = vmatprep.mubr.bf16.mxu1 %v424_v60  ;;  %v375_v9 = vadd.f32 %v1460_v11, %v336_v62  ;;  %v406_v14 = vmax.f32 %v374_v63, 0.0 }
  0x2c   : > { %v392_v18 = vmax.f32 %v1515_v10, 0.0  ;;  %v326_v19 = vmul.f32 %v1130_v7, %v1452_v5  ;;  %v339_v21 = vmul.f32 %v1157_v2, %v1452_v5  ;;  %v340_v22 = vmul.f32 %v1158_v3, %v1452_v5 }
  0x2d   : > { %v393_v15 = vmax.f32 %v1525_v16, 0.0  ;;  %v394_v23 = vmax.f32 %v1530_v20, 0.0  ;;  %v425_v12 = vpack.c.bf16 %v405_v61, %v404_v57  ;;  %v407_v24 = vmax.f32 %v375_v9, 0.0 }
  0x2e   : > { %1318 = vmatmul.mubr.bf16.gmra.mrb[4].mxu0 %v1507_v4  ;;  %v376_v25 = vadd.f32 %v1460_v11, %v337_v0  ;;  %v377_v10 = vadd.f32 %v1460_v11, %v338_v1  ;;  %v1161_v26 = vunpack.c.l.bf16 %v1257_v17  ;;  %v1162_v27 = vunpack.c.h.bf16 %v1257_v17 }
  0x2f   : > { %1321 = vmatprep.mubr.bf16.mxu0 %v418_v6  ;;  %v395_v48 = vmax.f32 %v363_v8, 0.0  ;;  %v426_v7 = vpack.c.bf16 %v407_v24, %v406_v14  ;;  %v378_v28 = vadd.f32 %v1460_v11, %v339_v21  ;;  %v379_v29 = vadd.f32 %v1460_v11, %v340_v22 }
  0x30   : > { %v419_v16 = vpack.c.bf16 %v393_v15, %v392_v18  ;;  %v364_v20 = vadd.f32 %v1460_v11, %v1521_v13  ;;  %v365_v30 = vadd.f32 %v1460_v11, %v326_v19  ;;  %v408_v4 = vmax.f32 %v376_v25, 0.0 }
  0x31   : > { %v409_v31 = vmax.f32 %v377_v10, 0.0  ;;  %v341_v32 = vmul.f32 %v1161_v26, %v1452_v5  ;;  %v342_v33 = vmul.f32 %v1162_v27, %v1452_v5  ;;  %v420_v34 = vpack.c.bf16 %v395_v48, %v394_v23 }
  0x32   : > { %1334 = vmatmul.mubr.bf16.gmra.mrb[4].mxu1 %v425_v12  ;;  %v410_v35 = vmax.f32 %v378_v28, 0.0  ;;  %v411_v36 = vmax.f32 %v379_v29, 0.0  ;;  %v396_v37 = vmax.f32 %v364_v20, 0.0  ;;  %v397_v38 = vmax.f32 %v365_v30, 0.0 }
  0x33   : > { %1337 = vmatprep.mubr.bf16.mxu1 %v426_v7  ;;  %v427_v39 = vpack.c.bf16 %v409_v31, %v408_v4  ;;  %v380_v13 = vadd.f32 %v1460_v11, %v341_v32  ;;  %v381_v40 = vadd.f32 %v1460_v11, %v342_v33 }
  0x34   : > { %v428_v41 = vpack.c.bf16 %v411_v36, %v410_v35  ;;  %v421_v42 = vpack.c.bf16 %v397_v38, %v396_v37 }
  0x35   : > { %v412_v43 = vmax.f32 %v380_v13, 0.0  ;;  %v413_v44 = vmax.f32 %v381_v40, 0.0 }
  0x36   : > { %1322 = vmatmul.mubr.bf16.gmra.mrb[8].mxu0 %v419_v16 }
  0x37   : > { %1325 = vmatprep.mubr.bf16.mxu0 %v420_v34  ;;  %v429_v5 = vpack.c.bf16 %v413_v44, %v412_v43 }
  0x3a   : > { %1338 = vmatmul.mubr.bf16.gmra.mrb[8].mxu1 %v427_v39 }
  0x3b   : > { %1341 = vmatprep.mubr.bf16.mxu1 %v428_v41 }
  0x3e   : > { %1326 = vmatmul.mubr.bf16.gmra.mrb[12].mxu0 %v421_v42 }
  0x42   : > { %1342 = vmatmul.mubr.bf16.gmra.mrb[12].mxu1 %v429_v5 }
  0xf9   : > { %v1315_v45 = vpop.f32.mrb[0].mxu0 }
  0xfa   : > { %v528_v46 = vpop.f32.mrb[1].mxu0  ;;  %v854_v56 = vmul.f32 %v1315_v45, %v1315_v45 }
  0xfb   : > { %v1316_v11 = vpop.f32.mrb[2].mxu0  ;;  %v852_v50 = vmul.f32 %v528_v46, %v528_v46 }
  0xfc   : > { %v1171_v47 = vpack.c.bf16 %v1316_v11, %v1315_v45  ;;  %v531_v49 = vpop.f32.mrb[3].mxu0  ;;  %v855_v62 = vmul.f32 %v1316_v11, %v1316_v11 }
  0xfd   : > { %v1166_v51 = vpack.c.bf16 %v531_v49, %v528_v46  ;;  %v815_v52 = vadd.f32 %v531_v49, %v528_v46  ;;  %v853_v53 = vmul.f32 %v531_v49, %v531_v49  ;;  %v1587_v54 = vpop.f32.mrb[0].mxu1 }
  0xfe   : > { %1258 = vst [vmem:[%s1585_s25 + $0x8] sm:$0xff] %v1171_v47   ;;  %v1590_v55 = vpop.f32.mrb[1].mxu1 }
  0xff   : > { %1167 = vst [vmem:[%s1585_s25] sm:$0xff] %v1166_v51   ;;  %v816_v57 = vadd.f32 %v1315_v45, %v815_v52  ;;  %v884_v58 = vadd.f32 %v853_v53, %v852_v50  ;;  %v1593_v59 = vpop.f32.mrb[2].mxu1 }
 0x100   : > { %v1211_v60 = vpack.c.bf16 %v1593_v59, %v1587_v54  ;;  %v1597_v61 = vpop.f32.mrb[3].mxu1 }
 0x101   : > { %v885_v63 = vadd.f32 %v884_v58, %v854_v56  ;;  %v1319_v0 = vpop.f32.mrb[4].mxu0  ;;  %v817_v1 = vadd.f32 %v1316_v11, %v816_v57  ;;  %v1206_v2 = vpack.c.bf16 %v1597_v61, %v1590_v55 }
 0x102   : > { %v544_v3 = vpop.f32.mrb[5].mxu0  ;;  %1266 = vst [vmem:[%s1585_s25 + $0x48] sm:$0xff] %v1211_v60   ;;  %v858_v24 = vmul.f32 %v1319_v0, %v1319_v0 }
 0x103   : > { %v818_v6 = vadd.f32 %v817_v1, %v544_v3  ;;  %v856_v8 = vmul.f32 %v544_v3, %v544_v3  ;;  %v886_v9 = vadd.f32 %v885_v63, %v855_v62  ;;  %v1320_v14 = vpop.f32.mrb[6].mxu0  ;;  %1265 = vst [vmem:[%s1585_s25 + $0x40] sm:$0xff] %v1206_v2  }
 0x104   : > { %v1181_v17 = vpack.c.bf16 %v1320_v14, %v1319_v0  ;;  %v547_v18 = vpop.f32.mrb[7].mxu0  ;;  %v859_v7 = vmul.f32 %v1320_v14, %v1320_v14 }
 0x105   : > { %v887_v19 = vadd.f32 %v886_v9, %v856_v8  ;;  %v1176_v21 = vpack.c.bf16 %v547_v18, %v544_v3  ;;  %v819_v22 = vadd.f32 %v818_v6, %v547_v18  ;;  %v857_v15 = vmul.f32 %v547_v18, %v547_v18  ;;  %v1603_v23 = vpop.f32.mrb[4].mxu1 }
 0x106   : > { %1260 = vst [vmem:[%s1585_s25 + $0x18] sm:$0xff] %v1181_v17   ;;  %v1606_v12 = vpop.f32.mrb[5].mxu1  ;;  %v868_v17 = vmul.f32 %v1590_v55, %v1590_v55 }
 0x107   : > { %1259 = vst [vmem:[%s1585_s25 + $0x10] sm:$0xff] %v1176_v21   ;;  %v820_v25 = vadd.f32 %v1319_v0, %v819_v22  ;;  %v888_v10 = vadd.f32 %v887_v19, %v857_v15  ;;  %v1609_v26 = vpop.f32.mrb[6].mxu1 }
 0x108   : > { %v1221_v27 = vpack.c.bf16 %v1609_v26, %v1603_v23  ;;  %v1613_v48 = vpop.f32.mrb[7].mxu1 }
 0x109   : > { %v889_v28 = vadd.f32 %v888_v10, %v858_v24  ;;  %v1323_v29 = vpop.f32.mrb[8].mxu0  ;;  %v821_v16 = vadd.f32 %v1320_v14, %v820_v25  ;;  %v1216_v20 = vpack.c.bf16 %v1613_v48, %v1606_v12 }
 0x10a   : > { %v560_v30 = vpop.f32.mrb[9].mxu0  ;;  %1268 = vst [vmem:[%s1585_s25 + $0x58] sm:$0xff] %v1221_v27   ;;  %v862_v41 = vmul.f32 %v1323_v29, %v1323_v29 }
 0x10b   : > { %v822_v4 = vadd.f32 %v821_v16, %v560_v30  ;;  %v860_v31 = vmul.f32 %v560_v30, %v560_v30  ;;  %v890_v32 = vadd.f32 %v889_v28, %v859_v7  ;;  %v1324_v33 = vpop.f32.mrb[10].mxu0  ;;  %1267 = vst [vmem:[%s1585_s25 + $0x50] sm:$0xff] %v1216_v20   ;;  %v869_v28 = vmul.f32 %v1597_v61, %v1597_v61 }
 0x10c   : > { %v1191_v34 = vpack.c.bf16 %v1324_v33, %v1323_v29  ;;  %v563_v35 = vpop.f32.mrb[11].mxu0  ;;  %v863_v46 = vmul.f32 %v1324_v33, %v1324_v33 }
 0x10d   : > { %v891_v36 = vadd.f32 %v890_v32, %v860_v31  ;;  %v1186_v37 = vpack.c.bf16 %v563_v35, %v560_v30  ;;  %v823_v38 = vadd.f32 %v822_v4, %v563_v35  ;;  %v861_v39 = vmul.f32 %v563_v35, %v563_v35  ;;  %v1619_v13 = vpop.f32.mrb[8].mxu1 }
 0x10e   : > { %1262 = vst [vmem:[%s1585_s25 + $0x28] sm:$0xff] %v1191_v34   ;;  %v1622_v40 = vpop.f32.mrb[9].mxu1  ;;  %v871_v30 = vmul.f32 %v1593_v59, %v1593_v59  ;;  %v872_v31 = vmul.f32 %v1606_v12, %v1606_v12  ;;  %v873_v35 = vmul.f32 %v1613_v48, %v1613_v48 }
 0x10f   : > { %1261 = vst [vmem:[%s1585_s25 + $0x20] sm:$0xff] %v1186_v37   ;;  %v824_v42 = vadd.f32 %v1323_v29, %v823_v38  ;;  %v892_v43 = vadd.f32 %v891_v36, %v861_v39  ;;  %v1625_v44 = vpop.f32.mrb[10].mxu1  ;;  %v870_v29 = vmul.f32 %v1587_v54, %v1587_v54 }
 0x110   : > { %v1231_v5 = vpack.c.bf16 %v1625_v44, %v1619_v13  ;;  %v1629_v45 = vpop.f32.mrb[11].mxu1 }
 0x111   : > { %v893_v11 = vadd.f32 %v892_v43, %v862_v41  ;;  %v1327_v47 = vpop.f32.mrb[12].mxu0  ;;  %v825_v49 = vadd.f32 %v1324_v33, %v824_v42  ;;  %v1226_v50 = vpack.c.bf16 %v1629_v45, %v1622_v40 }
 0x112   : > { %v576_v51 = vpop.f32.mrb[13].mxu0  ;;  %1270 = vst [vmem:[%s1585_s25 + $0x68] sm:$0xff] %v1231_v5   ;;  %v866_v6 = vmul.f32 %v1327_v47, %v1327_v47  ;;  %v877_v5 = vmul.f32 %v1629_v45, %v1629_v45 }
 0x113   : > { %v826_v52 = vadd.f32 %v825_v49, %v576_v51  ;;  %v864_v53 = vmul.f32 %v576_v51, %v576_v51  ;;  %v894_v56 = vadd.f32 %v893_v11, %v863_v46  ;;  %v1328_v57 = vpop.f32.mrb[14].mxu0  ;;  %1269 = vst [vmem:[%s1585_s25 + $0x60] sm:$0xff] %v1226_v50  }
 0x114   : > { %v1201_v58 = vpack.c.bf16 %v1328_v57, %v1327_v47  ;;  %v579_v60 = vpop.f32.mrb[15].mxu0  ;;  %v867_v21 = vmul.f32 %v1328_v57, %v1328_v57 }
 0x115   : > { %v895_v62 = vadd.f32 %v894_v56, %v864_v53  ;;  %v1196_v63 = vpack.c.bf16 %v579_v60, %v576_v51  ;;  %v827_v0 = vadd.f32 %v826_v52, %v579_v60  ;;  %v865_v1 = vmul.f32 %v579_v60, %v579_v60  ;;  %v1343_v2 = vpop.f32.mrb[12].mxu1 }
 0x116   : > { %1264 = vst [vmem:[%s1585_s25 + $0x38] sm:$0xff] %v1201_v58   ;;  %v640_v3 = vpop.f32.mrb[13].mxu1  ;;  %v882_v56 = vmul.f32 %v1343_v2, %v1343_v2 }
 0x117   : > { %1263 = vst [vmem:[%s1585_s25 + $0x30] sm:$0xff] %v1196_v63   ;;  %v828_v8 = vadd.f32 %v1327_v47, %v827_v0  ;;  %v896_v9 = vadd.f32 %v895_v62, %v865_v1  ;;  %v1344_v14 = vpop.f32.mrb[14].mxu1  ;;  %v880_v49 = vmul.f32 %v640_v3, %v640_v3 }
 0x118   : > { %v1241_v18 = vpack.c.bf16 %v1344_v14, %v1343_v2  ;;  %v643_v19 = vpop.f32.mrb[15].mxu1  ;;  %v883_v60 = vmul.f32 %v1344_v14, %v1344_v14 }
 0x119   : > { %v897_v22 = vadd.f32 %v896_v9, %v866_v6  ;;  %v829_v15 = vadd.f32 %v1328_v57, %v828_v8  ;;  %v1236_v24 = vpack.c.bf16 %v643_v19, %v640_v3 }
 0x11a   : > { %1272 = vst [vmem:[%s1585_s25 + $0x78] sm:$0xff] %v1241_v18  }
 0x11b   : > { %v830_v25 = vadd.f32 %v829_v15, %v1590_v55  ;;  %v898_v10 = vadd.f32 %v897_v22, %v867_v21  ;;  %1271 = vst [vmem:[%s1585_s25 + $0x70] sm:$0xff] %v1236_v24  }
 0x11d   : > { %v899_v27 = vadd.f32 %v898_v10, %v868_v17  ;;  %v831_v7 = vadd.f32 %v830_v25, %v1597_v61 }
 0x11f   : > { %v832_v16 = vadd.f32 %v1587_v54, %v831_v7  ;;  %v900_v20 = vadd.f32 %v899_v27, %v869_v28  ;;  %v874_v54 = vmul.f32 %v1603_v23, %v1603_v23 }
 0x121   : > { %v901_v4 = vadd.f32 %v900_v20, %v870_v29  ;;  %v833_v55 = vadd.f32 %v1593_v59, %v832_v16  ;;  %v875_v59 = vmul.f32 %v1609_v26, %v1609_v26 }
 0x123   : > { %v834_v32 = vadd.f32 %v833_v55, %v1606_v12  ;;  %v902_v33 = vadd.f32 %v901_v4, %v871_v30  ;;  %v876_v12 = vmul.f32 %v1622_v40, %v1622_v40 }
 0x125   : > { %v903_v34 = vadd.f32 %v902_v33, %v872_v31  ;;  %v835_v61 = vadd.f32 %v834_v32, %v1613_v48 }
 0x127   : > { %v836_v36 = vadd.f32 %v1603_v23, %v835_v61  ;;  %v904_v37 = vadd.f32 %v903_v34, %v873_v35  ;;  %v878_v23 = vmul.f32 %v1619_v13, %v1619_v13 }
 0x129   : > { %v905_v38 = vadd.f32 %v904_v37, %v874_v54  ;;  %v837_v39 = vadd.f32 %v1609_v26, %v836_v36  ;;  %v879_v26 = vmul.f32 %v1625_v44, %v1625_v44 }
 0x12b   : > { %v838_v41 = vadd.f32 %v837_v39, %v1622_v40  ;;  %v906_v42 = vadd.f32 %v905_v38, %v875_v59 }
 0x12d   : > { %v907_v43 = vadd.f32 %v906_v42, %v876_v12  ;;  %v839_v48 = vadd.f32 %v838_v41, %v1629_v45  ;;  %v881_v45 = vmul.f32 %v643_v19, %v643_v19 }
 0x12f   : > { %v840_v46 = vadd.f32 %v1619_v13, %v839_v48  ;;  %v908_v11 = vadd.f32 %v907_v43, %v877_v5 }
 0x131   : > { %v909_v47 = vadd.f32 %v908_v11, %v878_v23  ;;  %v841_v40 = vadd.f32 %v1625_v44, %v840_v46 }
 0x133   : > { %v842_v50 = vadd.f32 %v841_v40, %v640_v3  ;;  %v910_v51 = vadd.f32 %v909_v47, %v879_v26 }
 0x135   : > { %v911_v52 = vadd.f32 %v910_v51, %v880_v49  ;;  %v843_v53 = vadd.f32 %v842_v50, %v643_v19 }
 0x137   : > { %v844_v57 = vadd.f32 %v1343_v2, %v843_v53  ;;  %v912_v58 = vadd.f32 %v911_v52, %v881_v45 }
 0x139   : > { %v845_v13 = vadd.f32 %v1344_v14, %v844_v57  ;;  %v913_v62 = vadd.f32 %v912_v58, %v882_v56 }
 0x13b   : > { %v846_v63 = vrot.slane %v845_v13, 4  ;;  %v914_v0 = vadd.f32 %v913_v62, %v883_v60 }
 0x13d   : > { %v847_v1 = vadd.f32 %v846_v63, %v845_v13  ;;  %v915_v6 = vrot.slane %v914_v0, 4 }
 0x13f   : > { %v848_v8 = vrot.slane %v847_v1, 2  ;;  %v916_v44 = vadd.f32 %v915_v6, %v914_v0 }
 0x141   : > { %v849_v3 = vadd.f32 %v848_v8, %v847_v1  ;;  %v917_v9 = vrot.slane %v916_v44, 2 }
 0x143   : > { %v850_v17 = vrot.slane %v849_v3, 1  ;;  %v918_v18 = vadd.f32 %v917_v9, %v916_v44 }
 0x145   : > { %v919_v19 = vrot.slane %v918_v18, 1  ;;  %v851_v2 = vadd.f32 %v850_v17, %v849_v3 }
 0x147   : > { %v920_v21 = vadd.f32 %v919_v19, %v918_v18 }
 0x149   : > { %v922_v14 = vsel %vm921_vm0, %v851_v2, %v920_v21 }
 0x14a   : > { %v924_v22 = vsel %vm923_vm1, %v922_v14, 0.0 }
 0x14b   : > { %925 = vst [vmem:[%s238_s28] sm:$0xff] %v924_v22 }
 0x14c PF: > { %s16_s18 = sadd.s32 1, %s1383_s18  }
 0x14d   : > { %p13_p5 = scmp.ge.s32.totalorder %s16_s18, 4  }
 0x14f   :  { %15 = sbr.rel (!%p13_p5) target bundleno = 1 (0x1), region = 78 }

// kernel: bottleneck_forward.4
= control target key start
LH: loop header
LB: loop body
LE: loop exit
PB: predicated region body
PF: predicated region fallthrough
CT: control target
= control target key end

     0   :  { %s1128_s12 = smov 0   ;;  %s1317_s0 = inlined_call_operand.vmem [shape: f32[512,128], index: 0, kind: input, shape index: {}]   ;;  %s1318_s1 = inlined_call_operand.vmem [shape: bf16[128,128], index: 1, kind: input, shape index: {}]   ;;  %s1319_s2 = inlined_call_operand.vmem [shape: bf16[512,128], index: 2, kind: output, shape index: {0}]   ;;  %s1320_s3 = inlined_call_operand.vmem [shape: f32[16,128], index: 3, kind: output, shape index: {1}]  }
   0x1 LB: > { %s1134_s13 = sadd.s32 4294967295, %s1106_s12   ;;  %p821_p0 = scmp.ge.s32.totalorder %s1106_s12, 1  ;;  %s1106_s12 = sphi %s1128_s12, %s14_s12  }
   0x2   : > { %p141_p1 = scmp.lt.s32.totalorder %s1106_s12, 3 }
   0x4   : > { %p142_p2 = pnand %p821_p0, %p141_p1 }
   0x5   : > { %v1092_v0 = vld [vmem:[%s1318_s1] sm:$0xff] (!%p142_p2)   ;;  %s822_s16 = sshll.u32 (!%p142_p2), %s1134_s13, 5  ;;  %v1093_v1 = vld [vmem:[%s1318_s1 + $0x8] sm:$0xff] (!%p142_p2)   ;;  %v1094_v2 = vld [vmem:[%s1318_s1 + $0x10] sm:$0xff] (!%p142_p2)   ;;  %p181_p4 = scmp.lt.s32.totalorder (!%p142_p2), %s1134_s13, 1  ;;  %vm725_vm0 = vcmask (!%p142_p2), 1040384  }
   0x6   : > { %145 = sbr.rel (%p142_p2) target bundleno = 332 (0x14c), region = 28  ;;  %p170_p3 = scmp.lt.s32.totalorder (!%p142_p2), %s822_s16, 63  ;;  %1020 = vmatprep.subr.bf16.mxu0 (!%p142_p2), %v1092_v0  ;;  %1068 = vmatprep.subr.bf16.mxu1 (!%p142_p2), %v1092_v0  ;;  %v1095_v3 = vld [vmem:[%s1318_s1 + $0x18] sm:$0xff] (!%p142_p2)   ;;  %v1096_v7 = vld [vmem:[%s1318_s1 + $0x20] sm:$0xff] (!%p142_p2)   ;;  %v1097_v11 = vld [vmem:[%s1318_s1 + $0x28] sm:$0xff] (!%p142_p2)   ;;  %vm727_vm1 = vcmask (!%p142_p2), 1041408  }
   0x7   : > { %1021 = vmatpush3.bf16.msra.mxu0 (!%p142_p2), %v1092_v0  ;;  %1076 = vmatpush3.bf16.msra.mxu1 (!%p142_p2), %v1092_v0  ;;  %v1098_v12 = vld [vmem:[%s1318_s1 + $0x30] sm:$0xff] (!%p142_p2)   ;;  %v1099_v13 = vld [vmem:[%s1318_s1 + $0x38] sm:$0xff] (!%p142_p2)  }
   0x8   : > { %1022 = vmatprep.subr.bf16.mxu0 (!%p142_p2), %v1093_v1  ;;  %1069 = vmatprep.subr.bf16.mxu1 (!%p142_p2), %v1093_v1 }
   0xb   : > { %1023 = vmatpush3.bf16.msra.mxu0 (!%p142_p2), %v1093_v1  ;;  %1077 = vmatpush3.bf16.msra.mxu1 (!%p142_p2), %v1093_v1 }
   0xc   : > { %1024 = vmatprep.subr.bf16.mxu0 (!%p142_p2), %v1094_v2  ;;  %1070 = vmatprep.subr.bf16.mxu1 (!%p142_p2), %v1094_v2 }
   0xd   : > { %s1322_s16 = smov (!%p170_p3, %s822_s16), 63  ;;  %s1324_s13 = smov (!%p181_p4, %s1134_s13), 1 }
   0xe   : > { %s823_s21 = sshll.u32 %s1322_s16, 3  ;;  %s825_s8 = sshll.u32 %s1322_s16, 2 }
   0xf   : > { %s1154_s24 = scalar_lea.vmem %s1317_s0, %s823_s21  ;;  %1025 = vmatpush3.bf16.msra.mxu0 %v1094_v2  ;;  %1078 = vmatpush3.bf16.msra.mxu1 %v1094_v2  ;;  %s1209_s11 = scalar_lea.vmem %s1319_s2, %s825_s8 }
  0x10   : > { %v186_v4 = vld [vmem:[%s1154_s24] sm:$0xff]  ;;  %v187_v5 = vld [vmem:[%s1154_s24 + $0x8] sm:$0xff]  ;;  %1026 = vmatprep.subr.bf16.mxu0 %v1095_v3  ;;  %1071 = vmatprep.subr.bf16.mxu1 %v1095_v3  ;;  %v188_v14 = vld [vmem:[%s1154_s24 + $0x10] sm:$0xff]  ;;  %s826_s14 = sshll.u32 %s1324_s13, 3 }
  0x11   : > { %v218_v6 = vpack.c.bf16 %v187_v5, %v186_v4  ;;  %v202_v8 = vld [vmem:[%s1154_s24 + $0x80] sm:$0xff]  ;;  %v203_v9 = vld [vmem:[%s1154_s24 + $0x88] sm:$0xff]  ;;  %v189_v15 = vld [vmem:[%s1154_s24 + $0x18] sm:$0xff]  ;;  %s184_s17 = scalar_lea.vmem %s1320_s3, %s826_s14 }
  0x12   : > { %v226_v10 = vpack.c.bf16 %v203_v9, %v202_v8  ;;  %v190_v16 = vld [vmem:[%s1154_s24 + $0x20] sm:$0xff]  ;;  %v191_v17 = vld [vmem:[%s1154_s24 + $0x28] sm:$0xff]  ;;  %v204_v18 = vld [vmem:[%s1154_s24 + $0x90] sm:$0xff]  ;;  %v219_v22 = vpack.c.bf16 %v189_v15, %v188_v14 }
  0x13   : > { %1036 = vmatprep.mubr.bf16.mxu0 %v218_v6  ;;  %1027 = vmatpush3.bf16.msra.mxu0 %v1095_v3  ;;  %v205_v19 = vld [vmem:[%s1154_s24 + $0x98] sm:$0xff]  ;;  %v206_v20 = vld [vmem:[%s1154_s24 + $0xa0] sm:$0xff]  ;;  %v207_v21 = vld [vmem:[%s1154_s24 + $0xa8] sm:$0xff]  ;;  %v220_v23 = vpack.c.bf16 %v191_v17, %v190_v16 }
  0x14   : > { %1028 = vmatprep.subr.bf16.mxu0 %v1096_v7  ;;  %1079 = vmatpush3.bf16.msra.mxu1 %v1095_v3  ;;  %v227_v24 = vpack.c.bf16 %v205_v19, %v204_v18  ;;  %v228_v25 = vpack.c.bf16 %v207_v21, %v206_v20  ;;  %v192_v26 = vld [vmem:[%s1154_s24 + $0x30] sm:$0xff]  ;;  %v193_v27 = vld [vmem:[%s1154_s24 + $0x38] sm:$0xff]  ;;  %v194_v28 = vld [vmem:[%s1154_s24 + $0x40] sm:$0xff] }
  0x15   : > { %1072 = vmatprep.subr.bf16.mxu1 %v1096_v7  ;;  %1052 = vmatprep.mubr.bf16.mxu1 %v226_v10  ;;  %v195_v29 = vld [vmem:[%s1154_s24 + $0x48] sm:$0xff]  ;;  %v208_v30 = vld [vmem:[%s1154_s24 + $0xb0] sm:$0xff]  ;;  %v209_v31 = vld [vmem:[%s1154_s24 + $0xb8] sm:$0xff]  ;;  %v221_v34 = vpack.c.bf16 %v193_v27, %v192_v26 }
  0x16   : > { %v210_v32 = vld [vmem:[%s1154_s24 + $0xc0] sm:$0xff]  ;;  %v211_v33 = vld [vmem:[%s1154_s24 + $0xc8] sm:$0xff]  ;;  %v222_v35 = vpack.c.bf16 %v195_v29, %v194_v28  ;;  %v229_v36 = vpack.c.bf16 %v209_v31, %v208_v30  ;;  %v196_v38 = vld [vmem:[%s1154_s24 + $0x50] sm:$0xff] }
  0x17   : > { %1029 = vmatpush3.bf16.msra.mxu0 %v1096_v7  ;;  %v230_v37 = vpack.c.bf16 %v211_v33, %v210_v32  ;;  %v197_v39 = vld [vmem:[%s1154_s24 + $0x58] sm:$0xff]  ;;  %v198_v40 = vld [vmem:[%s1154_s24 + $0x60] sm:$0xff]  ;;  %v199_v41 = vld [vmem:[%s1154_s24 + $0x68] sm:$0xff] }
  0x18   : > { %1030 = vmatprep.subr.bf16.mxu0 %v1097_v11  ;;  %1080 = vmatpush3.bf16.msra.mxu1 %v1096_v7  ;;  %v212_v42 = vld [vmem:[%s1154_s24 + $0xd0] sm:$0xff]  ;;  %v213_v43 = vld [vmem:[%s1154_s24 + $0xd8] sm:$0xff]  ;;  %v214_v44 = vld [vmem:[%s1154_s24 + $0xe0] sm:$0xff]  ;;  %v223_v46 = vpack.c.bf16 %v197_v39, %v196_v38  ;;  %v224_v47 = vpack.c.bf16 %v199_v41, %v198_v40 }
  0x19   : > { %1073 = vmatprep.subr.bf16.mxu1 %v1097_v11  ;;  %v215_v45 = vld [vmem:[%s1154_s24 + $0xe8] sm:$0xff]  ;;  %v231_v48 = vpack.c.bf16 %v213_v43, %v212_v42  ;;  %v200_v50 = vld [vmem:[%s1154_s24 + $0x70] sm:$0xff]  ;;  %v201_v51 = vld [vmem:[%s1154_s24 + $0x78] sm:$0xff] }
  0x1a   : > { %v232_v49 = vpack.c.bf16 %v215_v45, %v214_v44  ;;  %v216_v52 = vld [vmem:[%s1154_s24 + $0xf0] sm:$0xff]  ;;  %v217_v53 = vld [vmem:[%s1154_s24 + $0xf8] sm:$0xff]  ;;  %v225_v54 = vpack.c.bf16 %v201_v51, %v200_v50 }
  0x1b   : > { %1031 = vmatpush3.bf16.msra.mxu0 %v1097_v11  ;;  %v233_v55 = vpack.c.bf16 %v217_v53, %v216_v52 }
  0x1c   : > { %1032 = vmatprep.subr.bf16.mxu0 %v1098_v12  ;;  %1081 = vmatpush3.bf16.msra.mxu1 %v1097_v11 }
  0x1d   : > { %1074 = vmatprep.subr.bf16.mxu1 %v1098_v12 }
  0x1f   : > { %1033 = vmatpush3.bf16.msra.mxu0 %v1098_v12 }
  0x20   : > { %1034 = vmatprep.subr.bf16.mxu0 %v1099_v13  ;;  %1082 = vmatpush3.bf16.msra.mxu1 %v1098_v12 }
  0x21   : > { %1075 = vmatprep.subr.bf16.mxu1 %v1099_v13 }
  0x23   : > { %1035 = vmatpush3.bf16.msra.mxu0 %v1099_v13 }
  0x24   : > { %1083 = vmatpush3.bf16.msra.mxu1 %v1099_v13 }
  0x26   : > { %1037 = vmatmul.mubr.bf16.vlgmr.msra.gmra.mrb[0].mxu0 %v219_v22 }
  0x27   : > { %1040 = vmatprep.mubr.bf16.mxu0 %v220_v23  ;;  %1053 = vmatmul.mubr.bf16.vlgmr.msra.gmra.mrb[0].mxu1 %v227_v24 }
  0x28   : > { %1056 = vmatprep.mubr.bf16.mxu1 %v228_v25 }
  0x2e   : > { %1041 = vmatmul.mubr.bf16.gmra.mrb[4].mxu0 %v221_v34 }
  0x2f   : > { %1044 = vmatprep.mubr.bf16.mxu0 %v222_v35  ;;  %1057 = vmatmul.mubr.bf16.gmra.mrb[4].mxu1 %v229_v36 }
  0x30   : > { %1060 = vmatprep.mubr.bf16.mxu1 %v230_v37 }
  0x36   : > { %1045 = vmatmul.mubr.bf16.gmra.mrb[8].mxu0 %v223_v46 }
  0x37   : > { %1048 = vmatprep.mubr.bf16.mxu0 %v224_v47  ;;  %1061 = vmatmul.mubr.bf16.gmra.mrb[8].mxu1 %v231_v48 }
  0x38   : > { %1064 = vmatprep.mubr.bf16.mxu1 %v232_v49 }
  0x3e   : > { %1049 = vmatmul.mubr.bf16.gmra.mrb[12].mxu0 %v225_v54 }
  0x3f   : > { %1065 = vmatmul.mubr.bf16.gmra.mrb[12].mxu1 %v233_v55 }
  0xf9   : > { %v1038_v56 = vpop.f32.mrb[0].mxu0 }
  0xfa   : > { %v332_v57 = vpop.f32.mrb[1].mxu0  ;;  %v1204_v58 = vpop.f32.mrb[0].mxu1  ;;  %v658_v7 = vmul.f32 %v1038_v56, %v1038_v56 }
  0xfb   : > { %v1039_v59 = vpop.f32.mrb[2].mxu0  ;;  %v1211_v60 = vpop.f32.mrb[1].mxu1  ;;  %v656_v61 = vmul.f32 %v332_v57, %v332_v57 }
  0xfc   : > { %v909_v62 = vpack.c.bf16 %v1039_v59, %v1038_v56  ;;  %v335_v63 = vpop.f32.mrb[3].mxu0  ;;  %v1213_v0 = vpop.f32.mrb[2].mxu1  ;;  %v659_v10 = vmul.f32 %v1039_v59, %v1039_v59 }
  0xfd   : > { %v904_v1 = vpack.c.bf16 %v335_v63, %v332_v57  ;;  %v619_v2 = vadd.f32 %v335_v63, %v332_v57  ;;  %v657_v3 = vmul.f32 %v335_v63, %v335_v63  ;;  %v949_v4 = vpack.c.bf16 %v1213_v0, %v1204_v58  ;;  %v1217_v5 = vpop.f32.mrb[3].mxu1 }
  0xfe   : > { %981 = vst [vmem:[%s1209_s11 + $0x8] sm:$0xff] %v909_v62   ;;  %v944_v6 = vpack.c.bf16 %v1217_v5, %v1211_v60 }
  0xff   : > { %905 = vst [vmem:[%s1209_s11] sm:$0xff] %v904_v1   ;;  %v620_v8 = vadd.f32 %v1038_v56, %v619_v2  ;;  %v688_v9 = vadd.f32 %v657_v3, %v656_v61  ;;  %989 = vst [vmem:[%s1209_s11 + $0x48] sm:$0xff] %v949_v4  }
 0x100   : > { %988 = vst [vmem:[%s1209_s11 + $0x40] sm:$0xff] %v944_v6  }
 0x101   : > { %v689_v11 = vadd.f32 %v688_v9, %v658_v7  ;;  %v1042_v12 = vpop.f32.mrb[4].mxu0  ;;  %v621_v13 = vadd.f32 %v1039_v59, %v620_v8 }
 0x102   : > { %v348_v14 = vpop.f32.mrb[5].mxu0  ;;  %v1225_v15 = vpop.f32.mrb[4].mxu1  ;;  %v662_v31 = vmul.f32 %v1042_v12, %v1042_v12 }
 0x103   : > { %v622_v16 = vadd.f32 %v621_v13, %v348_v14  ;;  %v660_v17 = vmul.f32 %v348_v14, %v348_v14  ;;  %v690_v18 = vadd.f32 %v689_v11, %v659_v10  ;;  %v1043_v19 = vpop.f32.mrb[6].mxu0  ;;  %v1227_v20 = vpop.f32.mrb[5].mxu1 }
 0x104   : > { %v919_v21 = vpack.c.bf16 %v1043_v19, %v1042_v12  ;;  %v351_v22 = vpop.f32.mrb[7].mxu0  ;;  %v1229_v23 = vpop.f32.mrb[6].mxu1  ;;  %v663_v34 = vmul.f32 %v1043_v19, %v1043_v19 }
 0x105   : > { %v691_v24 = vadd.f32 %v690_v18, %v660_v17  ;;  %v914_v25 = vpack.c.bf16 %v351_v22, %v348_v14  ;;  %v623_v26 = vadd.f32 %v622_v16, %v351_v22  ;;  %v661_v27 = vmul.f32 %v351_v22, %v351_v22  ;;  %v1231_v28 = vpop.f32.mrb[7].mxu1 }
 0x106   : > { %983 = vst [vmem:[%s1209_s11 + $0x18] sm:$0xff] %v919_v21   ;;  %v959_v29 = vpack.c.bf16 %v1229_v23, %v1225_v15  ;;  %v954_v30 = vpack.c.bf16 %v1231_v28, %v1227_v20 }
 0x107   : > { %982 = vst [vmem:[%s1209_s11 + $0x10] sm:$0xff] %v914_v25   ;;  %v624_v32 = vadd.f32 %v1042_v12, %v623_v26  ;;  %v692_v33 = vadd.f32 %v691_v24, %v661_v27 }
 0x108   : > { %991 = vst [vmem:[%s1209_s11 + $0x58] sm:$0xff] %v959_v29   ;;  %990 = vst [vmem:[%s1209_s11 + $0x50] sm:$0xff] %v954_v30   ;;  %v672_v29 = vmul.f32 %v1211_v60, %v1211_v60 }
 0x109   : > { %v693_v35 = vadd.f32 %v692_v33, %v662_v31  ;;  %v1046_v36 = vpop.f32.mrb[8].mxu0  ;;  %v625_v37 = vadd.f32 %v1043_v19, %v624_v32 }
 0x10a   : > { %v364_v38 = vpop.f32.mrb[9].mxu0  ;;  %v1241_v39 = vpop.f32.mrb[8].mxu1  ;;  %v666_v55 = vmul.f32 %v1046_v36, %v1046_v36 }
 0x10b   : > { %v626_v40 = vadd.f32 %v625_v37, %v364_v38  ;;  %v664_v41 = vmul.f32 %v364_v38, %v364_v38  ;;  %v694_v42 = vadd.f32 %v693_v35, %v663_v34  ;;  %v1047_v43 = vpop.f32.mrb[10].mxu0  ;;  %v1243_v44 = vpop.f32.mrb[9].mxu1  ;;  %v673_v34 = vmul.f32 %v1217_v5, %v1217_v5 }
 0x10c   : > { %v929_v45 = vpack.c.bf16 %v1047_v43, %v1046_v36  ;;  %v367_v46 = vpop.f32.mrb[11].mxu0  ;;  %v1245_v47 = vpop.f32.mrb[10].mxu1  ;;  %v667_v59 = vmul.f32 %v1047_v43, %v1047_v43  ;;  %v674_v35 = vmul.f32 %v1204_v58, %v1204_v58 }
 0x10d   : > { %v695_v48 = vadd.f32 %v694_v42, %v664_v41  ;;  %v924_v49 = vpack.c.bf16 %v367_v46, %v364_v38  ;;  %v627_v50 = vadd.f32 %v626_v40, %v367_v46  ;;  %v665_v51 = vmul.f32 %v367_v46, %v367_v46  ;;  %v1247_v52 = vpop.f32.mrb[11].mxu1 }
 0x10e   : > { %985 = vst [vmem:[%s1209_s11 + $0x28] sm:$0xff] %v929_v45   ;;  %v969_v53 = vpack.c.bf16 %v1245_v47, %v1241_v39  ;;  %v964_v54 = vpack.c.bf16 %v1247_v52, %v1243_v44  ;;  %v675_v38 = vmul.f32 %v1213_v0, %v1213_v0  ;;  %v677_v46 = vmul.f32 %v1231_v28, %v1231_v28 }
 0x10f   : > { %984 = vst [vmem:[%s1209_s11 + $0x20] sm:$0xff] %v924_v49   ;;  %v628_v56 = vadd.f32 %v1046_v36, %v627_v50  ;;  %v696_v57 = vadd.f32 %v695_v48, %v665_v51 }
 0x110   : > { %993 = vst [vmem:[%s1209_s11 + $0x68] sm:$0xff] %v969_v53   ;;  %992 = vst [vmem:[%s1209_s11 + $0x60] sm:$0xff] %v964_v54  }
 0x111   : > { %v697_v61 = vadd.f32 %v696_v57, %v666_v55  ;;  %v1050_v62 = vpop.f32.mrb[12].mxu0  ;;  %v629_v63 = vadd.f32 %v1047_v43, %v628_v56  ;;  %v681_v56 = vmul.f32 %v1247_v52, %v1247_v52 }
 0x112   : > { %v380_v1 = vpop.f32.mrb[13].mxu0  ;;  %v1257_v2 = vpop.f32.mrb[12].mxu1  ;;  %v670_v21 = vmul.f32 %v1050_v62, %v1050_v62 }
 0x113   : > { %v630_v3 = vadd.f32 %v629_v63, %v380_v1  ;;  %v668_v4 = vmul.f32 %v380_v1, %v380_v1  ;;  %v698_v6 = vadd.f32 %v697_v61, %v667_v59  ;;  %v1051_v7 = vpop.f32.mrb[14].mxu0  ;;  %v444_v8 = vpop.f32.mrb[13].mxu1 }
 0x114   : > { %v939_v9 = vpack.c.bf16 %v1051_v7, %v1050_v62  ;;  %v383_v10 = vpop.f32.mrb[15].mxu0  ;;  %v1259_v11 = vpop.f32.mrb[14].mxu1  ;;  %v671_v25 = vmul.f32 %v1051_v7, %v1051_v7 }
 0x115   : > { %v699_v12 = vadd.f32 %v698_v6, %v668_v4  ;;  %v934_v13 = vpack.c.bf16 %v383_v10, %v380_v1  ;;  %v631_v14 = vadd.f32 %v630_v3, %v383_v10  ;;  %v669_v16 = vmul.f32 %v383_v10, %v383_v10  ;;  %v447_v17 = vpop.f32.mrb[15].mxu1 }
 0x116   : > { %987 = vst [vmem:[%s1209_s11 + $0x38] sm:$0xff] %v939_v9   ;;  %v979_v18 = vpack.c.bf16 %v1259_v11, %v1257_v2  ;;  %v974_v19 = vpack.c.bf16 %v447_v17, %v444_v8  ;;  %v686_v6 = vmul.f32 %v1257_v2, %v1257_v2  ;;  %v687_v9 = vmul.f32 %v1259_v11, %v1259_v11 }
 0x117   : > { %986 = vst [vmem:[%s1209_s11 + $0x30] sm:$0xff] %v934_v13   ;;  %v632_v22 = vadd.f32 %v1050_v62, %v631_v14  ;;  %v700_v24 = vadd.f32 %v699_v12, %v669_v16  ;;  %v684_v62 = vmul.f32 %v444_v8, %v444_v8 }
 0x118   : > { %995 = vst [vmem:[%s1209_s11 + $0x78] sm:$0xff] %v979_v18   ;;  %994 = vst [vmem:[%s1209_s11 + $0x70] sm:$0xff] %v974_v19  }
 0x119   : > { %v701_v26 = vadd.f32 %v700_v24, %v670_v21  ;;  %v633_v27 = vadd.f32 %v1051_v7, %v632_v22 }
 0x11b   : > { %v634_v30 = vadd.f32 %v633_v27, %v1211_v60  ;;  %v702_v31 = vadd.f32 %v701_v26, %v671_v25  ;;  %v676_v60 = vmul.f32 %v1227_v20, %v1227_v20 }
 0x11d   : > { %v703_v32 = vadd.f32 %v702_v31, %v672_v29  ;;  %v635_v33 = vadd.f32 %v634_v30, %v1217_v5 }
 0x11f   : > { %v636_v36 = vadd.f32 %v1204_v58, %v635_v33  ;;  %v704_v37 = vadd.f32 %v703_v32, %v673_v34  ;;  %v678_v58 = vmul.f32 %v1225_v15, %v1225_v15 }
 0x121   : > { %v705_v40 = vadd.f32 %v704_v37, %v674_v35  ;;  %v637_v41 = vadd.f32 %v1213_v0, %v636_v36  ;;  %v679_v0 = vmul.f32 %v1229_v23, %v1229_v23 }
 0x123   : > { %v638_v42 = vadd.f32 %v637_v41, %v1227_v20  ;;  %v706_v43 = vadd.f32 %v705_v40, %v675_v38  ;;  %v680_v20 = vmul.f32 %v1243_v44, %v1243_v44 }
 0x125   : > { %v707_v45 = vadd.f32 %v706_v43, %v676_v60  ;;  %v639_v5 = vadd.f32 %v638_v42, %v1231_v28 }
 0x127   : > { %v640_v48 = vadd.f32 %v1225_v15, %v639_v5  ;;  %v708_v49 = vadd.f32 %v707_v45, %v677_v46  ;;  %v682_v15 = vmul.f32 %v1241_v39, %v1241_v39 }
 0x129   : > { %v709_v50 = vadd.f32 %v708_v49, %v678_v58  ;;  %v641_v51 = vadd.f32 %v1229_v23, %v640_v48  ;;  %v683_v23 = vmul.f32 %v1245_v47, %v1245_v47 }
 0x12b   : > { %v642_v53 = vadd.f32 %v641_v51, %v1243_v44  ;;  %v710_v54 = vadd.f32 %v709_v50, %v679_v0 }
 0x12d   : > { %v711_v55 = vadd.f32 %v710_v54, %v680_v20  ;;  %v643_v28 = vadd.f32 %v642_v53, %v1247_v52  ;;  %v685_v52 = vmul.f32 %v447_v17, %v447_v17 }
 0x12f   : > { %v644_v57 = vadd.f32 %v1241_v39, %v643_v28  ;;  %v712_v59 = vadd.f32 %v711_v55, %v681_v56 }
 0x131   : > { %v713_v61 = vadd.f32 %v712_v59, %v682_v15  ;;  %v645_v44 = vadd.f32 %v1245_v47, %v644_v57 }
 0x133   : > { %v646_v63 = vadd.f32 %v645_v44, %v444_v8  ;;  %v714_v1 = vadd.f32 %v713_v61, %v683_v23 }
 0x135   : > { %v715_v3 = vadd.f32 %v714_v1, %v684_v62  ;;  %v647_v4 = vadd.f32 %v646_v63, %v447_v17 }
 0x137   : > { %v648_v39 = vadd.f32 %v1257_v2, %v647_v4  ;;  %v716_v7 = vadd.f32 %v715_v3, %v685_v52 }
 0x139   : > { %v649_v10 = vadd.f32 %v1259_v11, %v648_v39  ;;  %v717_v12 = vadd.f32 %v716_v7, %v686_v6 }
 0x13b   : > { %v650_v47 = vrot.slane %v649_v10, 4  ;;  %v718_v13 = vadd.f32 %v717_v12, %v687_v9 }
 0x13d   : > { %v651_v8 = vadd.f32 %v650_v47, %v649_v10  ;;  %v719_v14 = vrot.slane %v718_v13, 4 }
 0x13f   : > { %v652_v16 = vrot.slane %v651_v8, 2  ;;  %v720_v18 = vadd.f32 %v719_v14, %v718_v13 }
 0x141   : > { %v653_v17 = vadd.f32 %v652_v16, %v651_v8  ;;  %v721_v19 = vrot.slane %v720_v18, 2 }
 0x143   : > { %v654_v21 = vrot.slane %v653_v17, 1  ;;  %v722_v22 = vadd.f32 %v721_v19, %v720_v18 }
 0x145   : > { %v723_v2 = vrot.slane %v722_v22, 1  ;;  %v655_v24 = vadd.f32 %v654_v21, %v653_v17 }
 0x147   : > { %v724_v25 = vadd.f32 %v723_v2, %v722_v22 }
 0x149   : > { %v726_v11 = vsel %vm725_vm0, %v655_v24, %v724_v25 }
 0x14a   : > { %v728_v26 = vsel %vm727_vm1, %v726_v11, 0.0 }
 0x14b   : > { %729 = vst [vmem:[%s184_s17] sm:$0xff] %v728_v26 }
 0x14c PF: > { %s14_s12 = sadd.s32 1, %s1106_s12  }
 0x14d   : > { %p11_p5 = scmp.ge.s32.totalorder %s14_s12, 4  }
 0x14f   :  { %13 = sbr.rel (!%p11_p5) target bundleno = 1 (0x1), region = 70 }

// kernel: bottleneck_forward.7
= control target key start
LH: loop header
LB: loop body
LE: loop exit
PB: predicated region body
PF: predicated region fallthrough
CT: control target
= control target key end

     0   :  { %s696_s15 = smov 0   ;;  %s884_s0 = inlined_call_operand.vmem [shape: bf16[512,128], index: 0, kind: input, shape index: {}]   ;;  %s885_s1 = inlined_call_operand.vmem [shape: f32[512,128], index: 1, kind: input, shape index: {}]   ;;  %s886_s2 = inlined_call_operand.vmem [shape: f32[1,128], index: 2, kind: input, shape index: {}]   ;;  %s887_s3 = inlined_call_operand.vmem [shape: f32[1,128], index: 3, kind: input, shape index: {}]   ;;  %s888_s4 = inlined_call_operand.vmem [shape: f32[512,128], index: 4, kind: output, shape index: {}]  }
   0x1 LB: > { %s561_s16 = sadd.s32 4294967295, %s669_s15   ;;  %p565_p0 = scmp.ge.s32.totalorder %s669_s15, 1  ;;  %s669_s15 = sphi %s696_s15, %s14_s15  }
   0x2   : > { %p174_p1 = scmp.lt.s32.totalorder %s669_s15, 3 }
   0x4   : > { %p175_p2 = pnand %p565_p0, %p174_p1 }
   0x5   : > { %s566_s17 = sshll.u32 (!%p175_p2), %s561_s16, 5  ;;  %v717_v1 = vld [vmem:[%s886_s2] ss:$0 sm:$0xff] (!%p175_p2) }
   0x6   : > { %178 = sbr.rel (%p175_p2) target bundleno = 60 (0x3c), region = 36  ;;  %p206_p3 = scmp.lt.s32.totalorder (!%p175_p2), %s566_s17, 63  ;;  %v730_v5 = vld [vmem:[%s887_s3] ss:$0 sm:$0xff] (!%p175_p2) }
   0xd   : > { %s890_s17 = smov (!%p206_p3, %s566_s17), 63 }
   0xe   : > { %s567_s18 = sshll.u32 %s890_s17, 2  ;;  %s569_s19 = sshll.u32 %s890_s17, 3 }
   0xf   : > { %s711_s22 = scalar_lea.vmem %s884_s0, %s567_s18  ;;  %s724_s27 = scalar_lea.vmem %s885_s1, %s569_s19 }
  0x10   : > { %v577_v0 = vld [vmem:[%s711_s22] sm:$0xff]   ;;  %v640_v4 = vld [vmem:[%s711_s22 + $0x8] sm:$0xff]   ;;  %v641_v8 = vld [vmem:[%s711_s22 + $0x10] sm:$0xff]   ;;  %s761_s6 = scalar_lea.vmem %s888_s4, %s569_s19 }
  0x11   : > { %v578_v2 = vunpack.c.l.bf16 %v577_v0  ;;  %v579_v3 = vunpack.c.h.bf16 %v577_v0  ;;  %v582_v6 = vunpack.c.l.bf16 %v640_v4  ;;  %v583_v7 = vunpack.c.h.bf16 %v640_v4  ;;  %v642_v13 = vld [vmem:[%s711_s22 + $0x18] sm:$0xff]   ;;  %v365_v14 = vld [vmem:[%s724_s27] sm:$0xff]  ;;  %v366_v15 = vld [vmem:[%s724_s27 + $0x8] sm:$0xff] }
  0x12   : > { %v586_v11 = vunpack.c.l.bf16 %v641_v8  ;;  %v587_v12 = vunpack.c.h.bf16 %v641_v8  ;;  %v590_v18 = vunpack.c.l.bf16 %v642_v13  ;;  %v591_v19 = vunpack.c.h.bf16 %v642_v13  ;;  %v367_v22 = vld [vmem:[%s724_s27 + $0x10] sm:$0xff]  ;;  %v368_v23 = vld [vmem:[%s724_s27 + $0x18] sm:$0xff]  ;;  %v369_v28 = vld [vmem:[%s724_s27 + $0x20] sm:$0xff] }
  0x13   : > { %v294_v9 = vmul.f32 %v578_v2, %v717_v1  ;;  %v295_v10 = vmul.f32 %v579_v3, %v717_v1  ;;  %v296_v16 = vmul.f32 %v582_v6, %v717_v1  ;;  %v297_v17 = vmul.f32 %v583_v7, %v717_v1  ;;  %v370_v29 = vld [vmem:[%s724_s27 + $0x28] sm:$0xff]  ;;  %v371_v36 = vld [vmem:[%s724_s27 + $0x30] sm:$0xff]  ;;  %v372_v37 = vld [vmem:[%s724_s27 + $0x38] sm:$0xff] }
  0x14   : > { %v298_v24 = vmul.f32 %v586_v11, %v717_v1  ;;  %v299_v25 = vmul.f32 %v587_v12, %v717_v1  ;;  %v300_v30 = vmul.f32 %v590_v18, %v717_v1  ;;  %v301_v31 = vmul.f32 %v591_v19, %v717_v1  ;;  %v643_v42 = vld [vmem:[%s711_s22 + $0x20] sm:$0xff]   ;;  %v644_v47 = vld [vmem:[%s711_s22 + $0x28] sm:$0xff]   ;;  %v645_v52 = vld [vmem:[%s711_s22 + $0x30] sm:$0xff]  }
  0x15   : > { %v333_v20 = vadd.f32 %v730_v5, %v294_v9  ;;  %v334_v21 = vadd.f32 %v730_v5, %v295_v10  ;;  %v335_v26 = vadd.f32 %v730_v5, %v296_v16  ;;  %v336_v27 = vadd.f32 %v730_v5, %v297_v17  ;;  %v646_v57 = vld [vmem:[%s711_s22 + $0x38] sm:$0xff]   ;;  %v373_v3 = vld [vmem:[%s724_s27 + $0x40] sm:$0xff]  ;;  %v374_v4 = vld [vmem:[%s724_s27 + $0x48] sm:$0xff] }
  0x16   : > { %v337_v34 = vadd.f32 %v730_v5, %v298_v24  ;;  %v338_v35 = vadd.f32 %v730_v5, %v299_v25  ;;  %v339_v40 = vadd.f32 %v730_v5, %v300_v30  ;;  %v340_v41 = vadd.f32 %v730_v5, %v301_v31  ;;  %v375_v12 = vld [vmem:[%s724_s27 + $0x50] sm:$0xff]  ;;  %v376_v13 = vld [vmem:[%s724_s27 + $0x58] sm:$0xff]  ;;  %v377_v18 = vld [vmem:[%s724_s27 + $0x60] sm:$0xff] }
  0x17   : > { %v397_v32 = vadd.f32 %v365_v14, %v333_v20  ;;  %v398_v33 = vadd.f32 %v366_v15, %v334_v21  ;;  %v399_v38 = vadd.f32 %v367_v22, %v335_v26  ;;  %v400_v39 = vadd.f32 %v368_v23, %v336_v27  ;;  %v378_v19 = vld [vmem:[%s724_s27 + $0x68] sm:$0xff]  ;;  %v379_v26 = vld [vmem:[%s724_s27 + $0x70] sm:$0xff]  ;;  %v380_v27 = vld [vmem:[%s724_s27 + $0x78] sm:$0xff] }
  0x18   : > { %v401_v45 = vadd.f32 %v369_v28, %v337_v34  ;;  %v402_v46 = vadd.f32 %v370_v29, %v338_v35  ;;  %v403_v50 = vadd.f32 %v371_v36, %v339_v40  ;;  %v404_v51 = vadd.f32 %v372_v37, %v340_v41  ;;  %v648_v37 = vld [vmem:[%s711_s22 + $0x48] sm:$0xff]  }
  0x19   : > { %v429_v43 = vmax.f32 %v397_v32, 0.0  ;;  %v430_v44 = vmax.f32 %v398_v33, 0.0  ;;  %v431_v48 = vmax.f32 %v399_v38, 0.0  ;;  %v432_v49 = vmax.f32 %v400_v39, 0.0  ;;  %v647_v32 = vld [vmem:[%s711_s22 + $0x40] sm:$0xff]  }
  0x1a   : > { %v433_v53 = vmax.f32 %v401_v45, 0.0  ;;  %v434_v54 = vmax.f32 %v402_v46, 0.0  ;;  %v594_v55 = vunpack.c.l.bf16 %v643_v42  ;;  %v595_v56 = vunpack.c.h.bf16 %v643_v42  ;;  %v649_v42 = vld [vmem:[%s711_s22 + $0x50] sm:$0xff]  }
  0x1b   : > { %461 = vst [vmem:[%s761_s6] sm:$0xff] %v429_v43  ;;  %462 = vst [vmem:[%s761_s6 + $0x8] sm:$0xff] %v430_v44  ;;  %v435_v58 = vmax.f32 %v403_v50, 0.0  ;;  %v436_v59 = vmax.f32 %v404_v51, 0.0  ;;  %v598_v60 = vunpack.c.l.bf16 %v644_v47  ;;  %v599_v61 = vunpack.c.h.bf16 %v644_v47  ;;  %v650_v47 = vld [vmem:[%s711_s22 + $0x58] sm:$0xff]  }
  0x1c   : > { %463 = vst [vmem:[%s761_s6 + $0x10] sm:$0xff] %v431_v48  ;;  %464 = vst [vmem:[%s761_s6 + $0x18] sm:$0xff] %v432_v49  ;;  %v302_v62 = vmul.f32 %v594_v55, %v717_v1  ;;  %v303_v63 = vmul.f32 %v595_v56, %v717_v1  ;;  %v602_v0 = vunpack.c.l.bf16 %v645_v52  ;;  %v603_v2 = vunpack.c.h.bf16 %v645_v52  ;;  %v381_v56 = vld [vmem:[%s724_s27 + $0x80] sm:$0xff] }
  0x1d   : > { %465 = vst [vmem:[%s761_s6 + $0x20] sm:$0xff] %v433_v53  ;;  %466 = vst [vmem:[%s761_s6 + $0x28] sm:$0xff] %v434_v54  ;;  %v304_v6 = vmul.f32 %v598_v60, %v717_v1  ;;  %v305_v7 = vmul.f32 %v599_v61, %v717_v1  ;;  %v606_v8 = vunpack.c.l.bf16 %v646_v57  ;;  %v607_v9 = vunpack.c.h.bf16 %v646_v57  ;;  %v382_v57 = vld [vmem:[%s724_s27 + $0x88] sm:$0xff] }
  0x1e   : > { %467 = vst [vmem:[%s761_s6 + $0x30] sm:$0xff] %v435_v58  ;;  %468 = vst [vmem:[%s761_s6 + $0x38] sm:$0xff] %v436_v59  ;;  %v341_v10 = vadd.f32 %v730_v5, %v302_v62  ;;  %v342_v11 = vadd.f32 %v730_v5, %v303_v63  ;;  %v306_v14 = vmul.f32 %v602_v0, %v717_v1  ;;  %v610_v45 = vunpack.c.l.bf16 %v647_v32  ;;  %v383_v0 = vld [vmem:[%s724_s27 + $0x90] sm:$0xff] }
  0x1f   : > { %v307_v15 = vmul.f32 %v603_v2, %v717_v1  ;;  %v343_v16 = vadd.f32 %v730_v5, %v304_v6  ;;  %v344_v17 = vadd.f32 %v730_v5, %v305_v7  ;;  %v308_v20 = vmul.f32 %v606_v8, %v717_v1  ;;  %v384_v2 = vld [vmem:[%s724_s27 + $0x98] sm:$0xff]  ;;  %v385_v8 = vld [vmem:[%s724_s27 + $0xa0] sm:$0xff] }
  0x20   : > { %v309_v21 = vmul.f32 %v607_v9, %v717_v1  ;;  %v405_v22 = vadd.f32 %v373_v3, %v341_v10  ;;  %v406_v23 = vadd.f32 %v374_v4, %v342_v11  ;;  %v345_v24 = vadd.f32 %v730_v5, %v306_v14  ;;  %v386_v9 = vld [vmem:[%s724_s27 + $0xa8] sm:$0xff] }
  0x21   : > { %v346_v25 = vadd.f32 %v730_v5, %v307_v15  ;;  %v407_v28 = vadd.f32 %v375_v12, %v343_v16  ;;  %v408_v29 = vadd.f32 %v376_v13, %v344_v17  ;;  %v347_v30 = vadd.f32 %v730_v5, %v308_v20  ;;  %v387_v16 = vld [vmem:[%s724_s27 + $0xb0] sm:$0xff]  ;;  %v388_v17 = vld [vmem:[%s724_s27 + $0xb8] sm:$0xff] }
  0x22   : > { %v348_v31 = vadd.f32 %v730_v5, %v309_v21  ;;  %v437_v33 = vmax.f32 %v405_v22, 0.0  ;;  %v438_v34 = vmax.f32 %v406_v23, 0.0  ;;  %v409_v35 = vadd.f32 %v377_v18, %v345_v24  ;;  %v651_v22 = vld [vmem:[%s711_s22 + $0x60] sm:$0xff]  }
  0x23   : > { %v410_v36 = vadd.f32 %v378_v19, %v346_v25  ;;  %v439_v38 = vmax.f32 %v407_v28, 0.0  ;;  %v440_v39 = vmax.f32 %v408_v29, 0.0  ;;  %v411_v40 = vadd.f32 %v379_v26, %v347_v30 }
  0x24   : > { %v412_v41 = vadd.f32 %v380_v27, %v348_v31  ;;  %469 = vst [vmem:[%s761_s6 + $0x40] sm:$0xff] %v437_v33  ;;  %470 = vst [vmem:[%s761_s6 + $0x48] sm:$0xff] %v438_v34  ;;  %v441_v43 = vmax.f32 %v409_v35, 0.0  ;;  %v611_v46 = vunpack.c.h.bf16 %v647_v32  ;;  %v614_v50 = vunpack.c.l.bf16 %v648_v37  ;;  %v652_v27 = vld [vmem:[%s711_s22 + $0x68] sm:$0xff]   ;;  %v653_v32 = vld [vmem:[%s711_s22 + $0x70] sm:$0xff]  }
  0x25   : > { %v442_v44 = vmax.f32 %v410_v36, 0.0  ;;  %471 = vst [vmem:[%s761_s6 + $0x50] sm:$0xff] %v439_v38  ;;  %472 = vst [vmem:[%s761_s6 + $0x58] sm:$0xff] %v440_v39  ;;  %v443_v48 = vmax.f32 %v411_v40, 0.0  ;;  %v615_v51 = vunpack.c.h.bf16 %v648_v37  ;;  %v310_v52 = vmul.f32 %v610_v45, %v717_v1  ;;  %v654_v37 = vld [vmem:[%s711_s22 + $0x78] sm:$0xff]  }
  0x26   : > { %v444_v49 = vmax.f32 %v412_v41, 0.0  ;;  %473 = vst [vmem:[%s761_s6 + $0x60] sm:$0xff] %v441_v43  ;;  %v311_v53 = vmul.f32 %v611_v46, %v717_v1  ;;  %v618_v54 = vunpack.c.l.bf16 %v649_v42  ;;  %v619_v55 = vunpack.c.h.bf16 %v649_v42  ;;  %v389_v46 = vld [vmem:[%s724_s27 + $0xc0] sm:$0xff] }
  0x27   : > { %474 = vst [vmem:[%s761_s6 + $0x68] sm:$0xff] %v442_v44  ;;  %475 = vst [vmem:[%s761_s6 + $0x70] sm:$0xff] %v443_v48  ;;  %v312_v58 = vmul.f32 %v614_v50, %v717_v1  ;;  %v313_v59 = vmul.f32 %v615_v51, %v717_v1  ;;  %v622_v60 = vunpack.c.l.bf16 %v650_v47  ;;  %v623_v61 = vunpack.c.h.bf16 %v650_v47  ;;  %v390_v47 = vld [vmem:[%s724_s27 + $0xc8] sm:$0xff] }
  0x28   : > { %476 = vst [vmem:[%s761_s6 + $0x78] sm:$0xff] %v444_v49  ;;  %v349_v62 = vadd.f32 %v730_v5, %v310_v52  ;;  %v350_v63 = vadd.f32 %v730_v5, %v311_v53  ;;  %v314_v3 = vmul.f32 %v618_v54, %v717_v1  ;;  %v315_v4 = vmul.f32 %v619_v55, %v717_v1  ;;  %v391_v54 = vld [vmem:[%s724_s27 + $0xd0] sm:$0xff]  ;;  %v392_v55 = vld [vmem:[%s724_s27 + $0xd8] sm:$0xff] }
  0x29   : > { %v351_v6 = vadd.f32 %v730_v5, %v312_v58  ;;  %v352_v7 = vadd.f32 %v730_v5, %v313_v59  ;;  %v316_v10 = vmul.f32 %v622_v60, %v717_v1  ;;  %v317_v11 = vmul.f32 %v623_v61, %v717_v1  ;;  %v393_v60 = vld [vmem:[%s724_s27 + $0xe0] sm:$0xff]  ;;  %v394_v61 = vld [vmem:[%s724_s27 + $0xe8] sm:$0xff] }
  0x2a   : > { %v413_v12 = vadd.f32 %v381_v56, %v349_v62  ;;  %v414_v13 = vadd.f32 %v382_v57, %v350_v63  ;;  %v353_v14 = vadd.f32 %v730_v5, %v314_v3  ;;  %v354_v15 = vadd.f32 %v730_v5, %v315_v4 }
  0x2b   : > { %v415_v18 = vadd.f32 %v383_v0, %v351_v6  ;;  %v416_v19 = vadd.f32 %v384_v2, %v352_v7  ;;  %v355_v20 = vadd.f32 %v730_v5, %v316_v10  ;;  %v356_v21 = vadd.f32 %v730_v5, %v317_v11  ;;  %v395_v6 = vld [vmem:[%s724_s27 + $0xf0] sm:$0xff]  ;;  %v396_v7 = vld [vmem:[%s724_s27 + $0xf8] sm:$0xff] }
  0x2c   : > { %v445_v23 = vmax.f32 %v413_v12, 0.0  ;;  %v446_v24 = vmax.f32 %v414_v13, 0.0  ;;  %v417_v25 = vadd.f32 %v385_v8, %v353_v14  ;;  %v418_v26 = vadd.f32 %v386_v9, %v354_v15 }
  0x2d   : > { %v447_v28 = vmax.f32 %v415_v18, 0.0  ;;  %v448_v29 = vmax.f32 %v416_v19, 0.0  ;;  %v419_v30 = vadd.f32 %v387_v16, %v355_v20  ;;  %v420_v31 = vadd.f32 %v388_v17, %v356_v21 }
  0x2e   : > { %477 = vst [vmem:[%s761_s6 + $0x80] sm:$0xff] %v445_v23  ;;  %478 = vst [vmem:[%s761_s6 + $0x88] sm:$0xff] %v446_v24  ;;  %v449_v33 = vmax.f32 %v417_v25, 0.0  ;;  %v450_v34 = vmax.f32 %v418_v26, 0.0  ;;  %v626_v35 = vunpack.c.l.bf16 %v651_v22  ;;  %v627_v36 = vunpack.c.h.bf16 %v651_v22 }
  0x2f   : > { %479 = vst [vmem:[%s761_s6 + $0x90] sm:$0xff] %v447_v28  ;;  %480 = vst [vmem:[%s761_s6 + $0x98] sm:$0xff] %v448_v29  ;;  %v451_v38 = vmax.f32 %v419_v30, 0.0  ;;  %v452_v39 = vmax.f32 %v420_v31, 0.0  ;;  %v630_v40 = vunpack.c.l.bf16 %v652_v27  ;;  %v631_v41 = vunpack.c.h.bf16 %v652_v27 }
  0x30   : > { %481 = vst [vmem:[%s761_s6 + $0xa0] sm:$0xff] %v449_v33  ;;  %482 = vst [vmem:[%s761_s6 + $0xa8] sm:$0xff] %v450_v34  ;;  %v318_v42 = vmul.f32 %v626_v35, %v717_v1  ;;  %v319_v43 = vmul.f32 %v627_v36, %v717_v1  ;;  %v634_v44 = vunpack.c.l.bf16 %v653_v32  ;;  %v635_v45 = vunpack.c.h.bf16 %v653_v32 }
  0x31   : > { %483 = vst [vmem:[%s761_s6 + $0xb0] sm:$0xff] %v451_v38  ;;  %484 = vst [vmem:[%s761_s6 + $0xb8] sm:$0xff] %v452_v39  ;;  %v320_v48 = vmul.f32 %v630_v40, %v717_v1  ;;  %v321_v49 = vmul.f32 %v631_v41, %v717_v1  ;;  %v638_v50 = vunpack.c.l.bf16 %v654_v37  ;;  %v639_v51 = vunpack.c.h.bf16 %v654_v37 }
  0x32   : > { %v357_v52 = vadd.f32 %v730_v5, %v318_v42  ;;  %v358_v53 = vadd.f32 %v730_v5, %v319_v43  ;;  %v322_v56 = vmul.f32 %v634_v44, %v717_v1  ;;  %v323_v57 = vmul.f32 %v635_v45, %v717_v1 }
  0x33   : > { %v359_v58 = vadd.f32 %v730_v5, %v320_v48  ;;  %v360_v59 = vadd.f32 %v730_v5, %v321_v49  ;;  %v324_v62 = vmul.f32 %v638_v50, %v717_v1  ;;  %v325_v63 = vmul.f32 %v639_v51, %v717_v1 }
  0x34   : > { %v421_v0 = vadd.f32 %v389_v46, %v357_v52  ;;  %v422_v2 = vadd.f32 %v390_v47, %v358_v53  ;;  %v361_v3 = vadd.f32 %v730_v5, %v322_v56  ;;  %v362_v4 = vadd.f32 %v730_v5, %v323_v57 }
  0x35   : > { %v423_v8 = vadd.f32 %v391_v54, %v359_v58  ;;  %v424_v9 = vadd.f32 %v392_v55, %v360_v59  ;;  %v363_v10 = vadd.f32 %v730_v5, %v324_v62  ;;  %v364_v11 = vadd.f32 %v730_v5, %v325_v63 }
  0x36   : > { %v453_v12 = vmax.f32 %v421_v0, 0.0  ;;  %v454_v1 = vmax.f32 %v422_v2, 0.0  ;;  %v425_v13 = vadd.f32 %v393_v60, %v361_v3  ;;  %v426_v14 = vadd.f32 %v394_v61, %v362_v4 }
  0x37   : > { %v455_v15 = vmax.f32 %v423_v8, 0.0  ;;  %v456_v16 = vmax.f32 %v424_v9, 0.0  ;;  %v427_v17 = vadd.f32 %v395_v6, %v363_v10  ;;  %v428_v18 = vadd.f32 %v396_v7, %v364_v11 }
  0x38   : > { %485 = vst [vmem:[%s761_s6 + $0xc0] sm:$0xff] %v453_v12  ;;  %486 = vst [vmem:[%s761_s6 + $0xc8] sm:$0xff] %v454_v1  ;;  %v457_v19 = vmax.f32 %v425_v13, 0.0  ;;  %v458_v20 = vmax.f32 %v426_v14, 0.0 }
  0x39   : > { %487 = vst [vmem:[%s761_s6 + $0xd0] sm:$0xff] %v455_v15  ;;  %488 = vst [vmem:[%s761_s6 + $0xd8] sm:$0xff] %v456_v16  ;;  %v459_v21 = vmax.f32 %v427_v17, 0.0  ;;  %v460_v5 = vmax.f32 %v428_v18, 0.0 }
  0x3a   : > { %489 = vst [vmem:[%s761_s6 + $0xe0] sm:$0xff] %v457_v19  ;;  %490 = vst [vmem:[%s761_s6 + $0xe8] sm:$0xff] %v458_v20 }
  0x3b   : > { %491 = vst [vmem:[%s761_s6 + $0xf0] sm:$0xff] %v459_v21  ;;  %492 = vst [vmem:[%s761_s6 + $0xf8] sm:$0xff] %v460_v5 }
  0x3c PF: > { %s14_s15 = sadd.s32 1, %s669_s15  }
  0x3d   : > { %p11_p4 = scmp.ge.s32.totalorder %s14_s15, 4  }
  0x3f   :  { %13 = sbr.rel (!%p11_p4) target bundleno = 1 (0x1), region = 69 }

// kernel: bottleneck_forward.5
= control target key start
LH: loop header
LB: loop body
LE: loop exit
PB: predicated region body
PF: predicated region fallthrough
CT: control target
= control target key end

     0   :  { %s4693_s18 = smov 0   ;;  %s5948_s0 = inlined_call_operand.vmem [shape: bf16[512,128], index: 0, kind: input, shape index: {}]   ;;  %s5949_s1 = inlined_call_operand.vmem [shape: f32[1,128], index: 1, kind: input, shape index: {}]   ;;  %s5950_s2 = inlined_call_operand.vmem [shape: f32[1,128], index: 2, kind: input, shape index: {}]   ;;  %s5951_s3 = inlined_call_operand.vmem [shape: bf16[3,384,128], index: 3, kind: input, shape index: {}]   ;;  %s5952_s4 = inlined_call_operand.vmem [shape: bf16[512,128], index: 4, kind: output, shape index: {0}]   ;;  %s5953_s5 = inlined_call_operand.vmem [shape: f32[16,128], index: 5, kind: output, shape index: {1}]  }
   0x1 LB: > { %s4699_s19 = sadd.s32 4294967295, %s4661_s18   ;;  %p3588_p0 = scmp.ge.s32.totalorder %s4661_s18, 1  ;;  %s4661_s18 = sphi %s4693_s18, %s16_s18  }
   0x2   : > { %p191_p1 = scmp.lt.s32.totalorder %s4661_s18, 3 }
   0x4   : > { %p192_p2 = pnand %p3588_p0, %p191_p1 }
   0x6   : > { %195 = sbr.rel (%p192_p2) target bundleno = 573 (0x23d), region = 36 }
   0xd   : > { %v4580_v0 = vld [vmem:[%s5951_s3 + $0x40] sm:$0xff]   ;;  %s3589_s22 = sshll.u32 %s4699_s19, 5  ;;  %v414_v1 = vlaneseq  ;;  %v4582_v3 = vld [vmem:[%s5951_s3 + $0x48] sm:$0xff]   ;;  %v4584_v6 = vld [vmem:[%s5951_s3 + $0x50] sm:$0xff]   ;;  %vm993_vm2 = vcmask 1040384   ;;  %vm1249_vm13 = vcmask 1046528  }
   0xe   : > { %v4581_v2 = vld [vmem:[%s5951_s3] sm:$0xff]   ;;  %4004 = vmatprep.subr.bf16.mxu0 %v4580_v0  ;;  %4556 = vmatprep.subr.bf16.mxu1 %v4580_v0  ;;  %p224_p3 = scmp.lt.s32.totalorder %s3589_s22, 63  ;;  %v4583_v4 = vld [vmem:[%s5951_s3 + $0x8] sm:$0xff]   ;;  %v4585_v7 = vld [vmem:[%s5951_s3 + $0x10] sm:$0xff]   ;;  %p235_p4 = scmp.lt.s32.totalorder %s4699_s19, 1 }
   0xf   : > { %4005 = vmatpush3.bf16.msra.mxu0 %v4581_v2  ;;  %4564 = vmatpush3.bf16.msra.mxu1 %v4581_v2  ;;  %v4716_v5 = vshrl.u32 %v414_v1, 7  ;;  %v4586_v9 = vld [vmem:[%s5951_s3 + $0x58] sm:$0xff]   ;;  %v4588_v12 = vld [vmem:[%s5951_s3 + $0x60] sm:$0xff]   ;;  %v4590_v20 = vld [vmem:[%s5951_s3 + $0x68] sm:$0xff]  }
  0x10   : > { %4006 = vmatprep.subr.bf16.mxu0 %v4582_v3  ;;  %4557 = vmatprep.subr.bf16.mxu1 %v4582_v3  ;;  %s6055_s22 = smov (!%p224_p3, %s3589_s22), 63  ;;  %v4587_v11 = vld [vmem:[%s5951_s3 + $0x18] sm:$0xff]   ;;  %v4589_v18 = vld [vmem:[%s5951_s3 + $0x20] sm:$0xff]   ;;  %v4591_v25 = vld [vmem:[%s5951_s3 + $0x28] sm:$0xff]   ;;  %s6057_s19 = smov (!%p235_p4, %s4699_s19), 1 }
  0x11   : > { %v416_v8 = vadd.s32 8, %v4716_v5  ;;  %v446_v10 = vadd.s32 248, %v4716_v5  ;;  %s3590_s12 = sshll.u32 %s6055_s22, 2  ;;  %v438_v15 = vadd.s32 184, %v4716_v5  ;;  %v440_v16 = vadd.s32 200, %v4716_v5  ;;  %v4592_v42 = vld [vmem:[%s5951_s3 + $0x70] sm:$0xff]  }
  0x12   : > { %s4744_s17 = scalar_lea.vmem %s5948_s0, %s3590_s12  ;;  %v4757_v22 = vld [vmem:[%s5949_s1] ss:$0 sm:$0xff]  ;;  %v418_v32 = vadd.s32 24, %v4716_v5  ;;  %v4804_v51 = vadd.s32 216, %v4716_v5  ;;  %v4593_v56 = vld [vmem:[%s5951_s3 + $0x30] sm:$0xff]   ;;  %v4594_v62 = vld [vmem:[%s5951_s3 + $0x78] sm:$0xff]   ;;  %s5842_s9 = scalar_lea.vmem %s5952_s4, %s3590_s12 }
  0x13   : > { %4007 = vmatpush3.bf16.msra.mxu0 %v4583_v4  ;;  %4565 = vmatpush3.bf16.msra.mxu1 %v4583_v4  ;;  %v458_v13 = vand.u32 15, %v416_v8  ;;  %v668_v14 = vand.u32 15, %v446_v10  ;;  %v612_v17 = vand.u32 15, %v438_v15  ;;  %v626_v19 = vand.u32 15, %v440_v16  ;;  %v3831_v21 = vld [vmem:[%s4744_s17] sm:$0xff]   ;;  %v4772_v29 = vld [vmem:[%s4744_s17 + $0x78] sm:$0xff]  }
  0x14   : > { %4008 = vmatprep.subr.bf16.mxu0 %v4584_v6  ;;  %4558 = vmatprep.subr.bf16.mxu1 %v4584_v6  ;;  %v3832_v26 = vunpack.c.l.bf16 %v3831_v21  ;;  %v3833_v27 = vunpack.c.h.bf16 %v3831_v21  ;;  %v3985_v28 = vld [vmem:[%s4744_s17 + $0x60] sm:$0xff]   ;;  %v3984_v30 = vld [vmem:[%s4744_s17 + $0x58] sm:$0xff]   ;;  %v3893_v36 = vunpack.c.h.bf16 %v4772_v29  ;;  %v472_v41 = vand.u32 15, %v418_v32  ;;  %v3974_v50 = vld [vmem:[%s4744_s17 + $0x8] sm:$0xff]   ;;  %s3593_s22 = sshll.u32 %s6057_s19, 3 }
  0x15   : > { %vm4759_vm0 = vcmp.lt.s32.totalorder %v458_v13, 15  ;;  %vm4763_vm1 = vcmp.lt.s32.totalorder %v668_v14, 15  ;;  %vm4775_vm3 = vcmp.lt.s32.totalorder %v612_v17, 15  ;;  %v4783_v33 = vld [vmem:[%s5950_s2] ss:$0 sm:$0xff]  ;;  %v3880_v34 = vunpack.c.l.bf16 %v3985_v28  ;;  %v4595_v3 = vld [vmem:[%s5951_s3 + $0x38] sm:$0xff]   ;;  %s238_s11 = scalar_lea.vmem %s5953_s5, %s3593_s22 }
  0x16   : > { %v3881_v35 = vunpack.c.h.bf16 %v3985_v28  ;;  %v3877_v37 = vunpack.c.h.bf16 %v3984_v30  ;;  %v311_v38 = vmul.f32 %v3832_v26, %v4757_v22  ;;  %v312_v39 = vmul.f32 %v3833_v27, %v4757_v22  ;;  %v4596_v13 = vld [vmem:[%s5951_s3 + $0x80] sm:$0xff]   ;;  %v3986_v14 = vld [vmem:[%s4744_s17 + $0x68] sm:$0xff]   ;;  %v3975_v30 = vld [vmem:[%s4744_s17 + $0x10] sm:$0xff]  }
  0x17   : > { %4009 = vmatpush3.bf16.msra.mxu0 %v4585_v7  ;;  %4566 = vmatpush3.bf16.msra.mxu1 %v4585_v7  ;;  %vm4788_vm4 = vcmp.lt.s32.totalorder %v626_v19, 15  ;;  %v335_v43 = vmul.f32 %v3880_v34, %v4757_v22  ;;  %v342_v45 = vmul.f32 %v3893_v36, %v4757_v22  ;;  %v3892_v46 = vunpack.c.l.bf16 %v4772_v29  ;;  %v4597_v21 = vld [vmem:[%s5951_s3 + $0x200] sm:$0xff]   ;;  %v4598_v40 = vld [vmem:[%s5951_s3 + $0x88] sm:$0xff]  }
  0x18   : > { %4010 = vmatprep.subr.bf16.mxu0 %v4586_v9  ;;  %4559 = vmatprep.subr.bf16.mxu1 %v4586_v9  ;;  %v336_v44 = vmul.f32 %v3881_v35, %v4757_v22  ;;  %v350_v47 = vadd.f32 %v4783_v33, %v311_v38  ;;  %v351_v48 = vadd.f32 %v4783_v33, %v312_v39  ;;  %v3836_v55 = vunpack.c.l.bf16 %v3974_v50  ;;  %v4603_v29 = vld [vmem:[%s5951_s3 + $0xa8] sm:$0xff]  }
  0x19   : > { %v334_v49 = vmul.f32 %v3877_v37, %v4757_v22  ;;  %v374_v52 = vadd.f32 %v4783_v33, %v335_v43  ;;  %v381_v54 = vadd.f32 %v4783_v33, %v342_v45  ;;  %v3837_v60 = vunpack.c.h.bf16 %v3974_v50 }
  0x1a   : > { %v375_v53 = vadd.f32 %v4783_v33, %v336_v44  ;;  %v4812_v57 = vmax.f32 %v350_v47, 0.0  ;;  %v4814_v58 = vmax.f32 %v351_v48, 0.0  ;;  %vm4817_vm5 = vcmp.lt.s32.totalorder %v472_v41, 15 }
  0x1b   : > { %4011 = vmatpush3.bf16.msra.mxu0 %v4587_v11  ;;  %4567 = vmatpush3.bf16.msra.mxu1 %v4587_v11  ;;  %v373_v59 = vadd.f32 %v4783_v33, %v334_v49  ;;  %v4824_v63 = vmax.f32 %v374_v52, 0.0  ;;  %v4828_v1 = vmax.f32 %v381_v54, 0.0  ;;  %v313_v2 = vmul.f32 %v3836_v55, %v4757_v22  ;;  %v4601_v49 = vld [vmem:[%s5951_s3 + $0x208] sm:$0xff]  }
  0x1c   : > { %4012 = vmatprep.subr.bf16.mxu0 %v4588_v12  ;;  %4560 = vmatprep.subr.bf16.mxu1 %v4588_v12  ;;  %v4826_v0 = vmax.f32 %v375_v53, 0.0  ;;  %v4836_v4 = vpack.c.bf16 %v4814_v58, %v4812_v57  ;;  %v928_v6 = vsel %vm4759_vm0, %v4814_v58, 0.0  ;;  %v994_v7 = vrot.slane %v4812_v57, 7 }
  0x1d   : > { %v4842_v8 = vmax.f32 %v373_v59, 0.0  ;;  %v958_v10 = vsel %vm4763_vm1, %v4828_v1, 0.0  ;;  %v995_v11 = vrot.slane %v928_v6, 7  ;;  %v1041_v17 = vrot.slane %v4824_v63, 7 }
  0x1e   : > { %v4846_v9 = vpack.c.bf16 %v4826_v0, %v4824_v63  ;;  %v952_v12 = vsel %vm4788_vm4, %v4826_v0, 0.0  ;;  %v4858_v15 = vrot.slane %v958_v10, 7  ;;  %v314_v23 = vmul.f32 %v3837_v60, %v4757_v22  ;;  %1619 = vmatprep.mubr.bf16.mxu0 %v4836_v4 }
  0x1f   : > { %4013 = vmatpush3.bf16.msra.mxu0 %v4589_v18  ;;  %4568 = vmatpush3.bf16.msra.mxu1 %v4589_v18  ;;  %v950_v16 = vsel %vm4775_vm3, %v4842_v8, 0.0  ;;  %v4864_v18 = vrot.slane %v952_v12, 7  ;;  %v996_v19 = vsel %vm993_vm2, %v994_v7, %v995_v11  ;;  %v352_v24 = vadd.f32 %v4783_v33, %v313_v2  ;;  %v4599_v2 = vld [vmem:[%s5951_s3 + $0x90] sm:$0xff]  }
  0x20   : > { %4014 = vmatprep.subr.bf16.mxu0 %v4590_v20  ;;  %4561 = vmatprep.subr.bf16.mxu1 %v4590_v20  ;;  %5986 = vst [vmem:[#allocation2_spill] sm:$0xff] %v4846_v9  ;;  %v4867_v20 = vrot.slane %v950_v16, 7  ;;  %v3884_v27 = vunpack.c.l.bf16 %v3986_v14  ;;  %v3885_v28 = vunpack.c.h.bf16 %v3986_v14  ;;  %v353_v34 = vadd.f32 %v4783_v33, %v314_v23  ;;  %v4605_v14 = vld [vmem:[%s5951_s3 + $0x210] sm:$0xff]  }
  0x21   : > { %1715 = vmatprep.mubr.bf16.mxu1 %v4846_v9  ;;  %v1044_v26 = vsel %vm993_vm2, %v1041_v17, %v4864_v18  ;;  %v4886_v35 = vmax.f32 %v352_v24, 0.0  ;;  %v640_v39 = vand.u32 15, %v4804_v51  ;;  %v3840_v43 = vunpack.c.l.bf16 %v3975_v30  ;;  %v3987_v51 = vld [vmem:[%s4744_s17 + $0x70] sm:$0xff]  }
  0x22   : > { %v1042_v32 = vsel %vm993_vm2, %v4867_v20, %v1041_v17  ;;  %v337_v37 = vmul.f32 %v3884_v27, %v4757_v22  ;;  %v338_v38 = vmul.f32 %v3885_v28, %v4757_v22  ;;  %v4896_v41 = vmax.f32 %v353_v34, 0.0  ;;  %v4600_v28 = vld [vmem:[%s5951_s3 + $0x98] sm:$0xff]  }
  0x23   : > { %4015 = vmatpush3.bf16.msra.mxu0 %v4591_v25  ;;  %4569 = vmatpush3.bf16.msra.mxu1 %v4591_v25  ;;  %v1088_v25 = vsel %vm993_vm2, %v4858_v15, %v994_v7  ;;  %v4888_v36 = vpack.c.bf16 %v1044_v26, %v1042_v32  ;;  %v3841_v44 = vunpack.c.h.bf16 %v3975_v30  ;;  %vm4901_vm6 = vcmp.lt.s32.totalorder %v640_v39, 15 }
  0x24   : > { %4016 = vmatprep.subr.bf16.mxu0 %v4592_v42  ;;  %4562 = vmatprep.subr.bf16.mxu1 %v4592_v42  ;;  %v4881_v31 = vpack.c.bf16 %v996_v19, %v1088_v25  ;;  %v997_v42 = vrot.slane %v4886_v35, 7  ;;  %v376_v45 = vadd.f32 %v4783_v33, %v337_v37  ;;  %v377_v47 = vadd.f32 %v4783_v33, %v338_v38 }
  0x25   : > { %5987 = vst [vmem:[#allocation3_spill] sm:$0xff] %v4888_v36  ;;  %v419_v50 = vadd.s32 32, %v4716_v5  ;;  %v1255_v52 = vrot.slane %v4896_v41, 1  ;;  %v4915_v53 = vpack.c.bf16 %v4896_v41, %v4886_v35  ;;  %v930_v54 = vsel %vm4817_vm5, %v4896_v41, 0.0 }
  0x26   : > { %v998_v55 = vsel %vm993_vm2, %v995_v11, %v997_v42  ;;  %v4923_v59 = vmax.f32 %v377_v47, 0.0  ;;  %v999_v60 = vrot.slane %v930_v54, 7  ;;  %v316_v61 = vmul.f32 %v3841_v44, %v4757_v22  ;;  %v4609_v47 = vld [vmem:[%s5951_s3 + $0x218] sm:$0xff]   ;;  %v4602_v54 = vld [vmem:[%s5951_s3 + $0xa0] sm:$0xff]  }
  0x27   : > { %4017 = vmatpush3.bf16.msra.mxu0 %v4593_v56  ;;  %4570 = vmatpush3.bf16.msra.mxu1 %v4593_v56  ;;  %v4921_v56 = vmax.f32 %v376_v45, 0.0  ;;  %v3888_v6 = vunpack.c.l.bf16 %v3987_v51  ;;  %v3889_v7 = vunpack.c.h.bf16 %v3987_v51  ;;  %v444_v39 = vadd.s32 232, %v4716_v5 }
  0x28   : > { %4018 = vmatprep.subr.bf16.mxu0 %v4594_v62  ;;  %4563 = vmatprep.subr.bf16.mxu1 %v4594_v62  ;;  %v315_v62 = vmul.f32 %v3840_v43, %v4757_v22  ;;  %v1000_v11 = vsel %vm993_vm2, %v997_v42, %v999_v60  ;;  %v954_v12 = vsel %vm4901_vm6, %v4923_v59, 0.0  ;;  %v422_v24 = vadd.s32 56, %v4716_v5 }
  0x29   : > { %v4933_v10 = vpack.c.bf16 %v4923_v59, %v4921_v56  ;;  %v4943_v16 = vpack.c.bf16 %v1000_v11, %v998_v55  ;;  %v1047_v17 = vrot.slane %v954_v12, 7  ;;  %v339_v25 = vmul.f32 %v3888_v6, %v4757_v22 }
  0x2a   : > { %v354_v19 = vadd.f32 %v4783_v33, %v315_v62  ;;  %v340_v26 = vmul.f32 %v3889_v7, %v4757_v22  ;;  %v654_v51 = vand.u32 15, %v444_v39 }
  0x2b   : > { %4019 = vmatpush3.bf16.msra.mxu0 %v4595_v3  ;;  %4571 = vmatpush3.bf16.msra.mxu1 %v4595_v3  ;;  %v479_v3 = vand.u32 15, %v419_v50  ;;  %5990 = vst [vmem:[#allocation4_spill] sm:$0xff] %v4933_v10  ;;  %v378_v37 = vadd.f32 %v4783_v33, %v339_v25 }
  0x2c   : > { %4412 = vmatprep.subr.bf16.mxu1 %v4596_v13  ;;  %4460 = vmatprep.subr.bf16.mxu0 %v4597_v21  ;;  %v386_v30 = vmax.f32 %v354_v19, 0.0  ;;  %v379_v38 = vadd.f32 %v4783_v33, %v340_v26  ;;  %vm860_vm9 = vcmp.lt.s32.totalorder %v654_v51, 15 }
  0x2d   : > { %vm4950_vm7 = vcmp.gt.s32.totalorder %v479_v3, 0  ;;  %v3977_v3 = vld [vmem:[%s4744_s17 + $0x20] sm:$0xff]  }
  0x2e   : > { %1620 = vmatmul.mubr.bf16.vlgmr.msra.gmra.mrb[0].mxu0 %v4881_v31  ;;  %1716 = vmatmul.mubr.bf16.vlgmr.msra.gmra.mrb[0].mxu1 %v4888_v36  ;;  %v1189_v42 = vsel %vm4950_vm7, %v386_v30, 0.0  ;;  %v1001_v45 = vrot.slane %v386_v30, 7  ;;  %v4983_v50 = vmax.f32 %v379_v38, 0.0 }
  0x2f   : > { %4413 = vmatpush3.bf16.msra.mxu1 %v4596_v13  ;;  %4461 = vmatpush3.bf16.msra.mxu0 %v4597_v21  ;;  %v1045_v13 = vrot.slane %v4921_v56, 7  ;;  %v355_v21 = vadd.f32 %v4783_v33, %v316_v61  ;;  %v4979_v48 = vrot.slane %v1189_v42, 1 }
  0x30   : > { %4414 = vmatprep.subr.bf16.mxu1 %v4598_v40  ;;  %1627 = vmatprep.mubr.bf16.mxu0 %v4915_v53  ;;  %v1002_v55 = vsel %vm993_vm2, %v999_v60, %v1001_v45  ;;  %v956_v60 = vsel %vm860_vm9, %v4983_v50, 0.0 }
  0x31   : > { %4462 = vmatprep.subr.bf16.mxu0 %v4601_v49  ;;  %1723 = vmatprep.mubr.bf16.mxu1 %v4933_v10  ;;  %v1046_v23 = vsel %vm993_vm2, %v4864_v18, %v1045_v13  ;;  %v1048_v27 = vsel %vm993_vm2, %v1045_v13, %v1047_v17  ;;  %v4960_v32 = vmax.f32 %v355_v21, 0.0  ;;  %v420_v18 = vadd.s32 40, %v4716_v5  ;;  %v4654_v10 = vld [vmem:[%s4744_s17 + $0x58] sm:$0xff]  }
  0x32   : > { %v4963_v34 = vpack.c.bf16 %v1048_v27, %v1046_v23  ;;  %v1051_v23 = vrot.slane %v956_v60, 7  ;;  %v3876_v36 = vunpack.c.l.bf16 %v4654_v10 }
  0x33   : > { %4415 = vmatpush3.bf16.msra.mxu1 %v4598_v40  ;;  %4463 = vmatpush3.bf16.msra.mxu0 %v4601_v49  ;;  %v3976_v40 = vld [vmem:[%s4744_s17 + $0x18] sm:$0xff]   ;;  %v4973_v43 = vpack.c.bf16 %v4960_v32, %v386_v30  ;;  %v486_v44 = vand.u32 15, %v420_v18  ;;  %v4981_v49 = vmax.f32 %v378_v37, 0.0  ;;  %v3848_v30 = vunpack.c.l.bf16 %v3977_v3 }
  0x34   : > { %4416 = vmatprep.subr.bf16.mxu1 %v4599_v2  ;;  %5993 = vst [vmem:[#allocation5_spill] sm:$0xff] %v4963_v34  ;;  %4464 = vmatprep.subr.bf16.mxu0 %v4605_v14  ;;  %v3844_v62 = vunpack.c.l.bf16 %v3976_v40  ;;  %v3845_v61 = vunpack.c.h.bf16 %v3976_v40  ;;  %v3849_v40 = vunpack.c.h.bf16 %v3977_v3 }
  0x35   : > { %vm836_vm8 = vcmp.lt.s32.totalorder %v486_v44, 15  ;;  %v4993_v6 = vpack.c.bf16 %v4983_v50, %v4981_v49  ;;  %v1049_v11 = vrot.slane %v4981_v49, 7  ;;  %v319_v44 = vmul.f32 %v3848_v30, %v4757_v22 }
  0x36   : > { %1628 = vmatmul.mubr.bf16.gmra.mrb[4].mxu0 %v4943_v16  ;;  %1724 = vmatmul.mubr.bf16.gmra.mrb[4].mxu1 %v4963_v34  ;;  %v932_v7 = vsel %vm836_vm8, %v4960_v32, 0.0  ;;  %v317_v13 = vmul.f32 %v3844_v62, %v4757_v22  ;;  %v318_v19 = vmul.f32 %v3845_v61, %v4757_v22  ;;  %v4604_v61 = vld [vmem:[%s5951_s3 + $0xb0] sm:$0xff]   ;;  %v320_v3 = vmul.f32 %v3849_v40, %v4757_v22 }
  0x37   : > { %4417 = vmatpush3.bf16.msra.mxu1 %v4599_v2  ;;  %1635 = vmatprep.mubr.bf16.mxu0 %v4973_v43  ;;  %5994 = vst [vmem:[#allocation6_spill] sm:$0xff] %v4993_v6  ;;  %v4614_v2 = vld [vmem:[%s5951_s3 + $0x220] sm:$0xff]   ;;  %v1003_v12 = vrot.slane %v932_v7, 7  ;;  %v1050_v21 = vsel %vm993_vm2, %v1047_v17, %v1049_v11  ;;  %v1052_v37 = vsel %vm993_vm2, %v1049_v11, %v1051_v23  ;;  %v500_v17 = vand.u32 15, %v422_v24  ;;  %v4622_v7 = vld [vmem:[%s5951_s3 + $0x230] sm:$0xff]  }
  0x38   : > { %4418 = vmatprep.subr.bf16.mxu1 %v4600_v28  ;;  %4465 = vmatpush3.bf16.msra.mxu0 %v4605_v14  ;;  %v341_v14 = vmul.f32 %v3892_v46, %v4757_v22  ;;  %v356_v26 = vadd.f32 %v4783_v33, %v317_v13  ;;  %v357_v27 = vadd.f32 %v4783_v33, %v318_v19 }
  0x39   : > { %4466 = vmatprep.subr.bf16.mxu0 %v4609_v47  ;;  %1731 = vmatprep.mubr.bf16.mxu1 %v4993_v6  ;;  %v1004_v25 = vsel %vm993_vm2, %v1001_v45, %v1003_v12  ;;  %vm838_vm10 = vcmp.lt.s32.totalorder %v500_v17, 15  ;;  %v417_v45 = vadd.s32 16, %v4716_v5  ;;  %v358_v19 = vadd.f32 %v4783_v33, %v319_v44  ;;  %v3978_v17 = vld [vmem:[%s4744_s17 + $0x28] sm:$0xff]  }
  0x3a   : > { %v5012_v18 = vpack.c.bf16 %v1004_v25, %v1002_v55  ;;  %v380_v46 = vadd.f32 %v4783_v33, %v341_v14  ;;  %v5021_v38 = vmax.f32 %v356_v26, 0.0  ;;  %v5023_v39 = vmax.f32 %v357_v27, 0.0 }
  0x3b   : > { %4419 = vmatpush3.bf16.msra.mxu1 %v4600_v28  ;;  %v5019_v28 = vpack.c.bf16 %v1052_v37, %v1050_v21  ;;  %v359_v14 = vadd.f32 %v4783_v33, %v320_v3  ;;  %v465_v24 = vand.u32 15, %v417_v45  ;;  %v5062_v27 = vmax.f32 %v358_v19, 0.0  ;;  %v4606_v37 = vld [vmem:[%s5951_s3 + $0xb8] sm:$0xff]  }
  0x3c   : > { %4420 = vmatprep.subr.bf16.mxu1 %v4602_v54  ;;  %4467 = vmatpush3.bf16.msra.mxu0 %v4609_v47  ;;  %v5026_v42 = vmax.f32 %v380_v46, 0.0  ;;  %v4617_v47 = vld [vmem:[%s5951_s3 + $0x228] sm:$0xff]   ;;  %v5036_v51 = vpack.c.bf16 %v5023_v39, %v5021_v38  ;;  %v934_v55 = vsel %vm838_vm10, %v5023_v39, 0.0  ;;  %v1005_v62 = vrot.slane %v5021_v38, 7 }
  0x3d   : > { %5995 = vst [vmem:[#allocation7_spill] sm:$0xff] %v5019_v28  ;;  %4468 = vmatprep.subr.bf16.mxu0 %v4614_v2  ;;  %v1007_v60 = vrot.slane %v934_v55, 7  ;;  %v5071_v46 = vmax.f32 %v359_v14, 0.0  ;;  %vm1091_vm12 = vcmp.gt.s32.totalorder %v465_v24, 0  ;;  %v424_v55 = vadd.s32 72, %v4716_v5 }
  0x3e   : > { %1636 = vmatmul.mubr.bf16.gmra.mrb[8].mxu0 %v5012_v18  ;;  %1732 = vmatmul.mubr.bf16.gmra.mrb[8].mxu1 %v5019_v28  ;;  %v5049_v11 = vpack.c.bf16 %v4828_v1, %v5026_v42  ;;  %v1053_v13 = vrot.slane %v5026_v42, 7  ;;  %v1006_v21 = vsel %vm993_vm2, %v1003_v12, %v1005_v62  ;;  %v1187_v44 = vsel %vm1091_vm12, %v4886_v35, 0.0 }
  0x3f   : > { %4421 = vmatpush3.bf16.msra.mxu1 %v4602_v54  ;;  %1643 = vmatprep.mubr.bf16.mxu0 %v5036_v51  ;;  %v451_v54 = vand.u32 15, %v4716_v5  ;;  %v1008_v25 = vsel %vm993_vm2, %v1005_v62, %v1007_v60  ;;  %v5078_v40 = vpack.c.bf16 %v5071_v46, %v5062_v27  ;;  %v3852_v35 = vunpack.c.l.bf16 %v3978_v17 }
  0x40   : > { %5996 = vst [vmem:[#allocation8_spill] sm:$0xff] %v5049_v11  ;;  %4469 = vmatpush3.bf16.msra.mxu0 %v4614_v2  ;;  %4422 = vmatprep.subr.bf16.mxu1 %v4603_v29  ;;  %v1054_v26 = vsel %vm993_vm2, %v1051_v23, %v1053_v13  ;;  %v1055_v2 = vsel %vm993_vm2, %v1053_v13, %v4858_v15  ;;  %v1251_v15 = vrot.slane %v4814_v58, 1  ;;  %v1253_v58 = vrot.slane %v1187_v44, 1 }
  0x41   : > { %1739 = vmatprep.mubr.bf16.mxu1 %v5049_v11  ;;  %4470 = vmatprep.subr.bf16.mxu0 %v4617_v47  ;;  %v5064_v30 = vpack.c.bf16 %v1008_v25, %v1006_v21  ;;  %v5066_v12 = vpack.c.bf16 %v1055_v2, %v1054_v26  ;;  %vm1089_vm11 = vcmp.gt.s32.totalorder %v451_v54, 0  ;;  %v514_v3 = vand.u32 15, %v424_v55 }
  0x42   : > { %v1185_v23 = vsel %vm1089_vm11, %v4812_v57, 0.0  ;;  %v4625_v57 = vld [vmem:[%s5951_s3 + $0x238] sm:$0xff]   ;;  %v3853_v13 = vunpack.c.h.bf16 %v3978_v17  ;;  %v421_v19 = vadd.s32 48, %v4716_v5  ;;  %v1254_v21 = vsel %vm1249_vm13, %v1251_v15, %v1253_v58 }
  0x43   : > { %5997 = vst [vmem:[#allocation9_spill] sm:$0xff] %v5066_v12  ;;  %4423 = vmatpush3.bf16.msra.mxu1 %v4603_v29  ;;  %v5081_v45 = vrot.slane %v1185_v23, 1  ;;  %v1009_v29 = vrot.slane %v5062_v27, 7  ;;  %v1256_v54 = vsel %vm1249_vm13, %v1253_v58, %v1255_v52  ;;  %v321_v24 = vmul.f32 %v3852_v35, %v4757_v22  ;;  %v4629_v23 = vld [vmem:[%s5951_s3 + $0x100] sm:$0xff]  }
  0x44   : > { %4471 = vmatpush3.bf16.msra.mxu0 %v4617_v47  ;;  %4424 = vmatprep.subr.bf16.mxu1 %v4604_v61  ;;  %v1258_v47 = vsel %vm1249_vm13, %v1255_v52, %v4979_v48  ;;  %vm840_vm14 = vcmp.lt.s32.totalorder %v514_v3, 15  ;;  %v322_v2 = vmul.f32 %v3853_v13, %v4757_v22  ;;  %v493_v52 = vand.u32 15, %v421_v19 }
  0x45   : > { %4472 = vmatprep.subr.bf16.mxu0 %v4622_v7  ;;  %v1252_v62 = vsel %vm1249_vm13, %v5081_v45, %v1251_v15  ;;  %v1010_v14 = vsel %vm993_vm2, %v1007_v60, %v1009_v29  ;;  %v5106_v26 = vpack.c.bf16 %v1258_v47, %v1256_v54  ;;  %v936_v60 = vsel %vm840_vm14, %v5071_v46, 0.0 }
  0x46   : > { %1644 = vmatmul.mubr.bf16.gmra.mrb[12].mxu0 %v5064_v30  ;;  %1740 = vmatmul.mubr.bf16.gmra.mrb[12].mxu1 %v5066_v12  ;;  %v5104_v25 = vpack.c.bf16 %v1254_v21, %v1252_v62  ;;  %v360_v41 = vadd.f32 %v4783_v33, %v321_v24  ;;  %v1259_v17 = vrot.slane %v4960_v32, 1  ;;  %v1011_v15 = vrot.slane %v936_v60, 7  ;;  %v3979_v62 = vld [vmem:[%s4744_s17 + $0x30] sm:$0xff]  }
  0x47   : > { %1651 = vmatprep.mubr.bf16.mxu0 %v5078_v40  ;;  %4425 = vmatpush3.bf16.msra.mxu1 %v4604_v61  ;;  %v4607_v61 = vld [vmem:[%s5951_s3 + $0x1c0] sm:$0xff]   ;;  %v361_v44 = vadd.f32 %v4783_v33, %v322_v2  ;;  %v426_v55 = vadd.s32 88, %v4716_v5  ;;  %v423_v58 = vadd.s32 64, %v4716_v5  ;;  %vm1095_vm15 = vcmp.gt.s32.totalorder %v493_v52, 0 }
  0x48   : > { %4426 = vmatprep.subr.bf16.mxu1 %v4606_v37  ;;  %4473 = vmatpush3.bf16.msra.mxu0 %v4622_v7  ;;  %v4608_v7 = vld [vmem:[%s5951_s3 + $0x180] sm:$0xff]   ;;  %v5125_v32 = vmax.f32 %v360_v41, 0.0  ;;  %v1260_v47 = vsel %vm1249_vm13, %v4979_v48, %v1259_v17  ;;  %v1263_v35 = vrot.slane %v5023_v39, 1  ;;  %v1012_v3 = vsel %vm993_vm2, %v1009_v29, %v1011_v15  ;;  %v4611_v29 = vld [vmem:[%s5951_s3 + $0x188] sm:$0xff]  }
  0x49   : > { %4474 = vmatprep.subr.bf16.mxu0 %v4625_v57  ;;  %4428 = vmatprep.mubr.bf16.mxu1 %v5104_v25  ;;  %v5132_v13 = vmax.f32 %v361_v44, 0.0  ;;  %v1191_v19 = vsel %vm1095_vm15, %v5021_v38, 0.0  ;;  %v528_v21 = vand.u32 15, %v426_v55  ;;  %v5138_v54 = vpack.c.bf16 %v1012_v3, %v1010_v14  ;;  %v4612_v14 = vld [vmem:[%s5951_s3 + $0x1d0] sm:$0xff]  }
  0x4a   : > { %v1261_v24 = vrot.slane %v1191_v19, 1  ;;  %v1013_v48 = vrot.slane %v5125_v32, 7  ;;  %v507_v39 = vand.u32 15, %v423_v58  ;;  %v428_v3 = vadd.s32 104, %v4716_v5  ;;  %v4613_v19 = vld [vmem:[%s5951_s3 + $0x190] sm:$0xff]  }
  0x4b   : > { %4427 = vmatpush3.bf16.msra.mxu1 %v4606_v37  ;;  %v4610_v37 = vld [vmem:[%s5951_s3 + $0x1c8] sm:$0xff]   ;;  %v5147_v38 = vpack.c.bf16 %v5132_v13, %v5125_v32  ;;  %vm842_vm0 = vcmp.lt.s32.totalorder %v528_v21, 15 }
  0x4c   : > { %4140 = vmatprep.subr.bf16.mxu1 %v4607_v61  ;;  %4475 = vmatpush3.bf16.msra.mxu0 %v4625_v57  ;;  %v3856_v61 = vunpack.c.l.bf16 %v3979_v62  ;;  %v3857_v57 = vunpack.c.h.bf16 %v3979_v62  ;;  %v1262_v2 = vsel %vm1249_vm13, %v1259_v17, %v1261_v24  ;;  %v938_v60 = vsel %vm842_vm0, %v5132_v13, 0.0 }
  0x4d   : > { %4276 = vmatprep.subr.bf16.mxu0 %v4629_v23  ;;  %v1014_v41 = vsel %vm993_vm2, %v1011_v15, %v1013_v48  ;;  %vm1097_vm1 = vcmp.gt.s32.totalorder %v507_v39, 0  ;;  %v5157_v52 = vpack.c.bf16 %v1262_v2, %v1260_v47  ;;  %v1015_v23 = vrot.slane %v938_v60, 7  ;;  %v4615_v60 = vld [vmem:[%s5951_s3 + $0x1d8] sm:$0xff]  }
  0x4e   : > { %4429 = vmatmul.mubr.bf16.vlgmr.msra.gmra.mrb[16].mxu1 %v5106_v26  ;;  %1652 = vmatmul.mubr.bf16.gmra.mrb[16].mxu0 %v5138_v54  ;;  %v1193_v44 = vsel %vm1097_vm1, %v5062_v27, 0.0  ;;  %v1264_v55 = vsel %vm1249_vm13, %v1261_v24, %v1263_v35  ;;  %v324_v17 = vmul.f32 %v3857_v57, %v4757_v22  ;;  %v425_v62 = vadd.s32 80, %v4716_v5 }
  0x4f   : > { %4141 = vmatpush3.bf16.msra.mxu1 %v4608_v7  ;;  %1659 = vmatprep.mubr.bf16.mxu0 %v5147_v38  ;;  %v1265_v58 = vrot.slane %v1193_v44, 1  ;;  %v323_v7 = vmul.f32 %v3856_v61, %v4757_v22  ;;  %v1016_v15 = vsel %vm993_vm2, %v1013_v48, %v1015_v23  ;;  %v1267_v47 = vrot.slane %v5071_v46, 1  ;;  %v3980_v48 = vld [vmem:[%s4744_s17 + $0x38] sm:$0xff]  }
  0x50   : > { %4142 = vmatprep.subr.bf16.mxu1 %v4610_v37  ;;  %4432 = vmatprep.mubr.bf16.mxu1 %v5157_v52  ;;  %v427_v27 = vadd.s32 96, %v4716_v5  ;;  %v5172_v21 = vpack.c.bf16 %v1016_v15, %v1014_v41  ;;  %v363_v39 = vadd.f32 %v4783_v33, %v324_v17  ;;  %v521_v46 = vand.u32 15, %v425_v62 }
  0x51   : > { %v1266_v37 = vsel %vm1249_vm13, %v1263_v35, %v1265_v58  ;;  %v362_v24 = vadd.f32 %v4783_v33, %v323_v7  ;;  %v1268_v57 = vsel %vm1249_vm13, %v1265_v58, %v1267_v47  ;;  %v542_v2 = vand.u32 15, %v428_v3 }
  0x52   : > { %v5178_v61 = vpack.c.bf16 %v1266_v37, %v1264_v55  ;;  %v5184_v44 = vmax.f32 %v363_v39, 0.0  ;;  %v535_v35 = vand.u32 15, %v427_v27  ;;  %vm1099_vm3 = vcmp.gt.s32.totalorder %v521_v46, 0  ;;  %v4618_v37 = vld [vmem:[%s5951_s3 + $0x1e0] sm:$0xff]  }
  0x53   : > { %4143 = vmatpush3.bf16.msra.mxu1 %v4611_v29  ;;  %v394_v41 = vmax.f32 %v362_v24, 0.0  ;;  %v1271_v29 = vrot.slane %v5132_v13, 1  ;;  %vm844_vm4 = vcmp.lt.s32.totalorder %v542_v2, 15  ;;  %v3860_v55 = vunpack.c.l.bf16 %v3980_v48  ;;  %v4616_v13 = vld [vmem:[%s5951_s3 + $0x198] sm:$0xff]  }
  0x54   : > { %4144 = vmatprep.subr.bf16.mxu1 %v4612_v14  ;;  %v3861_v7 = vunpack.c.h.bf16 %v3980_v48  ;;  %v1195_v58 = vsel %vm1099_vm3, %v5125_v32, 0.0  ;;  %v940_v17 = vsel %vm844_vm4, %v5184_v44, 0.0  ;;  %vm1101_vm5 = vcmp.gt.s32.totalorder %v535_v35, 0  ;;  %v3981_v35 = vld [vmem:[%s4744_s17 + $0x40] sm:$0xff]  }
  0x55   : > { %v5190_v14 = vpack.c.bf16 %v5184_v44, %v394_v41  ;;  %v1017_v62 = vrot.slane %v394_v41, 7  ;;  %v1269_v15 = vrot.slane %v1195_v58, 1  ;;  %v1019_v3 = vrot.slane %v940_v17, 7 }
  0x56   : > { %4433 = vmatmul.mubr.bf16.gmra.mrb[20].mxu1 %v5178_v61  ;;  %1660 = vmatmul.mubr.bf16.gmra.mrb[20].mxu0 %v5172_v21  ;;  %v325_v27 = vmul.f32 %v3860_v55, %v4757_v22  ;;  %v326_v24 = vmul.f32 %v3861_v7, %v4757_v22  ;;  %v429_v39 = vadd.s32 112, %v4716_v5  ;;  %v4619_v22 = vld [vmem:[%s5951_s3 + $0x1a0] sm:$0xff]   ;;  %v1275_v7 = vrot.slane %v5184_v44, 1 }
  0x57   : > { %4145 = vmatpush3.bf16.msra.mxu1 %v4613_v19  ;;  %1667 = vmatprep.mubr.bf16.mxu0 %v5190_v14  ;;  %v1018_v32 = vsel %vm993_vm2, %v1015_v23, %v1017_v62  ;;  %v1197_v19 = vsel %vm1101_vm5, %v394_v41, 0.0  ;;  %v1270_v48 = vsel %vm1249_vm13, %v1267_v47, %v1269_v15  ;;  %v1020_v46 = vsel %vm993_vm2, %v1017_v62, %v1019_v3 }
  0x58   : > { %4146 = vmatprep.subr.bf16.mxu1 %v4615_v60  ;;  %v1272_v2 = vsel %vm1249_vm13, %v1269_v15, %v1271_v29  ;;  %v1273_v60 = vrot.slane %v1197_v19, 1  ;;  %v5209_v55 = vpack.c.bf16 %v1270_v48, %v1268_v57  ;;  %v5211_v58 = vpack.c.bf16 %v1020_v46, %v1018_v32  ;;  %v4620_v57 = vld [vmem:[%s5951_s3 + $0x1e8] sm:$0xff]  }
  0x59   : > { %v364_v17 = vadd.f32 %v4783_v33, %v325_v27  ;;  %v365_v23 = vadd.f32 %v4783_v33, %v326_v24  ;;  %v549_v41 = vand.u32 15, %v429_v39  ;;  %v430_v62 = vadd.s32 120, %v4716_v5  ;;  %v5236_v39 = vld [vmem:[%s5949_s1] ss:$0 sm:$0xff]  ;;  %v3982_v46 = vld [vmem:[%s4744_s17 + $0x48] sm:$0xff]  }
  0x5a   : > { %v1274_v47 = vsel %vm1249_vm13, %v1271_v29, %v1273_v60  ;;  %4436 = vmatprep.mubr.bf16.mxu1 %v5209_v55  ;;  %v3864_v27 = vunpack.c.l.bf16 %v3981_v35  ;;  %v1276_v29 = vsel %vm1249_vm13, %v1273_v60, %v1275_v7  ;;  %v431_v44 = vadd.s32 128, %v4716_v5 }
  0x5b   : > { %4147 = vmatpush3.bf16.msra.mxu1 %v4616_v13  ;;  %v5225_v33 = vpack.c.bf16 %v1274_v47, %v1272_v2  ;;  %v396_v13 = vmax.f32 %v364_v17, 0.0  ;;  %v397_v15 = vmax.f32 %v365_v23, 0.0  ;;  %vm1103_vm6 = vcmp.gt.s32.totalorder %v549_v41, 0  ;;  %v4621_v2 = vld [vmem:[%s5951_s3 + $0x1a8] sm:$0xff]  }
  0x5c   : > { %4148 = vmatprep.subr.bf16.mxu1 %v4618_v37  ;;  %v556_v32 = vand.u32 15, %v430_v62  ;;  %v327_v48 = vmul.f32 %v5236_v39, %v3864_v27  ;;  %v563_v17 = vand.u32 15, %v431_v44  ;;  %v5248_v62 = vld [vmem:[%s5950_s2] ss:$0 sm:$0xff]  ;;  %v3865_v27 = vunpack.c.h.bf16 %v3981_v35 }
  0x5d   : > { %v5231_v37 = vpack.c.bf16 %v397_v15, %v396_v13  ;;  %v1199_v19 = vsel %vm1103_vm6, %v396_v13, 0.0  ;;  %v1021_v24 = vrot.slane %v396_v13, 7  ;;  %v1279_v23 = vrot.slane %v397_v15, 1 }
  0x5e   : > { %1668 = vmatmul.mubr.bf16.gmra.mrb[24].mxu0 %v5211_v58  ;;  %4437 = vmatmul.mubr.bf16.gmra.mrb[24].mxu1 %v5225_v33  ;;  %v1277_v60 = vrot.slane %v1199_v19, 1  ;;  %vm846_vm7 = vcmp.lt.s32.totalorder %v556_v32, 15  ;;  %v366_v13 = vadd.f32 %v5248_v62, %v327_v48  ;;  %v4623_v32 = vld [vmem:[%s5951_s3 + $0x1f0] sm:$0xff]   ;;  %vm5255_vm8 = vcmp.gt.s32.totalorder %v563_v17, 0 }
  0x5f   : > { %4149 = vmatpush3.bf16.msra.mxu1 %v4619_v22  ;;  %1675 = vmatprep.mubr.bf16.mxu0 %v5231_v37  ;;  %v942_v47 = vsel %vm846_vm7, %v397_v15, 0.0  ;;  %v1022_v41 = vsel %vm993_vm2, %v1019_v3, %v1021_v24  ;;  %v3983_v19 = vld [vmem:[%s4744_s17 + $0x50] sm:$0xff]   ;;  %v328_v35 = vmul.f32 %v5236_v39, %v3865_v27  ;;  %v433_v17 = vadd.s32 144, %v4716_v5 }
  0x60   : > { %4150 = vmatprep.subr.bf16.mxu1 %v4620_v57  ;;  %v1278_v22 = vsel %vm1249_vm13, %v1275_v7, %v1277_v60  ;;  %v1023_v44 = vrot.slane %v942_v47, 7  ;;  %v1280_v3 = vsel %vm1249_vm13, %v1277_v60, %v1279_v23  ;;  %v398_v11 = vmax.f32 %v366_v13, 0.0  ;;  %v4624_v48 = vld [vmem:[%s5951_s3 + $0x1b0] sm:$0xff]  }
  0x61   : > { %v5261_v12 = vpack.c.bf16 %v1278_v22, %v1276_v29  ;;  %v3868_v57 = vunpack.c.l.bf16 %v3982_v46  ;;  %v432_v47 = vadd.s32 136, %v4716_v5  ;;  %v3869_v28 = vunpack.c.h.bf16 %v3982_v46 }
  0x62   : > { %v1024_v7 = vsel %vm993_vm2, %v1021_v24, %v1023_v44  ;;  %v1201_v60 = vsel %vm5255_vm8, %v398_v11, 0.0  ;;  %v367_v13 = vadd.f32 %v5248_v62, %v328_v35  ;;  %v4626_v24 = vld [vmem:[%s5951_s3 + $0x1f8] sm:$0xff]   ;;  %v577_v6 = vand.u32 15, %v433_v17 }
  0x63   : > { %4151 = vmatpush3.bf16.msra.mxu1 %v4621_v2  ;;  %4440 = vmatprep.mubr.bf16.mxu1 %v5261_v12  ;;  %v5271_v29 = vpack.c.bf16 %v1024_v7, %v1022_v41  ;;  %v329_v27 = vmul.f32 %v5236_v39, %v3868_v57  ;;  %v1281_v22 = vrot.slane %v1201_v60, 1  ;;  %v570_v46 = vand.u32 15, %v432_v47  ;;  %v4627_v47 = vld [vmem:[%s5951_s3 + $0x1b8] sm:$0xff]  }
  0x64   : > { %4152 = vmatprep.subr.bf16.mxu1 %v4623_v32  ;;  %v1025_v2 = vrot.slane %v398_v11, 7  ;;  %v399_v41 = vmax.f32 %v367_v13, 0.0  ;;  %v3872_v15 = vunpack.c.l.bf16 %v3983_v19  ;;  %v330_v34 = vmul.f32 %v5236_v39, %v3869_v28  ;;  %v5305_v13 = vld [vmem:[%s5951_s3 + $0x140] sm:$0xff]  }
  0x65   : > { %v368_v7 = vadd.f32 %v5248_v62, %v329_v27  ;;  %v1282_v35 = vsel %vm1249_vm13, %v1279_v23, %v1281_v22  ;;  %vm5284_vm9 = vcmp.gt.s32.totalorder %v577_v6, 0  ;;  %vm5288_vm10 = vcmp.lt.s32.totalorder %v570_v46, 15 }
  0x66   : > { %1676 = vmatmul.mubr.bf16.gmra.mrb[28].mxu0 %v5271_v29  ;;  %v1026_v17 = vsel %vm993_vm2, %v1023_v44, %v1025_v2  ;;  %v5296_v60 = vpack.c.bf16 %v1282_v35, %v1280_v3  ;;  %v5298_v28 = vpack.c.bf16 %v399_v41, %v398_v11  ;;  %v1283_v6 = vrot.slane %v399_v41, 1 }
  0x67   : > { %4153 = vmatpush3.bf16.msra.mxu1 %v4624_v48  ;;  %v5300_v23 = vmax.f32 %v368_v7, 0.0  ;;  %v944_v44 = vsel %vm5288_vm10, %v399_v41, 0.0  ;;  %v331_v48 = vmul.f32 %v5236_v39, %v3872_v15  ;;  %v369_v3 = vadd.f32 %v5248_v62, %v330_v34 }
  0x68   : > { %6004 = vst [vmem:[#allocation10_spill] sm:$0xff] %v5298_v28  ;;  %4154 = vmatprep.subr.bf16.mxu1 %v4626_v24  ;;  %v435_v11 = vadd.s32 160, %v4716_v5  ;;  %4441 = vmatmul.mubr.bf16.gmra.mrb[28].mxu1 %v5296_v60  ;;  %v1284_v24 = vsel %vm1249_vm13, %v1281_v22, %v1283_v6  ;;  %v1027_v46 = vrot.slane %v944_v44, 7  ;;  %v3873_v7 = vunpack.c.h.bf16 %v3983_v19 }
  0x69   : > { %1683 = vmatprep.mubr.bf16.mxu0 %v5298_v28  ;;  %v1203_v27 = vsel %vm5284_vm9, %v5300_v23, 0.0  ;;  %v370_v35 = vadd.f32 %v5248_v62, %v331_v48  ;;  %v401_v15 = vmax.f32 %v369_v3, 0.0  ;;  %v437_v28 = vadd.s32 176, %v4716_v5 }
  0x6a   : > { %v1285_v41 = vrot.slane %v1203_v27, 1  ;;  %v591_v57 = vand.u32 15, %v435_v11  ;;  %v1028_v34 = vsel %vm993_vm2, %v1025_v2, %v1027_v46  ;;  %v332_v9 = vmul.f32 %v5236_v39, %v3873_v7 }
  0x6b   : > { %4155 = vmatpush3.bf16.msra.mxu1 %v4627_v47  ;;  %v5325_v32 = vpack.c.bf16 %v1028_v34, %v1026_v17  ;;  %v5327_v19 = vmax.f32 %v370_v35, 0.0  ;;  %v1287_v47 = vrot.slane %v401_v15, 1  ;;  %v5332_v2 = vpack.c.bf16 %v401_v15, %v5300_v23 }
  0x6c   : > { %4508 = vmatprep.subr.bf16.mxu1 %v5305_v13  ;;  %v1286_v22 = vsel %vm1249_vm13, %v1283_v6, %v1285_v41  ;;  %vm1109_vm11 = vcmp.gt.s32.totalorder %v591_v57, 0  ;;  %v333_v10 = vmul.f32 %v5236_v39, %v3876_v36  ;;  %v371_v3 = vadd.f32 %v5248_v62, %v332_v9 }
  0x6d   : > { %6005 = vst [vmem:[#allocation11_spill] sm:$0xff] %v5325_v32  ;;  %v5329_v44 = vpack.c.bf16 %v1286_v22, %v1284_v24  ;;  %6006 = vst [vmem:[#allocation12_spill] sm:$0xff] %v5332_v2  ;;  %v1205_v48 = vsel %vm1109_vm11, %v5327_v19, 0.0  ;;  %v605_v6 = vand.u32 15, %v437_v28  ;;  %v434_v17 = vadd.s32 152, %v4716_v5 }
  0x6e   : > { %1684 = vmatmul.mubr.bf16.gmra.mrb[32].mxu0 %v5325_v32  ;;  %v1288_v11 = vsel %vm1249_vm13, %v1285_v41, %v1287_v47  ;;  %v1289_v27 = vrot.slane %v1205_v48, 1  ;;  %v372_v24 = vadd.f32 %v5248_v62, %v333_v10  ;;  %v1029_v36 = vrot.slane %v5300_v23, 7 }
  0x6f   : > { %4444 = vmatprep.mubr.bf16.mxu1 %v5329_v44  ;;  %1691 = vmatprep.mubr.bf16.mxu0 %v5332_v2  ;;  %v403_v39 = vmax.f32 %v371_v3, 0.0  ;;  %vm5344_vm12 = vcmp.gt.s32.totalorder %v605_v6, 0  ;;  %v584_v9 = vand.u32 15, %v434_v17  ;;  %v439_v28 = vadd.s32 192, %v4716_v5 }
  0x70   : > { %v1290_v35 = vsel %vm1249_vm13, %v1287_v47, %v1289_v27  ;;  %v5350_v57 = vmax.f32 %v372_v24, 0.0  ;;  %v1030_v41 = vsel %vm993_vm2, %v1027_v46, %v1029_v36  ;;  %v1295_v34 = vrot.slane %v4842_v8, 1 }
  0x71   : > { %v5354_v22 = vpack.c.bf16 %v1290_v35, %v1288_v11  ;;  %v1291_v62 = vrot.slane %v403_v39, 1  ;;  %vm850_vm14 = vcmp.lt.s32.totalorder %v584_v9, 15  ;;  %v619_v23 = vand.u32 15, %v439_v28 }
  0x72   : > { %v1207_v10 = vsel %vm5344_vm12, %v5350_v57, 0.0  ;;  %v946_v48 = vsel %vm850_vm14, %v401_v15, 0.0  ;;  %v5360_v3 = vpack.c.bf16 %v403_v39, %v5327_v19  ;;  %v441_v47 = vadd.s32 208, %v4716_v5 }
  0x73   : > { %4445 = vmatmul.mubr.bf16.gmra.mrb[32].mxu1 %v5354_v22  ;;  %v1292_v46 = vsel %vm1249_vm13, %v1289_v27, %v1291_v62  ;;  %v1293_v6 = vrot.slane %v1207_v10, 1  ;;  %v1031_v17 = vrot.slane %v946_v48, 7  ;;  %vm1113_vm15 = vcmp.gt.s32.totalorder %v619_v23, 0 }
  0x74   : > { %v1209_v11 = vsel %vm1113_vm15, %v4824_v63, 0.0  ;;  %v633_v24 = vand.u32 15, %v441_v47  ;;  %v1299_v9 = vrot.slane %v4826_v0, 1  ;;  %v436_v7 = vadd.s32 168, %v4716_v5 }
  0x75   : > { %v1294_v15 = vsel %vm1249_vm13, %v1291_v62, %v1293_v6  ;;  %v1032_v28 = vsel %vm993_vm2, %v1029_v36, %v1031_v17  ;;  %v1296_v35 = vsel %vm1249_vm13, %v1293_v6, %v1295_v34  ;;  %v1297_v2 = vrot.slane %v1209_v11, 1 }
  0x76   : > { %v5371_v32 = vpack.c.bf16 %v1294_v15, %v1292_v46  ;;  %v5373_v27 = vpack.c.bf16 %v1032_v28, %v1030_v41  ;;  %vm1115_vm0 = vcmp.gt.s32.totalorder %v633_v24, 0  ;;  %v598_v23 = vand.u32 15, %v436_v7 }
  0x77   : > { %v1298_v63 = vsel %vm1249_vm13, %v1295_v34, %v1297_v2  ;;  %v1211_v10 = vsel %vm1115_vm0, %v4921_v56, 0.0  ;;  %v1300_v0 = vsel %vm1249_vm13, %v1297_v2, %v1299_v9  ;;  %v1033_v48 = vrot.slane %v5327_v19, 7 }
  0x78   : > { %4448 = vmatprep.mubr.bf16.mxu1 %v5371_v32  ;;  %1692 = vmatmul.mubr.bf16.gmra.mrb[36].mxu0 %v5373_v27  ;;  %v5381_v36 = vpack.c.bf16 %v1298_v63, %v1296_v35  ;;  %v1301_v62 = vrot.slane %v1211_v10, 1  ;;  %vm852_vm1 = vcmp.lt.s32.totalorder %v598_v23, 15  ;;  %v443_v41 = vadd.s32 224, %v4716_v5 }
  0x79   : > { %1699 = vmatprep.mubr.bf16.mxu0 %v5360_v3  ;;  %v948_v47 = vsel %vm852_vm1, %v403_v39, 0.0  ;;  %v1034_v34 = vsel %vm993_vm2, %v1031_v17, %v1033_v48  ;;  %v1303_v56 = vrot.slane %v4923_v59, 1  ;;  %v445_v6 = vadd.s32 240, %v4716_v5 }
  0x7a   : > { %v1302_v2 = vsel %vm1249_vm13, %v1299_v9, %v1301_v62  ;;  %v1035_v19 = vrot.slane %v948_v47, 7  ;;  %v647_v46 = vand.u32 15, %v443_v41  ;;  %v1307_v24 = vrot.slane %v4983_v50, 1  ;;  %v4631_v41 = vld [vmem:[%s5951_s3 + $0x108] sm:$0xff]  }
  0x7b   : > { %4449 = vmatmul.mubr.bf16.gmra.mrb[36].mxu1 %v5381_v36  ;;  %v5390_v11 = vpack.c.bf16 %v1302_v2, %v1300_v0  ;;  %v661_v39 = vand.u32 15, %v445_v6  ;;  %v1311_v17 = vrot.slane %v4828_v1, 1  ;;  %v5401_v5 = vpack.c.bf16 %v4842_v8, %v5350_v57  ;;  %v4632_v47 = vld [vmem:[%s5951_s3 + $0xc8] sm:$0xff]   ;;  %v4635_v2 = vld [vmem:[%s5951_s3 + $0xd0] sm:$0xff]   ;;  %v4643_v6 = vld [vmem:[%s5951_s3 + $0x158] sm:$0xff]  }
  0x7c   : > { %v1036_v7 = vsel %vm993_vm2, %v1033_v48, %v1035_v19  ;;  %vm1117_vm3 = vcmp.gt.s32.totalorder %v647_v46, 0  ;;  %v1037_v15 = vrot.slane %v5350_v57, 7  ;;  %v1304_v50 = vsel %vm1249_vm13, %v1301_v62, %v1303_v56  ;;  %v4638_v46 = vld [vmem:[%s5951_s3 + $0x150] sm:$0xff]  }
  0x7d   : > { %4452 = vmatprep.mubr.bf16.mxu1 %v5390_v11  ;;  %v5396_v59 = vpack.c.bf16 %v1036_v7, %v1034_v34  ;;  %v1213_v9 = vsel %vm1117_vm3, %v4981_v49, 0.0  ;;  %vm1119_vm4 = vcmp.gt.s32.totalorder %v661_v39, 0  ;;  %v1346_v35 = vsel %vm1249_vm13, %v1311_v17, %v5081_v45  ;;  %v4633_v34 = vld [vmem:[%s5951_s3 + $0x148] sm:$0xff]   ;;  %v4640_v7 = vld [vmem:[%s5951_s3 + $0xe0] sm:$0xff]  }
  0x7e   : > { %v1305_v28 = vrot.slane %v1213_v9, 1  ;;  %v1215_v1 = vsel %vm1119_vm4, %v5026_v42, 0.0  ;;  %v1038_v57 = vsel %vm993_vm2, %v1035_v19, %v1037_v15  ;;  %v1040_v10 = vsel %vm993_vm2, %v1037_v15, %v4867_v20  ;;  %v4630_v20 = vld [vmem:[%s5951_s3 + $0xc0] sm:$0xff]   ;;  %v4636_v19 = vld [vmem:[%s5951_s3 + $0x118] sm:$0xff]   ;;  %v4641_v39 = vld [vmem:[%s5951_s3 + $0x128] sm:$0xff]  }
  0x7f   : > { %v1309_v63 = vrot.slane %v1215_v1, 1  ;;  %v5424_v62 = vpack.c.bf16 %v1040_v10, %v1038_v57  ;;  %v4642_v9 = vld [vmem:[%s5951_s3 + $0xe8] sm:$0xff]   ;;  %v4650_v1 = vld [vmem:[%s5951_s3 + $0x170] sm:$0xff]  }
  0x80   : > { %1700 = vmatmul.mubr.bf16.gmra.mrb[40].mxu0 %v5396_v59  ;;  %v1306_v23 = vsel %vm1249_vm13, %v1303_v56, %v1305_v28  ;;  %v1308_v49 = vsel %vm1249_vm13, %v1305_v28, %v1307_v24  ;;  %v4634_v56 = vld [vmem:[%s5951_s3 + $0x110] sm:$0xff]   ;;  %v4649_v15 = vld [vmem:[%s5951_s3 + $0x168] sm:$0xff]  }
  0x81   : > { %v5411_v8 = vpack.c.bf16 %v1306_v23, %v1304_v50  ;;  %1707 = vmatprep.mubr.bf16.mxu0 %v5401_v5  ;;  %v1310_v45 = vsel %vm1249_vm13, %v1307_v24, %v1309_v63  ;;  %v1312_v42 = vsel %vm1249_vm13, %v1309_v63, %v1311_v17  ;;  %v4639_v24 = vld [vmem:[%s5951_s3 + $0x120] sm:$0xff]   ;;  %v4644_v50 = vld [vmem:[%s5951_s3 + $0x130] sm:$0xff]   ;;  %v4647_v23 = vld [vmem:[%s5951_s3 + $0xf8] sm:$0xff]   ;;  %vm3494_vm13 = vcmask 1041408  }
  0x82   : > { %v5420_v0 = vpack.c.bf16 %v1310_v45, %v1308_v49  ;;  %v5422_v48 = vpack.c.bf16 %v1346_v35, %v1312_v42  ;;  %v4648_v17 = vld [vmem:[%s5951_s3 + $0x160] sm:$0xff]   ;;  %v4645_v28 = vld [vmem:[%s5951_s3 + $0xf0] sm:$0xff]   ;;  %v4646_v35 = vld [vmem:[%s5951_s3 + $0x138] sm:$0xff]  }
  0x83   : > { %4453 = vmatmul.mubr.bf16.gmra.mrb[40].mxu1 %v5411_v8  ;;  %v4651_v49 = vld [vmem:[%s5951_s3 + $0x178] sm:$0xff]   ;;  %v6009_v63 = vld [vmem:[#allocation10_spill] sm:$0xff]  ;;  %v6010_v57 = vld [vmem:[#allocation11_spill] sm:$0xff] }
  0x84   : > { %4456 = vmatprep.mubr.bf16.mxu1 %v5420_v0  ;;  %v6011_v10 = vld [vmem:[#allocation12_spill] sm:$0xff] }
  0x88   : > { %1708 = vmatmul.mubr.bf16.gmra.mrb[44].mxu0 %v5424_v62 }
  0x89   : > { %4476 = vmatprep.mubr.bf16.mxu0 %v5104_v25 }
  0x8b   : > { %4457 = vmatmul.mubr.bf16.gmra.mrb[44].mxu1 %v5422_v48 }
  0x8c   : > { %2183 = vmatprep.mubr.bf16.mxu1 %v4836_v4 }
  0x90   : > { %4477 = vmatmul.mubr.bf16.vlgmr.msra.gmra.mrb[48].mxu0 %v5106_v26 }
  0x91   : > { %4277 = vmatpush3.bf16.msra.mxu0 %v4630_v20  ;;  %4480 = vmatprep.mubr.bf16.mxu0 %v5157_v52 }
  0x92   : > { %4278 = vmatprep.subr.bf16.mxu0 %v4631_v41 }
  0x93   : > { %2184 = vmatmul.mubr.bf16.vlgmr.msra.gmra.mrb[48].mxu1 %v4881_v31 }
  0x94   : > { %4509 = vmatpush3.bf16.msra.mxu1 %v5305_v13  ;;  %2191 = vmatprep.mubr.bf16.mxu1 %v4915_v53  ;;  %v4637_v13 = vld [vmem:[%s5951_s3 + $0xd8] sm:$0xff]  }
  0x95   : > { %4279 = vmatpush3.bf16.msra.mxu0 %v4632_v47  ;;  %4510 = vmatprep.subr.bf16.mxu1 %v4633_v34  ;;  %v6017_v47 = vld [vmem:[#allocation7_spill] sm:$0xff] }
  0x96   : > { %4280 = vmatprep.subr.bf16.mxu0 %v4634_v56 }
  0x98   : > { %4481 = vmatmul.mubr.bf16.gmra.mrb[52].mxu0 %v5178_v61  ;;  %4511 = vmatpush3.bf16.msra.mxu1 %v4633_v34  ;;  %v6018_v34 = vld [vmem:[#allocation8_spill] sm:$0xff] }
  0x99   : > { %4484 = vmatprep.mubr.bf16.mxu0 %v5209_v55  ;;  %4281 = vmatpush3.bf16.msra.mxu0 %v4635_v2 }
  0x9a   : > { %4282 = vmatprep.subr.bf16.mxu0 %v4636_v19  ;;  %4512 = vmatprep.subr.bf16.mxu1 %v4638_v46 }
  0x9b   : > { %2192 = vmatmul.mubr.bf16.gmra.mrb[52].mxu1 %v4943_v16 }
  0x9c   : > { %2199 = vmatprep.mubr.bf16.mxu1 %v4973_v43  ;;  %4513 = vmatpush3.bf16.msra.mxu1 %v4638_v46 }
  0x9d   : > { %4283 = vmatpush3.bf16.msra.mxu0 %v4637_v13  ;;  %4514 = vmatprep.subr.bf16.mxu1 %v4643_v6 }
  0x9e   : > { %4284 = vmatprep.subr.bf16.mxu0 %v4639_v24 }
  0xa0   : > { %4485 = vmatmul.mubr.bf16.gmra.mrb[56].mxu0 %v5225_v33  ;;  %4515 = vmatpush3.bf16.msra.mxu1 %v4643_v6 }
  0xa1   : > { %4488 = vmatprep.mubr.bf16.mxu0 %v5261_v12  ;;  %4285 = vmatpush3.bf16.msra.mxu0 %v4640_v7 }
  0xa2   : > { %4286 = vmatprep.subr.bf16.mxu0 %v4641_v39  ;;  %4516 = vmatprep.subr.bf16.mxu1 %v4648_v17 }
  0xa3   : > { %2200 = vmatmul.mubr.bf16.gmra.mrb[56].mxu1 %v5012_v18 }
  0xa4   : > { %2207 = vmatprep.mubr.bf16.mxu1 %v5036_v51  ;;  %4517 = vmatpush3.bf16.msra.mxu1 %v4648_v17 }
  0xa5   : > { %4287 = vmatpush3.bf16.msra.mxu0 %v4642_v9  ;;  %4518 = vmatprep.subr.bf16.mxu1 %v4649_v15 }
  0xa6   : > { %4288 = vmatprep.subr.bf16.mxu0 %v4644_v50 }
  0xa8   : > { %4489 = vmatmul.mubr.bf16.gmra.mrb[60].mxu0 %v5296_v60  ;;  %4519 = vmatpush3.bf16.msra.mxu1 %v4649_v15 }
  0xa9   : > { %4492 = vmatprep.mubr.bf16.mxu0 %v5329_v44  ;;  %4289 = vmatpush3.bf16.msra.mxu0 %v4645_v28 }
  0xaa   : > { %4290 = vmatprep.subr.bf16.mxu0 %v4646_v35  ;;  %4520 = vmatprep.subr.bf16.mxu1 %v4650_v1 }
  0xab   : > { %2208 = vmatmul.mubr.bf16.gmra.mrb[60].mxu1 %v5064_v30 }
  0xac   : > { %2215 = vmatprep.mubr.bf16.mxu1 %v5078_v40  ;;  %4521 = vmatpush3.bf16.msra.mxu1 %v4650_v1 }
  0xad   : > { %4291 = vmatpush3.bf16.msra.mxu0 %v4647_v23  ;;  %4522 = vmatprep.subr.bf16.mxu1 %v4651_v49 }
  0xb0   : > { %4493 = vmatmul.mubr.bf16.gmra.mrb[64].mxu0 %v5354_v22  ;;  %4523 = vmatpush3.bf16.msra.mxu1 %v4651_v49 }
  0xb1   : > { %4496 = vmatprep.mubr.bf16.mxu0 %v5371_v32 }
  0xb3   : > { %2216 = vmatmul.mubr.bf16.gmra.mrb[64].mxu1 %v5138_v54 }
  0xb4   : > { %2223 = vmatprep.mubr.bf16.mxu1 %v5147_v38 }
  0xb8   : > { %4497 = vmatmul.mubr.bf16.gmra.mrb[68].mxu0 %v5381_v36 }
  0xb9   : > { %4500 = vmatprep.mubr.bf16.mxu0 %v5390_v11 }
  0xbb   : > { %2224 = vmatmul.mubr.bf16.gmra.mrb[68].mxu1 %v5172_v21 }
  0xbc   : > { %2231 = vmatprep.mubr.bf16.mxu1 %v5190_v14 }
  0xc0   : > { %4501 = vmatmul.mubr.bf16.gmra.mrb[72].mxu0 %v5411_v8 }
  0xc1   : > { %4504 = vmatprep.mubr.bf16.mxu0 %v5420_v0 }
  0xc3   : > { %2232 = vmatmul.mubr.bf16.gmra.mrb[72].mxu1 %v5211_v58 }
  0xc4   : > { %2239 = vmatprep.mubr.bf16.mxu1 %v5231_v37 }
  0xc8   : > { %4505 = vmatmul.mubr.bf16.gmra.mrb[76].mxu0 %v5422_v48 }
  0xc9   : > { %2777 = vmatprep.mubr.bf16.mxu0 %v4836_v4  ;;  %v6012_v4 = vld [vmem:[#allocation2_spill] sm:$0xff] }
  0xcb   : > { %2240 = vmatmul.mubr.bf16.gmra.mrb[76].mxu1 %v5271_v29 }
  0xcc   : > { %2247 = vmatprep.mubr.bf16.mxu1 %v6009_v63 }
  0xd0   : > { %2778 = vmatmul.mubr.bf16.vlgmr.msra.gmra.mrb[80].mxu0 %v4881_v31  ;;  %v6013_v31 = vld [vmem:[#allocation3_spill] sm:$0xff] }
  0xd1   : > { %2785 = vmatprep.mubr.bf16.mxu0 %v4915_v53  ;;  %v6014_v53 = vld [vmem:[#allocation4_spill] sm:$0xff] }
  0xd3   : > { %2248 = vmatmul.mubr.bf16.gmra.mrb[80].mxu1 %v6010_v57 }
  0xd4   : > { %2255 = vmatprep.mubr.bf16.mxu1 %v6011_v10 }
  0xd8   : > { %2786 = vmatmul.mubr.bf16.gmra.mrb[84].mxu0 %v4943_v16  ;;  %v6015_v16 = vld [vmem:[#allocation5_spill] sm:$0xff] }
  0xd9   : > { %2793 = vmatprep.mubr.bf16.mxu0 %v4973_v43  ;;  %v6016_v43 = vld [vmem:[#allocation6_spill] sm:$0xff] }
  0xdb   : > { %2256 = vmatmul.mubr.bf16.gmra.mrb[84].mxu1 %v5373_v27 }
  0xdc   : > { %2263 = vmatprep.mubr.bf16.mxu1 %v5360_v3 }
  0xe0   : > { %2794 = vmatmul.mubr.bf16.gmra.mrb[88].mxu0 %v5012_v18 }
  0xe1   : > { %2801 = vmatprep.mubr.bf16.mxu0 %v5036_v51 }
  0xe3   : > { %2264 = vmatmul.mubr.bf16.gmra.mrb[88].mxu1 %v5396_v59 }
  0xe4   : > { %2271 = vmatprep.mubr.bf16.mxu1 %v5401_v5 }
  0xe8   : > { %2802 = vmatmul.mubr.bf16.gmra.mrb[92].mxu0 %v5064_v30 }
  0xe9   : > { %2809 = vmatprep.mubr.bf16.mxu0 %v5078_v40 }
  0xeb   : > { %2272 = vmatmul.mubr.bf16.gmra.mrb[92].mxu1 %v5424_v62 }
  0xec   : > { %2279 = vmatprep.mubr.bf16.mxu1 %v6012_v4 }
  0xf0   : > { %2810 = vmatmul.mubr.bf16.gmra.mrb[96].mxu0 %v5138_v54 }
  0xf1   : > { %2817 = vmatprep.mubr.bf16.mxu0 %v5147_v38 }
  0xf3   : > { %2280 = vmatmul.mubr.bf16.gmra.mrb[96].mxu1 %v6013_v31 }
  0xf4   : > { %2287 = vmatprep.mubr.bf16.mxu1 %v6014_v53 }
  0xf8   : > { %2818 = vmatmul.mubr.bf16.gmra.mrb[100].mxu0 %v5172_v21 }
  0xf9   : > { %2825 = vmatprep.mubr.bf16.mxu0 %v5190_v14 }
  0xfb   : > { %2288 = vmatmul.mubr.bf16.gmra.mrb[100].mxu1 %v6015_v16 }
  0xfc   : > { %2295 = vmatprep.mubr.bf16.mxu1 %v6016_v43 }
 0x100   : > { %2826 = vmatmul.mubr.bf16.gmra.mrb[104].mxu0 %v5211_v58 }
 0x101   : > { %v4020_v18 = vpop.f32.mrb[0].mxu0  ;;  %v4092_v51 = vpop.f32.mrb[0].mxu1  ;;  %2833 = vmatprep.mubr.bf16.mxu0 %v5231_v37  ;;  %v6019_v37 = vld [vmem:[#allocation9_spill] sm:$0xff] }
 0x102   : > { %v4021_v30 = vpop.f32.mrb[1].mxu0  ;;  %v4093_v40 = vpop.f32.mrb[1].mxu1 }
 0x103   : > { %v5554_v45 = vadd.f32 %v4021_v30, %v4020_v18  ;;  %v5556_v54 = vadd.f32 %v4093_v40, %v4092_v51  ;;  %v4023_v38 = vpop.f32.mrb[2].mxu0  ;;  %v4095_v42 = vpop.f32.mrb[2].mxu1  ;;  %2296 = vmatmul.mubr.bf16.gmra.mrb[104].mxu1 %v6017_v47 }
 0x104   : > { %v4024_v20 = vpop.f32.mrb[3].mxu0  ;;  %v4096_v41 = vpop.f32.mrb[3].mxu1  ;;  %2303 = vmatprep.mubr.bf16.mxu1 %v6018_v34 }
 0x105   : > { %v5559_v21 = vadd.f32 %v4024_v20, %v4023_v38  ;;  %v5561_v14 = vadd.f32 %v4096_v41, %v4095_v42 }
 0x108   : > { %2834 = vmatmul.mubr.bf16.gmra.mrb[108].mxu0 %v5271_v29 }
 0x109   : > { %v4026_v56 = vpop.f32.mrb[4].mxu0  ;;  %v4098_v2 = vpop.f32.mrb[4].mxu1  ;;  %2841 = vmatprep.mubr.bf16.mxu0 %v6009_v63 }
 0x10a   : > { %v4027_v19 = vpop.f32.mrb[5].mxu0  ;;  %v4099_v13 = vpop.f32.mrb[5].mxu1 }
 0x10b   : > { %v4028_v46 = vadd.f32 %v4027_v19, %v4026_v56  ;;  %v4029_v6 = vpop.f32.mrb[6].mxu0  ;;  %v5566_v24 = vadd.f32 %v4099_v13, %v4098_v2  ;;  %v4101_v7 = vpop.f32.mrb[6].mxu1  ;;  %2304 = vmatmul.mubr.bf16.gmra.mrb[108].mxu1 %v6019_v37 }
 0x10c   : > { %v4030_v58 = vpop.f32.mrb[7].mxu0  ;;  %v4102_v17 = vpop.f32.mrb[7].mxu1  ;;  %4524 = vmatprep.mubr.bf16.mxu1 %v5104_v25 }
 0x10d   : > { %v4031_v39 = vadd.f32 %v4030_v58, %v4029_v6  ;;  %v5569_v9 = vadd.f32 %v4102_v17, %v4101_v7 }
 0x110   : > { %2842 = vmatmul.mubr.bf16.gmra.mrb[112].mxu0 %v6010_v57 }
 0x111   : > { %v4032_v15 = vpop.f32.mrb[8].mxu0  ;;  %v4104_v50 = vpop.f32.mrb[8].mxu1  ;;  %2849 = vmatprep.mubr.bf16.mxu0 %v6011_v10 }
 0x112   : > { %v4033_v28 = vpop.f32.mrb[9].mxu0  ;;  %v4105_v1 = vpop.f32.mrb[9].mxu1 }
 0x113   : > { %v4034_v35 = vadd.f32 %v4033_v28, %v4032_v15  ;;  %v4035_v23 = vpop.f32.mrb[10].mxu0  ;;  %v5575_v49 = vadd.f32 %v4105_v1, %v4104_v50  ;;  %v4107_v29 = vpop.f32.mrb[10].mxu1  ;;  %4525 = vmatmul.mubr.bf16.vlgmr.msra.gmra.mrb[112].mxu1 %v5106_v26 }
 0x114   : > { %v4036_v18 = vpop.f32.mrb[11].mxu0  ;;  %v4108_v30 = vpop.f32.mrb[11].mxu1  ;;  %4528 = vmatprep.mubr.bf16.mxu1 %v5157_v52 }
 0x115   : > { %v4037_v51 = vadd.f32 %v4036_v18, %v4035_v23  ;;  %v5578_v63 = vadd.f32 %v4108_v30, %v4107_v29 }
 0x118   : > { %2850 = vmatmul.mubr.bf16.gmra.mrb[116].mxu0 %v5373_v27 }
 0x119   : > { %v4038_v25 = vpop.f32.mrb[12].mxu0  ;;  %v4110_v40 = vpop.f32.mrb[12].mxu1  ;;  %2857 = vmatprep.mubr.bf16.mxu0 %v5360_v3 }
 0x11a   : > { %v4039_v38 = vpop.f32.mrb[13].mxu0  ;;  %v4111_v20 = vpop.f32.mrb[13].mxu1 }
 0x11b   : > { %v4040_v42 = vadd.f32 %v4039_v38, %v4038_v25  ;;  %v4041_v57 = vpop.f32.mrb[14].mxu0  ;;  %v4113_v41 = vpop.f32.mrb[14].mxu1  ;;  %4529 = vmatmul.mubr.bf16.gmra.mrb[116].mxu1 %v5178_v61 }
 0x11c   : > { %v4042_v56 = vpop.f32.mrb[15].mxu0  ;;  %v4114_v19 = vpop.f32.mrb[15].mxu1  ;;  %4532 = vmatprep.mubr.bf16.mxu1 %v5209_v55 }
 0x11d   : > { %v4043_v2 = vadd.f32 %v4042_v56, %v4041_v57 }
 0x120   : > { %2858 = vmatmul.mubr.bf16.gmra.mrb[120].mxu0 %v5396_v59 }
 0x121   : > { %v4430_v26 = vpop.f32.mrb[16].mxu1  ;;  %v4044_v52 = vpop.f32.mrb[16].mxu0  ;;  %2865 = vmatprep.mubr.bf16.mxu0 %v5401_v5 }
 0x122   : > { %v5586_v10 = vadd.f32 %v4430_v26, %v4028_v46  ;;  %v1782_v13 = vpop.f32.mrb[17].mxu1  ;;  %v4045_v6 = vpop.f32.mrb[17].mxu0 }
 0x123   : > { %v5590_v27 = vadd.f32 %v5554_v45, %v1782_v13  ;;  %v4431_v7 = vpop.f32.mrb[18].mxu1  ;;  %v4046_v58 = vadd.f32 %v4045_v6, %v4044_v52  ;;  %v4047_v17 = vpop.f32.mrb[18].mxu0  ;;  %4533 = vmatmul.mubr.bf16.gmra.mrb[120].mxu1 %v5225_v33 }
 0x124   : > { %v5592_v15 = vadd.f32 %v4431_v7, %v4031_v39  ;;  %v1785_v3 = vpop.f32.mrb[19].mxu1  ;;  %v4048_v61 = vpop.f32.mrb[19].mxu0  ;;  %4536 = vmatprep.mubr.bf16.mxu1 %v5261_v12 }
 0x125   : > { %v5596_v55 = vadd.f32 %v5559_v21, %v1785_v3  ;;  %v4049_v46 = vadd.f32 %v4048_v61, %v4047_v17 }
 0x128   : > { %2866 = vmatmul.mubr.bf16.gmra.mrb[124].mxu0 %v5424_v62 }
 0x129   : > { %v4434_v59 = vpop.f32.mrb[20].mxu1  ;;  %v4050_v45 = vpop.f32.mrb[20].mxu0  ;;  %2873 = vmatprep.mubr.bf16.mxu0 %v6012_v4 }
 0x12a   : > { %v5600_v50 = vadd.f32 %v4434_v59, %v4040_v42  ;;  %v1798_v28 = vpop.f32.mrb[21].mxu1  ;;  %v4051_v39 = vpop.f32.mrb[21].mxu0 }
 0x12b   : > { %v5603_v1 = vadd.f32 %v4034_v35, %v1798_v28  ;;  %v4435_v5 = vpop.f32.mrb[22].mxu1  ;;  %v4052_v23 = vadd.f32 %v4051_v39, %v4050_v45  ;;  %v4053_v29 = vpop.f32.mrb[22].mxu0  ;;  %4537 = vmatmul.mubr.bf16.gmra.mrb[124].mxu1 %v5296_v60 }
 0x12c   : > { %v5605_v21 = vadd.f32 %v4435_v5, %v4043_v2  ;;  %v1801_v18 = vpop.f32.mrb[23].mxu1  ;;  %v4054_v33 = vpop.f32.mrb[23].mxu0  ;;  %4540 = vmatprep.mubr.bf16.mxu1 %v5329_v44 }
 0x12d   : > { %v5608_v12 = vadd.f32 %v4037_v51, %v1801_v18  ;;  %v4055_v30 = vadd.f32 %v4054_v33, %v4053_v29 }
 0x130   : > { %2874 = vmatmul.mubr.bf16.gmra.mrb[128].mxu0 %v6013_v31 }
 0x131   : > { %v4056_v62 = vpop.f32.mrb[24].mxu0  ;;  %v4438_v25 = vpop.f32.mrb[24].mxu1  ;;  %2881 = vmatprep.mubr.bf16.mxu0 %v6014_v53 }
 0x132   : > { %v5613_v35 = vadd.f32 %v4438_v25, %v4052_v23  ;;  %v4057_v40 = vpop.f32.mrb[25].mxu0  ;;  %v1814_v38 = vpop.f32.mrb[25].mxu1 }
 0x133   : > { %v4058_v42 = vadd.f32 %v4057_v40, %v4056_v62  ;;  %v5615_v20 = vadd.f32 %v4046_v58, %v1814_v38  ;;  %v4059_v4 = vpop.f32.mrb[26].mxu0  ;;  %v4439_v57 = vpop.f32.mrb[26].mxu1  ;;  %4541 = vmatmul.mubr.bf16.gmra.mrb[128].mxu1 %v5354_v22 }
 0x134   : > { %v5618_v51 = vadd.f32 %v4439_v57, %v4055_v30  ;;  %v4060_v60 = vpop.f32.mrb[27].mxu0  ;;  %v1817_v41 = vpop.f32.mrb[27].mxu1  ;;  %4544 = vmatprep.mubr.bf16.mxu1 %v5371_v32 }
 0x135   : > { %v4061_v44 = vadd.f32 %v4060_v60, %v4059_v4  ;;  %v5621_v56 = vadd.f32 %v4049_v46, %v1817_v41 }
 0x138   : > { %2882 = vmatmul.mubr.bf16.gmra.mrb[132].mxu0 %v6015_v16 }
 0x139   : > { %v4062_v31 = vpop.f32.mrb[28].mxu0  ;;  %2889 = vmatprep.mubr.bf16.mxu0 %v6016_v43 }
 0x13a   : > { %v4063_v2 = vpop.f32.mrb[29].mxu0 }
 0x13b   : > { %v4064_v19 = vadd.f32 %v4063_v2, %v4062_v31  ;;  %v4065_v26 = vpop.f32.mrb[30].mxu0  ;;  %4545 = vmatmul.mubr.bf16.gmra.mrb[132].mxu1 %v5381_v36  ;;  %v4442_v52 = vpop.f32.mrb[28].mxu1 }
 0x13c   : > { %v4066_v53 = vpop.f32.mrb[31].mxu0  ;;  %v1830_v22 = vpop.f32.mrb[29].mxu1  ;;  %4548 = vmatprep.mubr.bf16.mxu1 %v5390_v11 }
 0x13d   : > { %v4067_v13 = vadd.f32 %v4066_v53, %v4065_v26  ;;  %v5627_v6 = vadd.f32 %v4442_v52, %v4064_v19  ;;  %v5630_v7 = vadd.f32 %v4058_v42, %v1830_v22  ;;  %v4443_v32 = vpop.f32.mrb[30].mxu1 }
 0x13e   : > { %v1833_v16 = vpop.f32.mrb[31].mxu1 }
 0x13f   : > { %v5632_v58 = vadd.f32 %v4443_v32, %v4067_v13  ;;  %v5634_v17 = vadd.f32 %v4061_v44, %v1833_v16 }
 0x140   : > { %2890 = vmatmul.mubr.bf16.gmra.mrb[136].mxu0 %v6017_v47 }
 0x141   : > { %v4068_v43 = vpop.f32.mrb[32].mxu0  ;;  %2897 = vmatprep.mubr.bf16.mxu0 %v6018_v34 }
 0x142   : > { %v4069_v3 = vpop.f32.mrb[33].mxu0 }
 0x143   : > { %v4070_v36 = vadd.f32 %v4069_v3, %v4068_v43  ;;  %v4071_v61 = vpop.f32.mrb[34].mxu0  ;;  %4549 = vmatmul.mubr.bf16.gmra.mrb[136].mxu1 %v5411_v8 }
 0x144   : > { %v4072_v46 = vpop.f32.mrb[35].mxu0  ;;  %4552 = vmatprep.mubr.bf16.mxu1 %v5420_v0 }
 0x145   : > { %v4073_v11 = vadd.f32 %v4072_v46, %v4071_v61 }
 0x146   : > { %v4446_v59 = vpop.f32.mrb[32].mxu1 }
 0x147   : > { %v1846_v45 = vpop.f32.mrb[33].mxu1 }
 0x148   : > { %v5640_v28 = vadd.f32 %v4070_v36, %v1846_v45  ;;  %v4447_v39 = vpop.f32.mrb[34].mxu1  ;;  %2898 = vmatmul.mubr.bf16.gmra.mrb[140].mxu0 %v6019_v37 }
 0x149   : > { %v1849_v47 = vpop.f32.mrb[35].mxu1 }
 0x14a   : > { %v5643_v5 = vadd.f32 %v4073_v11, %v1849_v47 }
 0x14b   : > { %4553 = vmatmul.mubr.bf16.gmra.mrb[140].mxu1 %v5422_v48  ;;  %v4074_v34 = vpop.f32.mrb[36].mxu0 }
 0x14c   : > { %v4075_v23 = vpop.f32.mrb[37].mxu0 }
 0x14d   : > { %v4076_v29 = vadd.f32 %v4075_v23, %v4074_v34  ;;  %v4077_v8 = vpop.f32.mrb[38].mxu0 }
 0x14e   : > { %v4450_v18 = vpop.f32.mrb[36].mxu1  ;;  %v4078_v33 = vpop.f32.mrb[39].mxu0 }
 0x14f   : > { %v5646_v30 = vadd.f32 %v4446_v59, %v4076_v29  ;;  %v1862_v0 = vpop.f32.mrb[37].mxu1  ;;  %v4079_v62 = vadd.f32 %v4078_v33, %v4077_v8 }
 0x150   : > { %v4451_v25 = vpop.f32.mrb[38].mxu1 }
 0x151   : > { %v5648_v40 = vadd.f32 %v4447_v39, %v4079_v62  ;;  %v1865_v38 = vpop.f32.mrb[39].mxu1 }
 0x153   : > { %6020 = vst [vmem:[#allocation10_spill] sm:$0xff] %v5648_v40  ;;  %v4080_v37 = vpop.f32.mrb[40].mxu0 }
 0x154   : > { %v4081_v42 = vpop.f32.mrb[41].mxu0 }
 0x155   : > { %v4082_v4 = vadd.f32 %v4081_v42, %v4080_v37  ;;  %v4083_v57 = vpop.f32.mrb[42].mxu0 }
 0x156   : > { %v4454_v60 = vpop.f32.mrb[40].mxu1  ;;  %v4084_v48 = vpop.f32.mrb[43].mxu0 }
 0x157   : > { %v5651_v41 = vadd.f32 %v4454_v60, %v5566_v24  ;;  %v5653_v44 = vadd.f32 %v4082_v4, %v1862_v0  ;;  %v1878_v31 = vpop.f32.mrb[41].mxu1  ;;  %v4085_v2 = vadd.f32 %v4084_v48, %v4083_v57 }
 0x158   : > { %v5656_v19 = vadd.f32 %v5556_v54, %v1878_v31  ;;  %v4455_v26 = vpop.f32.mrb[42].mxu1 }
 0x159   : > { %6021 = vst [vmem:[#allocation11_spill] sm:$0xff] %v5651_v41  ;;  %6022 = vst [vmem:[#allocation12_spill] sm:$0xff] %v5653_v44  ;;  %v5659_v53 = vadd.f32 %v4455_v26, %v5569_v9  ;;  %v5661_v52 = vadd.f32 %v4085_v2, %v1865_v38  ;;  %v1881_v13 = vpop.f32.mrb[43].mxu1 }
 0x15a   : > { %6023 = vst [vmem:[#allocation2_spill] sm:$0xff] %v5656_v19  ;;  %v5664_v22 = vadd.f32 %v5561_v14, %v1881_v13 }
 0x15b   : > { %6024 = vst [vmem:[#allocation3_spill] sm:$0xff] %v5659_v53  ;;  %6025 = vst [vmem:[#allocation4_spill] sm:$0xff] %v5661_v52  ;;  %v4086_v32 = vpop.f32.mrb[44].mxu0 }
 0x15c   : > { %6026 = vst [vmem:[#allocation5_spill] sm:$0xff] %v5664_v22  ;;  %v4087_v24 = vpop.f32.mrb[45].mxu0 }
 0x15d   : > { %v4088_v16 = vadd.f32 %v4087_v24, %v4086_v32  ;;  %v4089_v43 = vpop.f32.mrb[46].mxu0 }
 0x15e   : > { %v4458_v3 = vpop.f32.mrb[44].mxu1  ;;  %v4090_v36 = vpop.f32.mrb[47].mxu0 }
 0x15f   : > { %v5666_v61 = vadd.f32 %v4450_v18, %v4088_v16  ;;  %v1894_v54 = vpop.f32.mrb[45].mxu1  ;;  %v4091_v46 = vadd.f32 %v4090_v36, %v4089_v43 }
 0x160   : > { %v5669_v11 = vadd.f32 %v5575_v49, %v1894_v54  ;;  %v4459_v9 = vpop.f32.mrb[46].mxu1 }
 0x161   : > { %6027 = vst [vmem:[#allocation6_spill] sm:$0xff] %v5666_v61  ;;  %v5671_v59 = vadd.f32 %v4451_v25, %v4091_v46  ;;  %v1897_v45 = vpop.f32.mrb[47].mxu1 }
 0x162   : > { %6028 = vst [vmem:[#allocation7_spill] sm:$0xff] %v5669_v11  ;;  %v5674_v14 = vadd.f32 %v5578_v63, %v1897_v45 }
 0x163   : > { %6029 = vst [vmem:[#allocation8_spill] sm:$0xff] %v5671_v59  ;;  %v4478_v39 = vpop.f32.mrb[48].mxu0 }
 0x164   : > { %6030 = vst [vmem:[#allocation9_spill] sm:$0xff] %v5674_v14  ;;  %v2346_v47 = vpop.f32.mrb[49].mxu0 }
 0x165   : > { %v4479_v34 = vpop.f32.mrb[50].mxu0 }
 0x166   : > { %v4156_v23 = vpop.f32.mrb[48].mxu1  ;;  %v2349_v29 = vpop.f32.mrb[51].mxu0 }
 0x167   : > { %v4157_v8 = vpop.f32.mrb[49].mxu1 }
 0x168   : > { %v4159_v18 = vpop.f32.mrb[50].mxu1 }
 0x169   : > { %v4160_v33 = vpop.f32.mrb[51].mxu1 }
 0x16b   : > { %v4482_v0 = vpop.f32.mrb[52].mxu0 }
 0x16c   : > { %v2362_v62 = vpop.f32.mrb[53].mxu0 }
 0x16d   : > { %v4483_v38 = vpop.f32.mrb[54].mxu0 }
 0x16e   : > { %v4162_v49 = vpop.f32.mrb[52].mxu1  ;;  %v2365_v37 = vpop.f32.mrb[55].mxu0 }
 0x16f   : > { %v4163_v42 = vpop.f32.mrb[53].mxu1 }
 0x170   : > { %v4164_v25 = vadd.f32 %v4163_v42, %v4162_v49  ;;  %v4165_v4 = vpop.f32.mrb[54].mxu1 }
 0x171   : > { %v4166_v57 = vpop.f32.mrb[55].mxu1 }
 0x172   : > { %v5676_v60 = vadd.f32 %v4478_v39, %v4164_v25  ;;  %v4167_v63 = vadd.f32 %v4166_v57, %v4165_v4 }
 0x173   : > { %v4486_v48 = vpop.f32.mrb[56].mxu0 }
 0x174   : > { %v5678_v31 = vadd.f32 %v4479_v34, %v4167_v63  ;;  %v2378_v2 = vpop.f32.mrb[57].mxu0 }
 0x175   : > { %v4487_v26 = vpop.f32.mrb[58].mxu0 }
 0x176   : > { %v4168_v13 = vpop.f32.mrb[56].mxu1  ;;  %v2381_v32 = vpop.f32.mrb[59].mxu0 }
 0x177   : > { %v4169_v24 = vpop.f32.mrb[57].mxu1 }
 0x178   : > { %v4170_v16 = vadd.f32 %v4169_v24, %v4168_v13  ;;  %v4171_v43 = vpop.f32.mrb[58].mxu1 }
 0x179   : > { %v4172_v3 = vpop.f32.mrb[59].mxu1 }
 0x17a   : > { %v5680_v36 = vadd.f32 %v4170_v16, %v2362_v62  ;;  %v4173_v54 = vadd.f32 %v4172_v3, %v4171_v43 }
 0x17b   : > { %v4490_v46 = vpop.f32.mrb[60].mxu0 }
 0x17c   : > { %v5682_v9 = vadd.f32 %v4173_v54, %v2365_v37  ;;  %v2394_v45 = vpop.f32.mrb[61].mxu0 }
 0x17d   : > { %v4491_v39 = vpop.f32.mrb[62].mxu0 }
 0x17e   : > { %v4174_v47 = vpop.f32.mrb[60].mxu1  ;;  %v2397_v23 = vpop.f32.mrb[63].mxu0 }
 0x17f   : > { %v4175_v34 = vpop.f32.mrb[61].mxu1 }
 0x180   : > { %v4176_v29 = vadd.f32 %v4175_v34, %v4174_v47  ;;  %v4177_v8 = vpop.f32.mrb[62].mxu1 }
 0x181   : > { %v4178_v18 = vpop.f32.mrb[63].mxu1 }
 0x182   : > { %v5684_v33 = vadd.f32 %v4482_v0, %v4176_v29  ;;  %v4179_v49 = vadd.f32 %v4178_v18, %v4177_v8 }
 0x183   : > { %v5686_v42 = vpop.f32.mrb[64].mxu0 }
 0x184   : > { %v5688_v25 = vadd.f32 %v4483_v38, %v4179_v49  ;;  %v2410_v62 = vpop.f32.mrb[65].mxu0 }
 0x185   : > { %v5690_v4 = vpop.f32.mrb[66].mxu0 }
 0x186   : > { %v4180_v37 = vpop.f32.mrb[64].mxu1  ;;  %v2413_v57 = vpop.f32.mrb[67].mxu0 }
 0x187   : > { %v4181_v63 = vpop.f32.mrb[65].mxu1 }
 0x188   : > { %v4182_v13 = vadd.f32 %v4181_v63, %v4180_v37  ;;  %v4183_v24 = vpop.f32.mrb[66].mxu1 }
 0x189   : > { %v4184_v16 = vpop.f32.mrb[67].mxu1 }
 0x18a   : > { %v5692_v43 = vadd.f32 %v4182_v13, %v2378_v2  ;;  %v4185_v3 = vadd.f32 %v4184_v16, %v4183_v24 }
 0x18b   : > { %v5694_v54 = vpop.f32.mrb[68].mxu0 }
 0x18c   : > { %v5696_v0 = vadd.f32 %v4185_v3, %v2381_v32  ;;  %v5698_v47 = vpop.f32.mrb[69].mxu0 }
 0x18d   : > { %v5700_v38 = vpop.f32.mrb[70].mxu0 }
 0x18e   : > { %v4186_v34 = vpop.f32.mrb[68].mxu1  ;;  %v5702_v29 = vpop.f32.mrb[71].mxu0 }
 0x18f   : > { %v4187_v8 = vpop.f32.mrb[69].mxu1 }
 0x190   : > { %v4188_v18 = vadd.f32 %v4187_v8, %v4186_v34  ;;  %v4189_v49 = vpop.f32.mrb[70].mxu1 }
 0x191   : > { %v4190_v37 = vpop.f32.mrb[71].mxu1 }
 0x192   : > { %v5704_v63 = vadd.f32 %v4486_v48, %v4188_v18  ;;  %v4191_v2 = vadd.f32 %v4190_v37, %v4189_v49 }
 0x193   : > { %v5706_v13 = vpop.f32.mrb[72].mxu0 }
 0x194   : > { %6031 = vst [vmem:[#allocation13_spill] sm:$0xff] %v5704_v63  ;;  %v5708_v24 = vadd.f32 %v4487_v26, %v4191_v2  ;;  %v5710_v32 = vpop.f32.mrb[73].mxu0 }
 0x195   : > { %v5712_v16 = vpop.f32.mrb[74].mxu0 }
 0x196   : > { %6032 = vst [vmem:[#allocation14_spill] sm:$0xff] %v5708_v24  ;;  %v4192_v3 = vpop.f32.mrb[72].mxu1  ;;  %v5714_v14 = vpop.f32.mrb[75].mxu0 }
 0x197   : > { %v4193_v11 = vpop.f32.mrb[73].mxu1 }
 0x198   : > { %v4194_v53 = vadd.f32 %v4193_v11, %v4192_v3  ;;  %v4195_v41 = vpop.f32.mrb[74].mxu1 }
 0x199   : > { %v4196_v34 = vpop.f32.mrb[75].mxu1 }
 0x19a   : > { %v5716_v8 = vadd.f32 %v4194_v53, %v2394_v45  ;;  %v4197_v48 = vadd.f32 %v4196_v34, %v4195_v41 }
 0x19b   : > { %v5718_v18 = vpop.f32.mrb[76].mxu0 }
 0x19c   : > { %6033 = vst [vmem:[#allocation15_spill] sm:$0xff] %v5716_v8  ;;  %v5720_v49 = vadd.f32 %v4197_v48, %v2397_v23  ;;  %v5722_v26 = vpop.f32.mrb[77].mxu0 }
 0x19d   : > { %v5724_v37 = vpop.f32.mrb[78].mxu0 }
 0x19e   : > { %6034 = vst [vmem:[#allocation16_spill] sm:$0xff] %v5720_v49  ;;  %v4198_v2 = vpop.f32.mrb[76].mxu1  ;;  %v5726_v22 = vpop.f32.mrb[79].mxu0 }
 0x19f   : > { %v4199_v19 = vpop.f32.mrb[77].mxu1 }
 0x1a0   : > { %v4200_v59 = vadd.f32 %v4199_v19, %v4198_v2  ;;  %v4201_v61 = vpop.f32.mrb[78].mxu1 }
 0x1a1   : > { %v4202_v11 = vpop.f32.mrb[79].mxu1 }
 0x1a2   : > { %v5728_v3 = vadd.f32 %v4490_v46, %v4200_v59  ;;  %v4203_v53 = vadd.f32 %v4202_v11, %v4201_v61 }
 0x1a3   : > { %v4292_v45 = vpop.f32.mrb[80].mxu0 }
 0x1a4   : > { %6035 = vst [vmem:[#allocation17_spill] sm:$0xff] %v5728_v3  ;;  %v5730_v41 = vadd.f32 %v4491_v39, %v4203_v53  ;;  %v4293_v34 = vpop.f32.mrb[81].mxu0 }
 0x1a5   : > { %v5732_v23 = vadd.f32 %v4293_v34, %v4292_v45  ;;  %v4295_v48 = vpop.f32.mrb[82].mxu0 }
 0x1a6   : > { %6036 = vst [vmem:[#allocation18_spill] sm:$0xff] %v5730_v41  ;;  %v4204_v52 = vpop.f32.mrb[80].mxu1  ;;  %v4296_v44 = vpop.f32.mrb[83].mxu0 }
 0x1a7   : > { %v4205_v24 = vpop.f32.mrb[81].mxu1  ;;  %v5734_v49 = vadd.f32 %v4296_v44, %v4295_v48 }
 0x1a8   : > { %v4206_v63 = vadd.f32 %v4205_v24, %v4204_v52  ;;  %v4207_v40 = vpop.f32.mrb[82].mxu1 }
 0x1a9   : > { %v4208_v19 = vpop.f32.mrb[83].mxu1 }
 0x1aa   : > { %v5736_v2 = vadd.f32 %v4206_v63, %v2410_v62  ;;  %v4209_v59 = vadd.f32 %v4208_v19, %v4207_v40 }
 0x1ab   : > { %v4298_v46 = vpop.f32.mrb[84].mxu0 }
 0x1ac   : > { %v5738_v61 = vadd.f32 %v4209_v59, %v2413_v57  ;;  %v4299_v39 = vpop.f32.mrb[85].mxu0 }
 0x1ad   : > { %v4300_v11 = vadd.f32 %v4299_v39, %v4298_v46  ;;  %v4301_v53 = vpop.f32.mrb[86].mxu0 }
 0x1ae   : > { %v4210_v45 = vpop.f32.mrb[84].mxu1  ;;  %v4302_v34 = vpop.f32.mrb[87].mxu0 }
 0x1af   : > { %v4211_v41 = vpop.f32.mrb[85].mxu1  ;;  %v4303_v3 = vadd.f32 %v4302_v34, %v4301_v53  ;;  %v5741_v8 = vadd.f32 %v4300_v11, %v5590_v27 }
 0x1b0   : > { %v4212_v44 = vadd.f32 %v4211_v41, %v4210_v45  ;;  %v4213_v52 = vpop.f32.mrb[86].mxu1 }
 0x1b1   : > { %v4214_v24 = vpop.f32.mrb[87].mxu1  ;;  %v5744_v62 = vadd.f32 %v4303_v3, %v5596_v55 }
 0x1b2   : > { %v5747_v40 = vadd.f32 %v5686_v42, %v4212_v44  ;;  %v4215_v57 = vadd.f32 %v4214_v24, %v4213_v52 }
 0x1b3   : > { %v4304_v63 = vpop.f32.mrb[88].mxu0 }
 0x1b4   : > { %v5750_v48 = vadd.f32 %v5690_v4, %v4215_v57  ;;  %v4305_v19 = vpop.f32.mrb[89].mxu0 }
 0x1b5   : > { %v4306_v59 = vadd.f32 %v4305_v19, %v4304_v63  ;;  %v4307_v46 = vpop.f32.mrb[90].mxu0 }
 0x1b6   : > { %v4216_v39 = vpop.f32.mrb[88].mxu1  ;;  %v4308_v27 = vpop.f32.mrb[91].mxu0 }
 0x1b7   : > { %v4217_v11 = vpop.f32.mrb[89].mxu1  ;;  %v4309_v41 = vadd.f32 %v4308_v27, %v4307_v46  ;;  %v5753_v53 = vadd.f32 %v4306_v59, %v5586_v10 }
 0x1b8   : > { %v4218_v55 = vadd.f32 %v4217_v11, %v4216_v39  ;;  %v4219_v3 = vpop.f32.mrb[90].mxu1 }
 0x1b9   : > { %v4220_v45 = vpop.f32.mrb[91].mxu1  ;;  %v5756_v42 = vadd.f32 %v4309_v41, %v5592_v15 }
 0x1ba   : > { %v5759_v34 = vadd.f32 %v4218_v55, %v5698_v47  ;;  %v4221_v4 = vadd.f32 %v4220_v45, %v4219_v3 }
 0x1bb   : > { %v4310_v44 = vpop.f32.mrb[92].mxu0 }
 0x1bc   : > { %v5762_v52 = vadd.f32 %v4221_v4, %v5702_v29  ;;  %v4311_v24 = vpop.f32.mrb[93].mxu0 }
 0x1bd   : > { %v4312_v57 = vadd.f32 %v4311_v24, %v4310_v44  ;;  %v4313_v63 = vpop.f32.mrb[94].mxu0 }
 0x1be   : > { %v4222_v19 = vpop.f32.mrb[92].mxu1  ;;  %v4314_v10 = vpop.f32.mrb[95].mxu0 }
 0x1bf   : > { %v4223_v59 = vpop.f32.mrb[93].mxu1  ;;  %v4315_v46 = vadd.f32 %v4314_v10, %v4313_v63  ;;  %v5765_v39 = vadd.f32 %v4312_v57, %v5603_v1 }
 0x1c0   : > { %v4224_v15 = vadd.f32 %v4223_v59, %v4222_v19  ;;  %v4225_v27 = vpop.f32.mrb[94].mxu1 }
 0x1c1   : > { %v4226_v11 = vpop.f32.mrb[95].mxu1  ;;  %v5768_v47 = vadd.f32 %v4315_v46, %v5608_v12 }
 0x1c2   : > { %v5771_v41 = vadd.f32 %v5694_v54, %v4224_v15  ;;  %v4227_v29 = vadd.f32 %v4226_v11, %v4225_v27 }
 0x1c3   : > { %v4316_v55 = vpop.f32.mrb[96].mxu0 }
 0x1c4   : > { %v5774_v3 = vadd.f32 %v5700_v38, %v4227_v29  ;;  %v4317_v45 = vpop.f32.mrb[97].mxu0 }
 0x1c5   : > { %v4318_v4 = vadd.f32 %v4317_v45, %v4316_v55  ;;  %v4319_v44 = vpop.f32.mrb[98].mxu0 }
 0x1c6   : > { %v4228_v24 = vpop.f32.mrb[96].mxu1  ;;  %v4320_v1 = vpop.f32.mrb[99].mxu0 }
 0x1c7   : > { %v4229_v57 = vpop.f32.mrb[97].mxu1  ;;  %v4321_v63 = vadd.f32 %v4320_v1, %v4319_v44  ;;  %v5777_v19 = vadd.f32 %v4318_v4, %v5600_v50 }
 0x1c8   : > { %v4230_v12 = vadd.f32 %v4229_v57, %v4228_v24  ;;  %v4231_v10 = vpop.f32.mrb[98].mxu1 }
 0x1c9   : > { %v4232_v59 = vpop.f32.mrb[99].mxu1  ;;  %v5780_v54 = vadd.f32 %v4321_v63, %v5605_v21 }
 0x1ca   : > { %v5783_v46 = vadd.f32 %v4230_v12, %v5710_v32  ;;  %v4233_v38 = vadd.f32 %v4232_v59, %v4231_v10 }
 0x1cb   : > { %v4322_v15 = vpop.f32.mrb[100].mxu0 }
 0x1cc   : > { %v5786_v27 = vadd.f32 %v4233_v38, %v5714_v14  ;;  %v4323_v11 = vpop.f32.mrb[101].mxu0 }
 0x1cd   : > { %v4324_v29 = vadd.f32 %v4323_v11, %v4322_v15  ;;  %v4325_v55 = vpop.f32.mrb[102].mxu0 }
 0x1ce   : > { %v4234_v45 = vpop.f32.mrb[100].mxu1  ;;  %v4326_v50 = vpop.f32.mrb[103].mxu0 }
 0x1cf   : > { %v4235_v4 = vpop.f32.mrb[101].mxu1  ;;  %v4327_v44 = vadd.f32 %v4326_v50, %v4325_v55  ;;  %v5789_v24 = vadd.f32 %v4324_v29, %v5615_v20 }
 0x1d0   : > { %v4236_v21 = vadd.f32 %v4235_v4, %v4234_v45  ;;  %v4237_v1 = vpop.f32.mrb[102].mxu1 }
 0x1d1   : > { %v4238_v57 = vpop.f32.mrb[103].mxu1  ;;  %v5792_v32 = vadd.f32 %v4327_v44, %v5621_v56 }
 0x1d2   : > { %v5795_v63 = vadd.f32 %v5706_v13, %v4236_v21  ;;  %v4239_v14 = vadd.f32 %v4238_v57, %v4237_v1 }
 0x1d3   : > { %v4328_v12 = vpop.f32.mrb[104].mxu0 }
 0x1d4   : > { %v5798_v10 = vadd.f32 %v5712_v16, %v4239_v14  ;;  %v4329_v59 = vpop.f32.mrb[105].mxu0 }
 0x1d5   : > { %v4330_v38 = vadd.f32 %v4329_v59, %v4328_v12  ;;  %v4331_v15 = vpop.f32.mrb[106].mxu0 }
 0x1d6   : > { %v4240_v11 = vpop.f32.mrb[104].mxu1  ;;  %v4332_v20 = vpop.f32.mrb[107].mxu0 }
 0x1d7   : > { %v4241_v29 = vpop.f32.mrb[105].mxu1  ;;  %v4333_v55 = vadd.f32 %v4332_v20, %v4331_v15  ;;  %v5801_v45 = vadd.f32 %v4330_v38, %v5613_v35 }
 0x1d8   : > { %v4242_v56 = vadd.f32 %v4241_v29, %v4240_v11  ;;  %v4243_v50 = vpop.f32.mrb[106].mxu1 }
 0x1d9   : > { %v4244_v4 = vpop.f32.mrb[107].mxu1  ;;  %v5804_v13 = vadd.f32 %v4333_v55, %v5618_v51 }
 0x1da   : > { %v5807_v44 = vadd.f32 %v4242_v56, %v5722_v26  ;;  %v4245_v16 = vadd.f32 %v4244_v4, %v4243_v50 }
 0x1db   : > { %v4334_v21 = vpop.f32.mrb[108].mxu0 }
 0x1dc   : > { %v5810_v1 = vadd.f32 %v4245_v16, %v5726_v22  ;;  %v4335_v57 = vpop.f32.mrb[109].mxu0 }
 0x1dd   : > { %v4336_v14 = vadd.f32 %v4335_v57, %v4334_v21  ;;  %v4337_v12 = vpop.f32.mrb[110].mxu0 }
 0x1de   : > { %v4246_v59 = vpop.f32.mrb[108].mxu1  ;;  %v4338_v35 = vpop.f32.mrb[111].mxu0 }
 0x1df   : > { %v4247_v38 = vpop.f32.mrb[109].mxu1  ;;  %v4339_v15 = vadd.f32 %v4338_v35, %v4337_v12  ;;  %v5813_v11 = vadd.f32 %v4336_v14, %v5630_v7 }
 0x1e0   : > { %v4248_v51 = vadd.f32 %v4247_v38, %v4246_v59  ;;  %v4249_v20 = vpop.f32.mrb[110].mxu1 }
 0x1e1   : > { %v4250_v29 = vpop.f32.mrb[111].mxu1  ;;  %v5816_v26 = vadd.f32 %v4339_v15, %v5634_v17 }
 0x1e2   : > { %v5819_v55 = vadd.f32 %v5718_v18, %v4248_v51  ;;  %v4251_v22 = vadd.f32 %v4250_v29, %v4249_v20 }
 0x1e3   : > { %v4340_v56 = vpop.f32.mrb[112].mxu0 }
 0x1e4   : > { %v5822_v50 = vadd.f32 %v5724_v37, %v4251_v22  ;;  %v4341_v4 = vpop.f32.mrb[113].mxu0 }
 0x1e5   : > { %v4342_v16 = vadd.f32 %v4341_v4, %v4340_v56  ;;  %v4343_v21 = vpop.f32.mrb[114].mxu0 }
 0x1e6   : > { %v4526_v57 = vpop.f32.mrb[112].mxu1  ;;  %v4344_v7 = vpop.f32.mrb[115].mxu0 }
 0x1e7   : > { %v2949_v14 = vadd.f32 %v4526_v57, %v5741_v8  ;;  %v2940_v12 = vpop.f32.mrb[113].mxu1  ;;  %v4345_v59 = vadd.f32 %v4344_v7, %v4343_v21  ;;  %v5826_v17 = vadd.f32 %v4342_v16, %v5627_v6 }
 0x1e8   : > { %v2941_v18 = vadd.f32 %v5732_v23, %v2940_v12  ;;  %v4527_v35 = vpop.f32.mrb[114].mxu1 }
 0x1e9   : > { %v3197_v38 = vadd.f32 %v2949_v14, %v5680_v36  ;;  %v2952_v37 = vadd.f32 %v4527_v35, %v5744_v62  ;;  %v2943_v15 = vpop.f32.mrb[115].mxu1  ;;  %v5832_v51 = vadd.f32 %v4345_v59, %v5632_v58 }
 0x1ea   : > { %v3195_v20 = vadd.f32 %v2941_v18, %v5676_v60  ;;  %v2944_v8 = vadd.f32 %v5734_v49, %v2943_v15 }
 0x1eb   : > { %v3198_v29 = vadd.f32 %v2952_v37, %v5682_v9  ;;  %v4346_v22 = vpop.f32.mrb[116].mxu0 }
 0x1ec   : > { %v3196_v6 = vadd.f32 %v2944_v8, %v5678_v31  ;;  %v4347_v36 = vpop.f32.mrb[117].mxu0  ;;  %v3424_v60 = vmul.f32 %v3195_v20, %v3195_v20  ;;  %v3426_v31 = vmul.f32 %v3197_v38, %v3197_v38 }
 0x1ed   : > { %v3902_v58 = vpack.c.bf16 %v3198_v29, %v3197_v38  ;;  %v4348_v23 = vadd.f32 %v4347_v36, %v4346_v22  ;;  %v4349_v62 = vpop.f32.mrb[118].mxu0  ;;  %v3427_v37 = vmul.f32 %v3198_v29, %v3198_v29 }
 0x1ee   : > { %v3897_v56 = vpack.c.bf16 %v3196_v6, %v3195_v20  ;;  %v3387_v49 = vadd.f32 %v3196_v6, %v3195_v20  ;;  %v3425_v4 = vmul.f32 %v3196_v6, %v3196_v6  ;;  %v4530_v9 = vpop.f32.mrb[116].mxu1  ;;  %v4350_v16 = vpop.f32.mrb[119].mxu0 }
 0x1ef   : > { %3989 = vst [vmem:[%s5842_s9 + $0x8] sm:$0xff] %v3902_v58   ;;  %v2965_v21 = vadd.f32 %v4530_v9, %v5765_v39  ;;  %v2956_v57 = vpop.f32.mrb[117].mxu1  ;;  %v4351_v7 = vadd.f32 %v4350_v16, %v4349_v62  ;;  %v5848_v14 = vadd.f32 %v4348_v23, %v5640_v28 }
 0x1f0   : > { %3898 = vst [vmem:[%s5842_s9] sm:$0xff] %v3897_v56   ;;  %v3388_v12 = vadd.f32 %v3387_v49, %v3197_v38  ;;  %v3456_v59 = vadd.f32 %v3425_v4, %v3424_v60  ;;  %v2957_v18 = vadd.f32 %v2956_v57, %v5753_v53  ;;  %v4531_v35 = vpop.f32.mrb[118].mxu1 }
 0x1f1   : > { %v3201_v15 = vadd.f32 %v2965_v21, %v5692_v43  ;;  %v2968_v20 = vadd.f32 %v4531_v35, %v5768_v47  ;;  %v2959_v8 = vpop.f32.mrb[119].mxu1  ;;  %v5855_v39 = vadd.f32 %v4351_v7, %v5643_v5  ;;  %v6037_v35 = vld [vmem:[#allocation15_spill] sm:$0xff] }
 0x1f2   : > { %v3457_v22 = vadd.f32 %v3456_v59, %v3426_v31  ;;  %v3199_v28 = vadd.f32 %v2957_v18, %v5684_v33  ;;  %v3389_v6 = vadd.f32 %v3388_v12, %v3198_v29  ;;  %v2960_v36 = vadd.f32 %v2959_v8, %v5756_v42 }
 0x1f3   : > { %v3202_v38 = vadd.f32 %v2968_v20, %v5696_v0  ;;  %v4352_v53 = vpop.f32.mrb[120].mxu0 }
 0x1f4   : > { %v3390_v58 = vadd.f32 %v3389_v6, %v3199_v28  ;;  %v3428_v23 = vmul.f32 %v3199_v28, %v3199_v28  ;;  %v3458_v62 = vadd.f32 %v3457_v22, %v3427_v37  ;;  %v3200_v43 = vadd.f32 %v2960_v36, %v5688_v25  ;;  %v4353_v47 = vpop.f32.mrb[121].mxu0  ;;  %v6038_v22 = vld [vmem:[#allocation10_spill] sm:$0xff]  ;;  %v6039_v6 = vld [vmem:[#allocation13_spill] sm:$0xff] }
 0x1f5   : > { %v3912_v60 = vpack.c.bf16 %v3202_v38, %v3201_v15  ;;  %v4354_v5 = vadd.f32 %v4353_v47, %v4352_v53  ;;  %v4355_v56 = vpop.f32.mrb[122].mxu0  ;;  %v3430_v25 = vmul.f32 %v3201_v15, %v3201_v15  ;;  %v3431_v18 = vmul.f32 %v3202_v38, %v3202_v38  ;;  %v6041_v47 = vld [vmem:[#allocation14_spill] sm:$0xff] }
 0x1f6   : > { %v3459_v49 = vadd.f32 %v3458_v62, %v3428_v23  ;;  %v3907_v4 = vpack.c.bf16 %v3200_v43, %v3199_v28  ;;  %v3391_v33 = vadd.f32 %v3390_v58, %v3200_v43  ;;  %v3429_v29 = vmul.f32 %v3200_v43, %v3200_v43  ;;  %v4534_v9 = vpop.f32.mrb[120].mxu1  ;;  %v4356_v42 = vpop.f32.mrb[123].mxu0 }
 0x1f7   : > { %3991 = vst [vmem:[%s5842_s9 + $0x18] sm:$0xff] %v3912_v60   ;;  %v2981_v0 = vadd.f32 %v4534_v9, %v5789_v24  ;;  %v2972_v16 = vpop.f32.mrb[121].mxu1  ;;  %v4357_v21 = vadd.f32 %v4356_v42, %v4355_v56  ;;  %v5864_v57 = vadd.f32 %v4354_v5, %v5646_v30 }
 0x1f8   : > { %3990 = vst [vmem:[%s5842_s9 + $0x10] sm:$0xff] %v3907_v4   ;;  %v3392_v7 = vadd.f32 %v3391_v33, %v3201_v15  ;;  %v3460_v31 = vadd.f32 %v3459_v49, %v3429_v29  ;;  %v2973_v12 = vadd.f32 %v2972_v16, %v5777_v19  ;;  %v4535_v59 = vpop.f32.mrb[122].mxu1  ;;  %v6040_v15 = vld [vmem:[#allocation16_spill] sm:$0xff] }
 0x1f9   : > { %v3205_v37 = vadd.f32 %v2981_v0, %v6037_v35  ;;  %v2984_v20 = vadd.f32 %v4535_v59, %v5792_v32  ;;  %v2975_v8 = vpop.f32.mrb[123].mxu1  ;;  %v5871_v24 = vadd.f32 %v4357_v21, %v6038_v22  ;;  %v6042_v21 = vld [vmem:[#allocation12_spill] sm:$0xff] }
 0x1fa   : > { %v3461_v28 = vadd.f32 %v3460_v31, %v3430_v25  ;;  %v3203_v30 = vadd.f32 %v2973_v12, %v6039_v6  ;;  %v3393_v36 = vadd.f32 %v3392_v7, %v3202_v38  ;;  %v2976_v53 = vadd.f32 %v2975_v8, %v5780_v54 }
 0x1fb   : > { %v3206_v58 = vadd.f32 %v2984_v20, %v6040_v15  ;;  %v4358_v19 = vpop.f32.mrb[124].mxu0  ;;  %v3434_v7 = vmul.f32 %v3205_v37, %v3205_v37 }
 0x1fc   : > { %v3394_v23 = vadd.f32 %v3393_v36, %v3203_v30  ;;  %v3432_v62 = vmul.f32 %v3203_v30, %v3203_v30  ;;  %v3462_v43 = vadd.f32 %v3461_v28, %v3431_v18  ;;  %v3204_v60 = vadd.f32 %v2976_v53, %v6041_v47  ;;  %v4359_v32 = vpop.f32.mrb[125].mxu0  ;;  %v6043_v28 = vld [vmem:[#allocation4_spill] sm:$0xff] }
 0x1fd   : > { %v3922_v5 = vpack.c.bf16 %v3206_v58, %v3205_v37  ;;  %v4360_v56 = vadd.f32 %v4359_v32, %v4358_v19  ;;  %v4361_v49 = vpop.f32.mrb[126].mxu0  ;;  %v3435_v35 = vmul.f32 %v3206_v58, %v3206_v58 }
 0x1fe   : > { %v3463_v4 = vadd.f32 %v3462_v43, %v3432_v62  ;;  %v3917_v33 = vpack.c.bf16 %v3204_v60, %v3203_v30  ;;  %v3395_v29 = vadd.f32 %v3394_v23, %v3204_v60  ;;  %v3433_v38 = vmul.f32 %v3204_v60, %v3204_v60  ;;  %v4538_v9 = vpop.f32.mrb[124].mxu1  ;;  %v4362_v54 = vpop.f32.mrb[127].mxu0  ;;  %v6044_v30 = vld [vmem:[#allocation17_spill] sm:$0xff] }
 0x1ff   : > { %3993 = vst [vmem:[%s5842_s9 + $0x28] sm:$0xff] %v3922_v5   ;;  %v2997_v42 = vadd.f32 %v4538_v9, %v5813_v11  ;;  %v2988_v0 = vpop.f32.mrb[125].mxu1  ;;  %v4363_v16 = vadd.f32 %v4362_v54, %v4361_v49  ;;  %v5880_v25 = vadd.f32 %v4360_v56, %v6042_v21 }
 0x200   : > { %3992 = vst [vmem:[%s5842_s9 + $0x20] sm:$0xff] %v3917_v33   ;;  %v3396_v31 = vadd.f32 %v3395_v29, %v3205_v37  ;;  %v3464_v12 = vadd.f32 %v3463_v4, %v3433_v38  ;;  %v2989_v59 = vadd.f32 %v2988_v0, %v5801_v45  ;;  %v4539_v18 = vpop.f32.mrb[126].mxu1  ;;  %v6046_v38 = vld [vmem:[#allocation6_spill] sm:$0xff] }
 0x201   : > { %v3209_v20 = vadd.f32 %v2997_v42, %v5736_v2  ;;  %v3000_v8 = vadd.f32 %v4539_v18, %v5816_v26  ;;  %v2991_v22 = vpop.f32.mrb[127].mxu1  ;;  %v5887_v11 = vadd.f32 %v4363_v16, %v6043_v28  ;;  %v6045_v2 = vld [vmem:[#allocation18_spill] sm:$0xff]  ;;  %v6047_v18 = vld [vmem:[#allocation8_spill] sm:$0xff] }
 0x202   : > { %v3465_v6 = vadd.f32 %v3464_v12, %v3434_v7  ;;  %v3207_v36 = vadd.f32 %v2989_v59, %v6044_v30  ;;  %v3397_v53 = vadd.f32 %v3396_v31, %v3206_v58  ;;  %v2992_v15 = vadd.f32 %v2991_v22, %v5804_v13 }
 0x203   : > { %v3210_v37 = vadd.f32 %v3000_v8, %v5738_v61  ;;  %v4364_v45 = vpop.f32.mrb[128].mxu0  ;;  %v3438_v54 = vmul.f32 %v3209_v20, %v3209_v20 }
 0x204   : > { %v3398_v19 = vadd.f32 %v3397_v53, %v3207_v36  ;;  %v3436_v23 = vmul.f32 %v3207_v36, %v3207_v36  ;;  %v3466_v62 = vadd.f32 %v3465_v6, %v3435_v35  ;;  %v3208_v43 = vadd.f32 %v2992_v15, %v6045_v2  ;;  %v4365_v26 = vpop.f32.mrb[129].mxu0 }
 0x205   : > { %v3932_v47 = vpack.c.bf16 %v3210_v37, %v3209_v20  ;;  %v4366_v60 = vadd.f32 %v4365_v26, %v4364_v45  ;;  %v4367_v32 = vpop.f32.mrb[130].mxu0  ;;  %v3439_v7 = vmul.f32 %v3210_v37, %v3210_v37  ;;  %v6048_v26 = vld [vmem:[#allocation2_spill] sm:$0xff] }
 0x206   : > { %v3467_v5 = vadd.f32 %v3466_v62, %v3436_v23  ;;  %v3927_v56 = vpack.c.bf16 %v3208_v43, %v3207_v36  ;;  %v3399_v49 = vadd.f32 %v3398_v19, %v3208_v43  ;;  %v3437_v58 = vmul.f32 %v3208_v43, %v3208_v43  ;;  %v4542_v4 = vpop.f32.mrb[128].mxu1  ;;  %v4368_v13 = vpop.f32.mrb[131].mxu0 }
 0x207   : > { %3995 = vst [vmem:[%s5842_s9 + $0x38] sm:$0xff] %v3932_v47   ;;  %v3013_v61 = vadd.f32 %v4542_v4, %v5848_v14  ;;  %v3004_v33 = vpop.f32.mrb[129].mxu1  ;;  %v4369_v29 = vadd.f32 %v4368_v13, %v4367_v32  ;;  %v5896_v9 = vadd.f32 %v4366_v60, %v6046_v38 }
 0x208   : > { %3994 = vst [vmem:[%s5842_s9 + $0x30] sm:$0xff] %v3927_v56   ;;  %v3400_v42 = vadd.f32 %v3399_v49, %v3209_v20  ;;  %v3468_v0 = vadd.f32 %v3467_v5, %v3437_v58  ;;  %v3005_v16 = vadd.f32 %v3004_v33, %v5826_v17  ;;  %v4543_v21 = vpop.f32.mrb[130].mxu1 }
 0x209   : > { %v3213_v31 = vadd.f32 %v3013_v61, %v5759_v34  ;;  %v3016_v12 = vadd.f32 %v4543_v21, %v5855_v39  ;;  %v3007_v59 = vpop.f32.mrb[131].mxu1  ;;  %v5903_v14 = vadd.f32 %v4369_v29, %v6047_v18  ;;  %v6049_v61 = vld [vmem:[#allocation5_spill] sm:$0xff] }
 0x20a   : > { %v3469_v35 = vadd.f32 %v3468_v0, %v3438_v54  ;;  %v3211_v8 = vadd.f32 %v3005_v16, %v5747_v40  ;;  %v3401_v22 = vadd.f32 %v3400_v42, %v3210_v37  ;;  %v3008_v28 = vadd.f32 %v3007_v59, %v5832_v51 }
 0x20b   : > { %v3214_v20 = vadd.f32 %v3016_v12, %v5762_v52  ;;  %v4370_v17 = vpop.f32.mrb[132].mxu0  ;;  %v3442_v60 = vmul.f32 %v3213_v31, %v3213_v31 }
 0x20c   : > { %v3402_v6 = vadd.f32 %v3401_v22, %v3211_v8  ;;  %v3440_v30 = vmul.f32 %v3211_v8, %v3211_v8  ;;  %v3470_v36 = vadd.f32 %v3469_v35, %v3439_v7  ;;  %v3212_v34 = vadd.f32 %v3008_v28, %v5750_v48  ;;  %v4371_v39 = vpop.f32.mrb[133].mxu0 }
 0x20d   : > { %v3942_v53 = vpack.c.bf16 %v3214_v20, %v3213_v31  ;;  %v4372_v15 = vadd.f32 %v4371_v39, %v4370_v17  ;;  %v4373_v45 = vpop.f32.mrb[134].mxu0  ;;  %v3443_v49 = vmul.f32 %v3214_v20, %v3214_v20 }
 0x20e   : > { %v3471_v19 = vadd.f32 %v3470_v36, %v3440_v30  ;;  %v3937_v23 = vpack.c.bf16 %v3212_v34, %v3211_v8  ;;  %v3403_v40 = vadd.f32 %v3402_v6, %v3212_v34  ;;  %v3441_v37 = vmul.f32 %v3212_v34, %v3212_v34  ;;  %v4546_v62 = vpop.f32.mrb[132].mxu1  ;;  %v4374_v51 = vpop.f32.mrb[135].mxu0 }
 0x20f   : > { %3997 = vst [vmem:[%s5842_s9 + $0x48] sm:$0xff] %v3942_v53   ;;  %v3029_v52 = vadd.f32 %v4546_v62, %v5880_v25  ;;  %v3020_v2 = vpop.f32.mrb[133].mxu1  ;;  %v4375_v43 = vadd.f32 %v4374_v51, %v4373_v45  ;;  %v2884_v47 = vadd.f32 %v4372_v15, %v6048_v26 }
 0x210   : > { %3996 = vst [vmem:[%s5842_s9 + $0x40] sm:$0xff] %v3937_v23   ;;  %v3404_v48 = vadd.f32 %v3403_v40, %v3213_v31  ;;  %v3472_v32 = vadd.f32 %v3471_v19, %v3441_v37  ;;  %v3021_v5 = vadd.f32 %v3020_v2, %v5864_v57  ;;  %v4547_v56 = vpop.f32.mrb[134].mxu1  ;;  %v6051_v19 = vld [vmem:[#allocation3_spill] sm:$0xff] }
 0x211   : > { %v3217_v58 = vadd.f32 %v3029_v52, %v5783_v46  ;;  %v3032_v4 = vadd.f32 %v4547_v56, %v5887_v11  ;;  %v3023_v13 = vpop.f32.mrb[135].mxu1  ;;  %v2887_v33 = vadd.f32 %v4375_v43, %v6049_v61 }
 0x212   : > { %v3473_v25 = vadd.f32 %v3472_v32, %v3442_v60  ;;  %v3215_v29 = vadd.f32 %v3021_v5, %v5771_v41  ;;  %v3405_v38 = vadd.f32 %v3404_v48, %v3214_v20  ;;  %v3024_v54 = vadd.f32 %v3023_v13, %v5871_v24  ;;  %v6050_v20 = vld [vmem:[#allocation11_spill] sm:$0xff] }
 0x213   : > { %v3218_v42 = vadd.f32 %v3032_v4, %v5786_v27  ;;  %v4376_v0 = vpop.f32.mrb[136].mxu0  ;;  %v3446_v6 = vmul.f32 %v3217_v58, %v3217_v58 }
 0x214   : > { %v3406_v57 = vadd.f32 %v3405_v38, %v3215_v29  ;;  %v3444_v16 = vmul.f32 %v3215_v29, %v3215_v29  ;;  %v3474_v21 = vadd.f32 %v3473_v25, %v3443_v49  ;;  %v3216_v46 = vadd.f32 %v3024_v54, %v5774_v3  ;;  %v4377_v7 = vpop.f32.mrb[137].mxu0 }
 0x215   : > { %v3952_v11 = vpack.c.bf16 %v3218_v42, %v3217_v58  ;;  %v4378_v31 = vadd.f32 %v4377_v7, %v4376_v0  ;;  %v4379_v12 = vpop.f32.mrb[138].mxu0  ;;  %v3447_v39 = vmul.f32 %v3218_v42, %v3218_v42  ;;  %v6053_v0 = vld [vmem:[#allocation9_spill] sm:$0xff] }
 0x216   : > { %v3475_v59 = vadd.f32 %v3474_v21, %v3444_v16  ;;  %v3947_v18 = vpack.c.bf16 %v3216_v46, %v3215_v29  ;;  %v3407_v41 = vadd.f32 %v3406_v57, %v3216_v46  ;;  %v3445_v35 = vmul.f32 %v3216_v46, %v3216_v46  ;;  %v4550_v8 = vpop.f32.mrb[136].mxu1  ;;  %v4380_v24 = vpop.f32.mrb[139].mxu0 }
 0x217   : > { %3999 = vst [vmem:[%s5842_s9 + $0x58] sm:$0xff] %v3952_v11   ;;  %v3045_v27 = vadd.f32 %v4550_v8, %v2884_v47  ;;  %v3036_v22 = vpop.f32.mrb[137].mxu1  ;;  %v4381_v28 = vadd.f32 %v4380_v24, %v4379_v12  ;;  %v2892_v17 = vadd.f32 %v4378_v31, %v6050_v20 }
 0x218   : > { %3998 = vst [vmem:[%s5842_s9 + $0x50] sm:$0xff] %v3947_v18   ;;  %v3408_v3 = vadd.f32 %v3407_v41, %v3217_v58  ;;  %v3476_v30 = vadd.f32 %v3475_v59, %v3445_v35  ;;  %v3037_v36 = vadd.f32 %v3036_v22, %v5896_v9  ;;  %v4551_v34 = vpop.f32.mrb[138].mxu1 }
 0x219   : > { %v3221_v53 = vadd.f32 %v3045_v27, %v5807_v44  ;;  %v3048_v15 = vadd.f32 %v4551_v34, %v2887_v33  ;;  %v3039_v45 = vpop.f32.mrb[139].mxu1  ;;  %v2895_v23 = vadd.f32 %v4381_v28, %v6051_v19 }
 0x21a   : > { %v3477_v40 = vadd.f32 %v3476_v30, %v3446_v6  ;;  %v3219_v37 = vadd.f32 %v3037_v36, %v5795_v63  ;;  %v3409_v62 = vadd.f32 %v3408_v3, %v3218_v42  ;;  %v3040_v51 = vadd.f32 %v3039_v45, %v5903_v14 }
 0x21b   : > { %v3222_v52 = vadd.f32 %v3048_v15, %v5810_v1  ;;  %v4382_v2 = vpop.f32.mrb[140].mxu0  ;;  %v6052_v1 = vld [vmem:[#allocation7_spill] sm:$0xff]  ;;  %v3450_v33 = vmul.f32 %v3221_v53, %v3221_v53 }
 0x21c   : > { %v3410_v43 = vadd.f32 %v3409_v62, %v3219_v37  ;;  %v3448_v9 = vmul.f32 %v3219_v37, %v3219_v37  ;;  %v3478_v26 = vadd.f32 %v3477_v40, %v3447_v39  ;;  %v3220_v47 = vadd.f32 %v3040_v51, %v5798_v10  ;;  %v4383_v44 = vpop.f32.mrb[141].mxu0 }
 0x21d   : > { %v3962_v60 = vpack.c.bf16 %v3222_v52, %v3221_v53  ;;  %v4384_v48 = vadd.f32 %v4383_v44, %v4382_v2  ;;  %v4385_v32 = vpop.f32.mrb[142].mxu0  ;;  %v3451_v54 = vmul.f32 %v3222_v52, %v3222_v52 }
 0x21e   : > { %v3479_v5 = vadd.f32 %v3478_v26, %v3448_v9  ;;  %v3957_v56 = vpack.c.bf16 %v3220_v47, %v3219_v37  ;;  %v3411_v63 = vadd.f32 %v3410_v43, %v3220_v47  ;;  %v3449_v49 = vmul.f32 %v3220_v47, %v3220_v47  ;;  %v4554_v58 = vpop.f32.mrb[140].mxu1  ;;  %v4386_v14 = vpop.f32.mrb[143].mxu0 }
 0x21f   : > { %4001 = vst [vmem:[%s5842_s9 + $0x68] sm:$0xff] %v3962_v60   ;;  %v2900_v4 = vadd.f32 %v4384_v48, %v6052_v1  ;;  %v3052_v13 = vpop.f32.mrb[141].mxu1  ;;  %v4387_v61 = vadd.f32 %v4386_v14, %v4385_v32 }
 0x220   : > { %4000 = vst [vmem:[%s5842_s9 + $0x60] sm:$0xff] %v3957_v56   ;;  %v3412_v25 = vadd.f32 %v3411_v63, %v3221_v53  ;;  %v3480_v10 = vadd.f32 %v3479_v5, %v3449_v49  ;;  %v3053_v29 = vadd.f32 %v3052_v13, %v2892_v17  ;;  %v4555_v38 = vpop.f32.mrb[142].mxu1 }
 0x221   : > { %v3061_v42 = vadd.f32 %v4554_v58, %v2900_v4  ;;  %v2903_v57 = vadd.f32 %v4387_v61, %v6053_v0  ;;  %v3055_v16 = vpop.f32.mrb[143].mxu1 }
 0x222   : > { %v3481_v21 = vadd.f32 %v3480_v10, %v3450_v33  ;;  %v3223_v46 = vadd.f32 %v3053_v29, %v5819_v55  ;;  %v3413_v7 = vadd.f32 %v3412_v25, %v3222_v52  ;;  %v3056_v11 = vadd.f32 %v3055_v16, %v2895_v23 }
 0x223   : > { %v3064_v31 = vadd.f32 %v4555_v38, %v2903_v57  ;;  %v3454_v28 = vmul.f32 %v3061_v42, %v3061_v42 }
 0x224   : > { %v3414_v12 = vadd.f32 %v3413_v7, %v3223_v46  ;;  %v3452_v59 = vmul.f32 %v3223_v46, %v3223_v46  ;;  %v3482_v18 = vadd.f32 %v3481_v21, %v3451_v54  ;;  %v3224_v41 = vadd.f32 %v3056_v11, %v5822_v50 }
 0x225   : > { %v3972_v35 = vpack.c.bf16 %v3064_v31, %v3061_v42  ;;  %v3455_v17 = vmul.f32 %v3064_v31, %v3064_v31 }
 0x226   : > { %v3483_v8 = vadd.f32 %v3482_v18, %v3452_v59  ;;  %v3967_v24 = vpack.c.bf16 %v3224_v41, %v3223_v46  ;;  %v3415_v27 = vadd.f32 %v3414_v12, %v3224_v41  ;;  %v3453_v22 = vmul.f32 %v3224_v41, %v3224_v41 }
 0x227   : > { %4003 = vst [vmem:[%s5842_s9 + $0x78] sm:$0xff] %v3972_v35  }
 0x228   : > { %4002 = vst [vmem:[%s5842_s9 + $0x70] sm:$0xff] %v3967_v24   ;;  %v3416_v20 = vadd.f32 %v3415_v27, %v3061_v42  ;;  %v3484_v55 = vadd.f32 %v3483_v8, %v3453_v22 }
 0x22a   : > { %v3417_v6 = vadd.f32 %v3416_v20, %v3064_v31  ;;  %v3485_v3 = vadd.f32 %v3484_v55, %v3454_v28 }
 0x22c   : > { %v3418_v30 = vrot.slane %v3417_v6, 4  ;;  %v3486_v36 = vadd.f32 %v3485_v3, %v3455_v17 }
 0x22e   : > { %v3419_v34 = vadd.f32 %v3418_v30, %v3417_v6  ;;  %v3487_v50 = vrot.slane %v3486_v36, 4 }
 0x230   : > { %v3420_v39 = vrot.slane %v3419_v34, 2  ;;  %v3488_v53 = vadd.f32 %v3487_v50, %v3486_v36 }
 0x232   : > { %v3421_v15 = vadd.f32 %v3420_v39, %v3419_v34  ;;  %v3489_v45 = vrot.slane %v3488_v53, 2 }
 0x234   : > { %v3422_v19 = vrot.slane %v3421_v15, 1  ;;  %v3490_v23 = vadd.f32 %v3489_v45, %v3488_v53 }
 0x236   : > { %v3491_v40 = vrot.slane %v3490_v23, 1  ;;  %v3423_v37 = vadd.f32 %v3422_v19, %v3421_v15 }
 0x238   : > { %v3492_v62 = vadd.f32 %v3491_v40, %v3490_v23 }
 0x23a   : > { %v3493_v51 = vsel %vm993_vm2, %v3423_v37, %v3492_v62 }
 0x23b   : > { %v3495_v52 = vsel %vm3494_vm13, %v3493_v51, 0.0 }
 0x23c   : > { %3496 = vst [vmem:[%s238_s11] sm:$0xff] %v3495_v52 }
 0x23d PF: > { %s16_s18 = sadd.s32 1, %s4661_s18  }
 0x23e   : > { %p13_p5 = scmp.ge.s32.totalorder %s16_s18, 4  }
 0x240   :  { %15 = sbr.rel (!%p13_p5) target bundleno = 1 (0x1), region = 80 }

</bundles_post_ra>
